<compile_context>
chip_gen: v7x
topology: tpu7x:2x2x1
jax: 0.10.0
libtpu: 0.0.40
codegen_flags: <defaults>
</compile_context>

<pallas_src>
import functools

import jax
import jax.numpy as jnp
import numpy as np
from jax import lax
from jax.experimental import pallas as pl
from jax.experimental.pallas import tpu as pltpu


def _round_up(x, m):
    return (x + m - 1) // m * m


def _fused_convt_gemm_kernel(bt_ref, bias_ref, a_ref, o_ref, *, min_value,
                             inv_divisor):
    # bt_ref:   (C_out, K)   bf16  flipped/reshaped ConvTranspose3d weight
    # bias_ref: (C_out, 1)   f32
    # a_ref:    (K, tm)      bf16  im2col patches for tm output positions
    # o_ref:    (C_out, tm)  f32   (channel-major output tile)
    acc = lax.dot_general(
        bt_ref[...], a_ref[...],
        dimension_numbers=(((1,), (0,)), ((), ())),
        preferred_element_type=jnp.float32)            # (C_out, tm) f32 acc
    acc = acc + bias_ref[...]                          # broadcast (C_out, 1)
    acc = jnp.maximum(acc, min_value)                  # clamp(min=min_value)
    o_ref[...] = (acc * inv_divisor).astype(o_ref.dtype)


def conv_transpose3d_clamp_div(x, w, b, stride, padding, min_value, divisor,
                               *, tm=4096):
    """x: (N, C_in, D, H, W); w: (C_in, C_out, kD, kH, kW); b: (C_out,)."""
    N, C_in, D, H, W = x.shape
    _, C_out, kD, kH, kW = w.shape
    s, p = stride, padding

    outD = (D - 1) * s - 2 * p + kD
    outH = (H - 1) * s - 2 * p + kH
    outW = (W - 1) * s - 2 * p + kW

    # ConvTranspose3d == regular conv over the lhs-dilated input with the
    # spatially flipped kernel and padding (k - 1 - p) per dim.
    pad_d, pad_h, pad_w = kD - 1 - p, kH - 1 - p, kW - 1 - p
    # TODO(synk): padding > kernel_size - 1 and output_padding != 0 not handled.
    assert min(pad_d, pad_h, pad_w) >= 0

    k3 = kD * kH * kW
    K = C_in * k3
    M_sp = outD * outH * outW

    # --- im2col in ONE fused bf16 conv (explicit, known channel ordering) ---
    # Grouped conv with a one-hot kernel: patches[n, c*k3 + j, od, oh, ow]
    #   = x_dilated_padded[n, c, od + kd_j, oh + kh_j, ow + kw_j]
    onehot = jnp.eye(k3, dtype=jnp.bfloat16).reshape(k3, 1, kD, kH, kW)
    onehot = jnp.tile(onehot, (C_in, 1, 1, 1, 1))       # (C_in*k3, 1, kD,kH,kW)
    patches = lax.conv_general_dilated(
        x.astype(jnp.bfloat16), onehot,
        window_strides=(1, 1, 1),
        padding=[(pad_d, pad_d), (pad_h, pad_h), (pad_w, pad_w)],
        lhs_dilation=(s, s, s),
        dimension_numbers=("NCDHW", "OIDHW", "NCDHW"),
        feature_group_count=C_in)                       # (N, K, oD, oH, oW) bf16
    A = patches.reshape(N, K, M_sp)                     # contiguous, free

    # Flipped weight, rows = C_out, columns match A's K ordering (c-major).
    Bt = (jnp.flip(w, axis=(2, 3, 4))
          .transpose(1, 0, 2, 3, 4)
          .reshape(C_out, K)
          .astype(jnp.bfloat16))                        # (C_out, K)
    bias = b.astype(jnp.float32).reshape(C_out, 1)

    # M tile: multiple of 128 lanes; cap so the double-buffered A tile stays
    # comfortably inside the default scoped VMEM on every generation (v7x has
    # only 64 MiB physical VMEM, 32 MiB default scoped).
    max_tm_vmem = max(128, (4 * 1024 * 1024 // (K * 2)) // 128 * 128)
    tm_eff = max(128, min(tm, max_tm_vmem, _round_up(M_sp, 128)))

    grid = (N, pl.cdiv(M_sp, tm_eff))   # boundary M block is masked by Pallas
    kernel = functools.partial(_fused_convt_gemm_kernel,
                               min_value=float(min_value),
                               inv_divisor=1.0 / float(divisor))

    out = pl.pallas_call(
        kernel,
        out_shape=jax.ShapeDtypeStruct((N, C_out, M_sp), jnp.float32),
        grid_spec=pltpu.PrefetchScalarGridSpec(
            num_scalar_prefetch=0,
            grid=grid,
            in_specs=[
                pl.BlockSpec((C_out, K), lambda n, m: (0, 0)),
                pl.BlockSpec((C_out, 1), lambda n, m: (0, 0)),
                pl.BlockSpec((None, K, tm_eff), lambda n, m: (n, 0, m)),
            ],
            out_specs=pl.BlockSpec((None, C_out, tm_eff),
                                   lambda n, m: (n, 0, m)),
        ),
        compiler_params=pltpu.CompilerParams(
            dimension_semantics=("parallel", "parallel")),
    )(Bt, bias, A)

    # (N, C_out, M_sp) -> NCDHW is a free reshape (no transpose pass).
    return out.reshape(N, C_out, outD, outH, outW)


def _reference(x, w, b, stride, padding, min_value, divisor):
    # Pure-JAX f32 reference: transposed conv via lhs-dilated conv w/ flipped kernel.
    kD, kH, kW = w.shape[2:]
    w_flip = jnp.flip(w, axis=(2, 3, 4)).transpose(1, 0, 2, 3, 4)  # OIDHW
    y = lax.conv_general_dilated(
        x, w_flip,
        window_strides=(1, 1, 1),
        padding=[(kD - 1 - padding,) * 2, (kH - 1 - padding,) * 2,
                 (kW - 1 - padding,) * 2],
        lhs_dilation=(stride, stride, stride),
        dimension_numbers=("NCDHW", "OIDHW", "NCDHW"))
    y = y + b.reshape(1, -1, 1, 1, 1)
    y = jnp.maximum(y, min_value)
    return y / divisor


if __name__ == "__main__":
    # Small shapes consistent with the module.
    N, C_in, C_out = 2, 4, 8
    D = H = W = 16
    kernel_size, stride, padding = 3, 2, 1
    min_value, divisor = -1.0, 2.0

    key = jax.random.PRNGKey(0)
    kx, kw, kb = jax.random.split(key, 3)
    x = jax.random.normal(kx, (N, C_in, D, H, W), jnp.float32)
    # ConvTranspose3d weight layout: (in_channels, out_channels, kD, kH, kW)
    w = jax.random.normal(
        kw, (C_in, C_out, kernel_size, kernel_size, kernel_size),
        jnp.float32) * 0.1
    b = jax.random.normal(kb, (C_out,), jnp.float32) * 0.1

    fwd = jax.jit(lambda x, w, b: conv_transpose3d_clamp_div(
        x, w, b, stride, padding, min_value, divisor))
    out = jax.block_until_ready(fwd(x, w, b))

    ref = _reference(x, w, b, stride, padding, min_value, divisor)
    # bf16 MXU operands (f32 accumulation) -> loosened tolerance.
    np.testing.assert_allclose(np.asarray(out), np.asarray(ref),
                               rtol=2e-2, atol=2e-2)
    print("KERNEL_OK")
</pallas_src>

<mosaic_0001>
module attributes {stable_mosaic.version = 11 : i64} {
  func.func @_fused_convt_gemm_kernel(%arg0: i32, %arg1: i32, %arg2: memref<8x108xbf16, #tpu.memory_space<vmem>>, %arg3: memref<8x1xf32, #tpu.memory_space<vmem>>, %arg4: memref<1x108x4096xbf16, #tpu.memory_space<vmem>>, %arg5: memref<1x8x4096xf32, #tpu.memory_space<vmem>>) attributes {dimension_semantics = [#tpu.dimension_semantics<parallel>, #tpu.dimension_semantics<parallel>], iteration_bounds = array<i64: 2, 8>, scalar_prefetch = 0 : i64, scratch_operands = 0 : i64, tpu.core_type = #tpu.core_type<tc>, window_params = [{pipeline_mode = #tpu.pipeline_mode<synchronous>, transform_indices = @transform_0, window_bounds = array<i64: 8, 108>}, {pipeline_mode = #tpu.pipeline_mode<synchronous>, transform_indices = @transform_1, window_bounds = array<i64: 8, 1>}, {transform_indices = @transform_2, window_bounds = array<i64: 1, 108, 4096>}, {transform_indices = @transform_3, window_bounds = array<i64: 1, 8, 4096>}]} {
    %c0 = arith.constant 0 : index
    %c0_0 = arith.constant 0 : index
    %0 = vector.load %arg2[%c0, %c0_0] : memref<8x108xbf16, #tpu.memory_space<vmem>>, vector<8x108xbf16>
    %c0_1 = arith.constant 0 : index
    %c0_2 = arith.constant 0 : index
    %c0_3 = arith.constant 0 : index
    %1 = vector.load %arg4[%c0_1, %c0_2, %c0_3] : memref<1x108x4096xbf16, #tpu.memory_space<vmem>>, vector<1x108x4096xbf16>
    %2 = vector.shape_cast %1 : vector<1x108x4096xbf16> to vector<108x4096xbf16>
    %cst = arith.constant dense<0.000000e+00> : vector<8x4096xf32>
    %3 = tpu.matmul %0, %2, %cst {dimension_numbers = #tpu.dot_dimension_numbers<[1], [0], [0], [1], [0, 0, 1, 1], [], []>} : vector<8x108xbf16>, vector<108x4096xbf16>, vector<8x4096xf32> -> vector<8x4096xf32>
    %c0_4 = arith.constant 0 : index
    %c0_5 = arith.constant 0 : index
    %4 = vector.load %arg3[%c0_4, %c0_5] : memref<8x1xf32, #tpu.memory_space<vmem>>, vector<8x1xf32>
    %5 = vector.broadcast %4 : vector<8x1xf32> to vector<8x4096xf32>
    %6 = arith.addf %3, %5 : vector<8x4096xf32>
    %cst_6 = arith.constant -1.000000e+00 : f32
    %7 = vector.broadcast %cst_6 : f32 to vector<8x4096xf32>
    %8 = arith.maximumf %6, %7 : vector<8x4096xf32>
    %cst_7 = arith.constant 5.000000e-01 : f32
    %9 = vector.broadcast %cst_7 : f32 to vector<8x4096xf32>
    %10 = arith.mulf %8, %9 : vector<8x4096xf32>
    %c0_8 = arith.constant 0 : index
    %c0_9 = arith.constant 0 : index
    %c0_10 = arith.constant 0 : index
    %11 = vector.load %arg5[%c0_8, %c0_9, %c0_10] : memref<1x8x4096xf32, #tpu.memory_space<vmem>>, vector<1x8x4096xf32>
    %12 = vector.shape_cast %11 : vector<1x8x4096xf32> to vector<8x4096xf32>
    %13 = vector.shape_cast %10 : vector<8x4096xf32> to vector<1x8x4096xf32>
    tpu.vector_store %arg5[%c0_8, %c0_9, %c0_10], %13 {strides = array<i32>} : memref<1x8x4096xf32, #tpu.memory_space<vmem>>, vector<1x8x4096xf32>,
    return
  }
  func.func @transform_0(%arg0: i32, %arg1: i32) -> (i32, i32) {
    %c0_i32 = arith.constant 0 : i32
    %c0_i32_0 = arith.constant 0 : i32
    %c0_i32_1 = arith.constant 0 : i32
    return %c0_i32, %c0_i32_0 : i32, i32
  }
  func.func @transform_1(%arg0: i32, %arg1: i32) -> (i32, i32) {
    %c0_i32 = arith.constant 0 : i32
    %c0_i32_0 = arith.constant 0 : i32
    %c0_i32_1 = arith.constant 0 : i32
    return %c0_i32, %c0_i32_0 : i32, i32
  }
  func.func @transform_2(%arg0: i32, %arg1: i32) -> (i32, i32, i32) {
    %c0_i32 = arith.constant 0 : i32
    %c0_i32_0 = arith.constant 0 : i32
    return %arg0, %c0_i32, %arg1 : i32, i32, i32
  }
  func.func @transform_3(%arg0: i32, %arg1: i32) -> (i32, i32, i32) {
    %c0_i32 = arith.constant 0 : i32
    %c0_i32_0 = arith.constant 0 : i32
    return %arg0, %c0_i32, %arg1 : i32, i32, i32
  }
}

</mosaic_0001>

<bundles_post_ra>
// kernel: _lambda_.1
= control target key start
LH: loop header
LB: loop body
LE: loop exit
PB: predicated region body
PF: predicated region fallthrough
CT: control target
= control target key end

     0   :  { %s6377_s0 = inlined_call_operand.vmem [shape: bf16[8,108], index: 0, kind: input, shape index: {}]   ;;  %s6378_s1 = inlined_call_operand.vmem [shape: f32[8,1], index: 1, kind: input, shape index: {}]   ;;  %s6379_s2 = inlined_call_operand.vmem [shape: bf16[2,108,29791], index: 2, kind: input, shape index: {}]   ;;  %s6380_s3 = inlined_call_operand.vmem [shape: f32[2,8,29791], index: 3, kind: output, shape index: {}]  }
   0x1   :  { %6383 = sst [smem:[#allocation6_spill]] %s6379_s2 }
   0x2   :  { %s4711_s12 = smov 0   ;;  %s4713_s13 = smov 0  }
   0x3   :  { %s4715_s14 = smov 0   ;;  %s4717_s15 = smov 0  }
   0x4   :  { %s4719_s16 = smov 0   ;;  %s4721_s17 = smov 0  }
   0x5   :  { %s4723_s18 = smov 0  }
   0x6 LB: > { %s22_s19 = sadd.s32 1, %s4548_s16  ;;  %s25_s20 = sadd.s32 1, %s4552_s17  ;;  %s4556_s18 = sphi %s4723_s18, %s13_s18   ;;  %s4552_s17 = sphi %s4721_s17, %s6421_s17   ;;  %s4548_s16 = sphi %s4719_s16, %s6420_s16   ;;  %s4544_s15 = sphi %s4717_s15, %s6419_s15   ;;  %s4540_s14 = sphi %s4715_s14, %s6418_s14   ;;  %s4536_s13 = sphi %s4713_s13, %s6417_s13   ;;  %s4532_s12 = sphi %s4711_s12, %s6416_s12  }
   0x7   : > { %p23_p0 = scmp.ge.s32.totalorder %s22_s19, 8  ;;  %s3727_s21 = sadd.s32 4294967295, %s4556_s18  }
   0x8   : > { %p83_p1 = scmp.ne.s32.totalorder %s4536_s13, %s4532_s12  ;;  %p84_p2 = scmp.eq.s32.totalorder %s4556_s18, 0 }
   0x9   : > { %s6423_s19 = smov (%p23_p0, %s22_s19), 0  ;;  %s6425_s20 = smov (!%p23_p0, %s25_s20), %s4552_s17 }
   0xa   : > { %6384 = sst [smem:[#allocation4_spill]] %s6423_s19  ;;  %p27_p3 = scmp.ge.s32.totalorder %s6425_s20, 2 }
   0xb   : > { %p115_p4 = scmp.eq.s32.totalorder %s3727_s21, 15  ;;  %s72_s22 = ssub.s32 %s4548_s16, %s6423_s19 }
   0xc   : > { %p85_p5 = por %p84_p2, %p83_p1  ;;  %s6427_s20 = smov (%p27_p3, %s6425_s20), 0 }
   0xd   : > { %6385 = sst [smem:[#allocation5_spill]] %s6427_s20  ;;  %p4759_p6 = por %p115_p4, %p83_p1 }
   0xe   : > { %s71_s24 = ssub.s32 %s4552_s17, %s6427_s20  ;;  %s76_s26 = sadd.s32 1, %s4536_s13 }
   0xf   : > { %s73_s25 = sor.u32 %s72_s22, %s71_s24  ;;  %p3730_p8 = scmp.ge.s32.totalorder %s4556_s18, 16 }
  0x10   : > { %p74_p7 = scmp.eq.s32.totalorder %s73_s25, 0 }
  0x11   : > { %143 = sbr.rel (%p3730_p8) target bundleno = 267 (0x10b), region = 24 }
  0x12   : > { %s4767_s27 = scalar_select %p74_p7, %s4536_s13, %s76_s26  }
  0x18   : > { %146 = sbr.rel (!%p85_p5) target bundleno = 267 (0x10b), region = 28  ;;  %s148_s28 = sand.u32 (%p85_p5), 1, %s4536_s13  }
  0x19   : > { %s3731_s29 = sshll.u32 (%p85_p5), %s4548_s16, 5  ;;  %s4051_s30 = smul.u32 (%p85_p5), 1792, %s148_s28 }
  0x1a   : > { %s152_s4 = ssub.s32 (%p85_p5), 233, %s3731_s29  ;;  %s4052_s5 = smul.u32 (%p85_p5), 3262, %s4552_s17 }
  0x1b   : > { %p153_p9 = scmp.lt.s32.totalorder (%p85_p5), %s152_s4, 32  ;;  %s6387_s2 = sld [smem:[#allocation6_spill]] (%p85_p5) }
  0x1c   : > { %s158_s6 = sadd.s32 (%p85_p5), %s4052_s5, %s3731_s29  ;;  %s4780_s22 = scalar_lea.vmem (%p85_p5), [#allocation2], %s4051_s30  }
  0x1d   : > { %s3733_s8 = sshll.u32 (%p85_p5), %s158_s6, 2 }
  0x1f   : > { %s6429_s4 = smov (!%p153_p9, %s152_s4), 32 }
  0x20   : > { %s155_s7 = smul.u32 896, %s6429_s4  ;;  %s4778_s21 = sshll.u32 %s6429_s4, 2 }
  0x21   : > { %s4776_s11 = scalar_lea.vmem %s6387_s2, %s3733_s8  }
  0x22   : > { %p3735_p10 = scmp.eq.s32.totalorder %s155_s7, 0 }
  0x23   : > { %p165_p11 = scmp.lt.u32.totalorder (!%p3735_p10), %s4778_s21, 8 }
  0x24   : > { %164 = sbr.rel (%p3735_p10) target bundleno = 267 (0x10b), region = 32 }
  0x2b   : > { %168 = sbr.rel (%p165_p11) target bundleno = 249 (0xf9), region = 36  ;;  %s4784_s24 = sand.u32 (!%p165_p11), 7, %s4778_s21  }
  0x2c   : > { %p210_p12 = scmp.eq.s32.totalorder (!%p165_p11), %s4784_s24, 0  ;;  %p3736_p13 = scmp.ne.s32.totalorder (!%p165_p11), %s4784_s24, 0 }
  0x32   : > { %213 = sbr.rel (%p3736_p13) target bundleno = 141 (0x8d), region = 51  ;;  %s214_s25 = sshrl.u32 (!%p3736_p13), %s4778_s21, 3 }
  0x33   : > { %s4791_s26 = sshrl.u32 (!%p3736_p13), %s214_s25, 3 }
  0x34   : > { %p3737_p0 = scmp.le.s32.totalorder (!%p3736_p13), %s4791_s26, 0 }
  0x39   : > { %3588 = sbr.rel (%p3737_p0) target bundleno = 121 (0x79), region = 229  ;;  %s6388_s28 = smov (!%p3737_p0), %s4780_s22 }
  0x3a   : > { %s6389_s29 = smov (!%p3737_p0), %s4776_s11  ;;  %s4800_s30 = smov (!%p3737_p0), 0  }
  0x3b   : > { %s4802_s4 = smov (!%p3737_p0), 0  }
  0x40 LB: >> { %v227_v0 = vld [vmem:[%s4564_s29] sm:$0xff]  ;;  %v229_v1 = vld [vmem:[%s4564_s29 + $0x8] sm:$0xff]  ;;  %v231_v2 = vld [vmem:[%s4564_s29 + $0x10] sm:$0xff]  ;;  %s451_s5 = sadd.s32 1, %s4568_s30  ;;  %s221_s4 = sadd.s32 1, %s4572_s4   ;;  %s4572_s4 = sphi %s4802_s4, %s221_s4   ;;  %s4568_s30 = sphi %s4800_s30, %s6392_s30   ;;  %s4564_s29 = sphi %s6389_s29, %s6391_s29   ;;  %s4560_s28 = sphi %s6388_s28, %s6390_s28  }
  0x41   : >> { %228 = vst [vmem:[%s4560_s28] sm:$0xff] %v227_v0  ;;  %230 = vst [vmem:[%s4560_s28 + $0x8] sm:$0xff] %v229_v1  ;;  %v233_v3 = vld [vmem:[%s4564_s29 + $0x18] sm:$0xff]  ;;  %v235_v4 = vld [vmem:[%s4564_s29 + $0x20] sm:$0xff]  ;;  %p452_p1 = scmp.ge.s32.totalorder %s451_s5, %s4791_s26  ;;  %p220_p2 = scmp.ge.s32.totalorder %s221_s4, %s4791_s26 }
  0x42   : >> { %232 = vst [vmem:[%s4560_s28 + $0x10] sm:$0xff] %v231_v2  ;;  %v237_v5 = vld [vmem:[%s4564_s29 + $0x28] sm:$0xff]  ;;  %234 = vst [vmem:[%s4560_s28 + $0x18] sm:$0xff] %v233_v3  ;;  %v239_v6 = vld [vmem:[%s4564_s29 + $0x30] sm:$0xff] }
  0x43   : >> { %236 = vst [vmem:[%s4560_s28 + $0x20] sm:$0xff] %v235_v4  ;;  %238 = vst [vmem:[%s4560_s28 + $0x28] sm:$0xff] %v237_v5  ;;  %v241_v7 = vld [vmem:[%s4564_s29 + $0x38] sm:$0xff]  ;;  %v243_v8 = vld [vmem:[%s4564_s29 + $0x3a4] sm:$0xff]  ;;  %s6431_s5 = smov (%p452_p1, %s451_s5), 0 }
  0x44   : >> { %240 = vst [vmem:[%s4560_s28 + $0x30] sm:$0xff] %v239_v6  ;;  %242 = vst [vmem:[%s4560_s28 + $0x38] sm:$0xff] %v241_v7  ;;  %v245_v9 = vld [vmem:[%s4564_s29 + $0x3ac] sm:$0xff]  ;;  %v247_v10 = vld [vmem:[%s4564_s29 + $0x3b4] sm:$0xff]  ;;  %s3738_s6 = sshll.u32 %s6431_s5, 6  ;;  %s6392_s30 = smov %s6431_s5 }
  0x45   : >> { %244 = vst [vmem:[%s4560_s28 + $0x80] sm:$0xff] %v243_v8  ;;  %v249_v11 = vld [vmem:[%s4564_s29 + $0x3bc] sm:$0xff]  ;;  %246 = vst [vmem:[%s4560_s28 + $0x88] sm:$0xff] %v245_v9  ;;  %v251_v12 = vld [vmem:[%s4564_s29 + $0x3c4] sm:$0xff]  ;;  %s4858_s7 = scalar_lea.vmem %s4776_s11, %s3738_s6   ;;  %s4861_s8 = scalar_lea.vmem %s4780_s22, %s3738_s6 [#allocation2]  }
  0x46   : >> { %248 = vst [vmem:[%s4560_s28 + $0x90] sm:$0xff] %v247_v10  ;;  %250 = vst [vmem:[%s4560_s28 + $0x98] sm:$0xff] %v249_v11  ;;  %v253_v13 = vld [vmem:[%s4564_s29 + $0x3cc] sm:$0xff]  ;;  %v255_v14 = vld [vmem:[%s4564_s29 + $0x3d4] sm:$0xff] }
  0x47   : >> { %252 = vst [vmem:[%s4560_s28 + $0xa0] sm:$0xff] %v251_v12  ;;  %254 = vst [vmem:[%s4560_s28 + $0xa8] sm:$0xff] %v253_v13  ;;  %v257_v15 = vld [vmem:[%s4564_s29 + $0x3dc] sm:$0xff]  ;;  %v259_v16 = vld [vmem:[%s4564_s29 + $0x748] sm:$0xff] }
  0x48   : >> { %256 = vst [vmem:[%s4560_s28 + $0xb0] sm:$0xff] %v255_v14  ;;  %v261_v17 = vld [vmem:[%s4564_s29 + $0x750] sm:$0xff]  ;;  %258 = vst [vmem:[%s4560_s28 + $0xb8] sm:$0xff] %v257_v15  ;;  %v263_v18 = vld [vmem:[%s4564_s29 + $0x758] sm:$0xff] }
  0x49   : >> { %260 = vst [vmem:[%s4560_s28 + $0x100] sm:$0xff] %v259_v16  ;;  %262 = vst [vmem:[%s4560_s28 + $0x108] sm:$0xff] %v261_v17  ;;  %v265_v19 = vld [vmem:[%s4564_s29 + $0x760] sm:$0xff]  ;;  %v267_v20 = vld [vmem:[%s4564_s29 + $0x768] sm:$0xff] }
  0x4a   : >> { %264 = vst [vmem:[%s4560_s28 + $0x110] sm:$0xff] %v263_v18  ;;  %266 = vst [vmem:[%s4560_s28 + $0x118] sm:$0xff] %v265_v19  ;;  %v269_v21 = vld [vmem:[%s4564_s29 + $0x770] sm:$0xff]  ;;  %v271_v22 = vld [vmem:[%s4564_s29 + $0x778] sm:$0xff] }
  0x4b   : >> { %268 = vst [vmem:[%s4560_s28 + $0x120] sm:$0xff] %v267_v20  ;;  %v273_v23 = vld [vmem:[%s4564_s29 + $0x780] sm:$0xff]  ;;  %270 = vst [vmem:[%s4560_s28 + $0x128] sm:$0xff] %v269_v21  ;;  %v275_v24 = vld [vmem:[%s4564_s29 + $0xaec] sm:$0xff] }
  0x4c   : >> { %272 = vst [vmem:[%s4560_s28 + $0x130] sm:$0xff] %v271_v22  ;;  %274 = vst [vmem:[%s4560_s28 + $0x138] sm:$0xff] %v273_v23  ;;  %v277_v25 = vld [vmem:[%s4564_s29 + $0xaf4] sm:$0xff]  ;;  %v279_v26 = vld [vmem:[%s4564_s29 + $0xafc] sm:$0xff] }
  0x4d   : >> { %276 = vst [vmem:[%s4560_s28 + $0x180] sm:$0xff] %v275_v24  ;;  %278 = vst [vmem:[%s4560_s28 + $0x188] sm:$0xff] %v277_v25  ;;  %v281_v27 = vld [vmem:[%s4564_s29 + $0xb04] sm:$0xff]  ;;  %v283_v28 = vld [vmem:[%s4564_s29 + $0xb0c] sm:$0xff] }
  0x4e   : >> { %280 = vst [vmem:[%s4560_s28 + $0x190] sm:$0xff] %v279_v26  ;;  %v285_v29 = vld [vmem:[%s4564_s29 + $0xb14] sm:$0xff]  ;;  %282 = vst [vmem:[%s4560_s28 + $0x198] sm:$0xff] %v281_v27  ;;  %v287_v30 = vld [vmem:[%s4564_s29 + $0xb1c] sm:$0xff] }
  0x4f   : >> { %284 = vst [vmem:[%s4560_s28 + $0x1a0] sm:$0xff] %v283_v28  ;;  %286 = vst [vmem:[%s4560_s28 + $0x1a8] sm:$0xff] %v285_v29  ;;  %v289_v31 = vld [vmem:[%s4564_s29 + $0xb24] sm:$0xff]  ;;  %v291_v32 = vld [vmem:[%s4564_s29 + $0xe90] sm:$0xff] }
  0x50   : >> { %288 = vst [vmem:[%s4560_s28 + $0x1b0] sm:$0xff] %v287_v30  ;;  %290 = vst [vmem:[%s4560_s28 + $0x1b8] sm:$0xff] %v289_v31  ;;  %v293_v33 = vld [vmem:[%s4564_s29 + $0xe98] sm:$0xff]  ;;  %v295_v34 = vld [vmem:[%s4564_s29 + $0xea0] sm:$0xff] }
  0x51   : >> { %292 = vst [vmem:[%s4560_s28 + $0x200] sm:$0xff] %v291_v32  ;;  %v297_v35 = vld [vmem:[%s4564_s29 + $0xea8] sm:$0xff]  ;;  %294 = vst [vmem:[%s4560_s28 + $0x208] sm:$0xff] %v293_v33  ;;  %v299_v36 = vld [vmem:[%s4564_s29 + $0xeb0] sm:$0xff] }
  0x52   : >> { %296 = vst [vmem:[%s4560_s28 + $0x210] sm:$0xff] %v295_v34  ;;  %298 = vst [vmem:[%s4560_s28 + $0x218] sm:$0xff] %v297_v35  ;;  %v301_v37 = vld [vmem:[%s4564_s29 + $0xeb8] sm:$0xff]  ;;  %v303_v38 = vld [vmem:[%s4564_s29 + $0xec0] sm:$0xff] }
  0x53   : >> { %300 = vst [vmem:[%s4560_s28 + $0x220] sm:$0xff] %v299_v36  ;;  %302 = vst [vmem:[%s4560_s28 + $0x228] sm:$0xff] %v301_v37  ;;  %v305_v39 = vld [vmem:[%s4564_s29 + $0xec8] sm:$0xff]  ;;  %v307_v40 = vld [vmem:[%s4564_s29 + $0x1234] sm:$0xff] }
  0x54   : >> { %304 = vst [vmem:[%s4560_s28 + $0x230] sm:$0xff] %v303_v38  ;;  %v309_v41 = vld [vmem:[%s4564_s29 + $0x123c] sm:$0xff]  ;;  %306 = vst [vmem:[%s4560_s28 + $0x238] sm:$0xff] %v305_v39  ;;  %v311_v42 = vld [vmem:[%s4564_s29 + $0x1244] sm:$0xff] }
  0x55   : >> { %308 = vst [vmem:[%s4560_s28 + $0x280] sm:$0xff] %v307_v40  ;;  %310 = vst [vmem:[%s4560_s28 + $0x288] sm:$0xff] %v309_v41  ;;  %v313_v43 = vld [vmem:[%s4564_s29 + $0x124c] sm:$0xff]  ;;  %v315_v44 = vld [vmem:[%s4564_s29 + $0x1254] sm:$0xff] }
  0x56   : >> { %312 = vst [vmem:[%s4560_s28 + $0x290] sm:$0xff] %v311_v42  ;;  %314 = vst [vmem:[%s4560_s28 + $0x298] sm:$0xff] %v313_v43  ;;  %v317_v45 = vld [vmem:[%s4564_s29 + $0x125c] sm:$0xff]  ;;  %v319_v46 = vld [vmem:[%s4564_s29 + $0x1264] sm:$0xff] }
  0x57   : >> { %316 = vst [vmem:[%s4560_s28 + $0x2a0] sm:$0xff] %v315_v44  ;;  %v321_v47 = vld [vmem:[%s4564_s29 + $0x126c] sm:$0xff]  ;;  %318 = vst [vmem:[%s4560_s28 + $0x2a8] sm:$0xff] %v317_v45  ;;  %v323_v48 = vld [vmem:[%s4564_s29 + $0x15d8] sm:$0xff] }
  0x58   : >> { %320 = vst [vmem:[%s4560_s28 + $0x2b0] sm:$0xff] %v319_v46  ;;  %322 = vst [vmem:[%s4560_s28 + $0x2b8] sm:$0xff] %v321_v47  ;;  %v325_v49 = vld [vmem:[%s4564_s29 + $0x15e0] sm:$0xff]  ;;  %v327_v50 = vld [vmem:[%s4564_s29 + $0x15e8] sm:$0xff] }
  0x59   : >> { %324 = vst [vmem:[%s4560_s28 + $0x300] sm:$0xff] %v323_v48  ;;  %326 = vst [vmem:[%s4560_s28 + $0x308] sm:$0xff] %v325_v49  ;;  %v329_v51 = vld [vmem:[%s4564_s29 + $0x15f0] sm:$0xff]  ;;  %v331_v52 = vld [vmem:[%s4564_s29 + $0x15f8] sm:$0xff] }
  0x5a   : >> { %328 = vst [vmem:[%s4560_s28 + $0x310] sm:$0xff] %v327_v50  ;;  %v333_v53 = vld [vmem:[%s4564_s29 + $0x1600] sm:$0xff]  ;;  %330 = vst [vmem:[%s4560_s28 + $0x318] sm:$0xff] %v329_v51  ;;  %v335_v54 = vld [vmem:[%s4564_s29 + $0x1608] sm:$0xff] }
  0x5b   : >> { %332 = vst [vmem:[%s4560_s28 + $0x320] sm:$0xff] %v331_v52  ;;  %334 = vst [vmem:[%s4560_s28 + $0x328] sm:$0xff] %v333_v53  ;;  %v337_v55 = vld [vmem:[%s4564_s29 + $0x1610] sm:$0xff]  ;;  %v339_v56 = vld [vmem:[%s4564_s29 + $0x197c] sm:$0xff] }
  0x5c   : >> { %336 = vst [vmem:[%s4560_s28 + $0x330] sm:$0xff] %v335_v54  ;;  %338 = vst [vmem:[%s4560_s28 + $0x338] sm:$0xff] %v337_v55  ;;  %v341_v57 = vld [vmem:[%s4564_s29 + $0x1984] sm:$0xff]  ;;  %v343_v58 = vld [vmem:[%s4564_s29 + $0x198c] sm:$0xff] }
  0x5d   : >> { %340 = vst [vmem:[%s4560_s28 + $0x380] sm:$0xff] %v339_v56  ;;  %v345_v59 = vld [vmem:[%s4564_s29 + $0x1994] sm:$0xff]  ;;  %342 = vst [vmem:[%s4560_s28 + $0x388] sm:$0xff] %v341_v57  ;;  %v347_v60 = vld [vmem:[%s4564_s29 + $0x199c] sm:$0xff] }
  0x5e   : >> { %344 = vst [vmem:[%s4560_s28 + $0x390] sm:$0xff] %v343_v58  ;;  %346 = vst [vmem:[%s4560_s28 + $0x398] sm:$0xff] %v345_v59  ;;  %v349_v61 = vld [vmem:[%s4564_s29 + $0x19a4] sm:$0xff]  ;;  %v351_v62 = vld [vmem:[%s4564_s29 + $0x19ac] sm:$0xff] }
  0x5f   : >> { %348 = vst [vmem:[%s4560_s28 + $0x3a0] sm:$0xff] %v347_v60  ;;  %350 = vst [vmem:[%s4560_s28 + $0x3a8] sm:$0xff] %v349_v61  ;;  %v353_v63 = vld [vmem:[%s4564_s29 + $0x19b4] sm:$0xff]  ;;  %v355_v0 = vld [vmem:[%s4564_s29 + $0x1d20] sm:$0xff] }
  0x60   : >> { %352 = vst [vmem:[%s4560_s28 + $0x3b0] sm:$0xff] %v351_v62  ;;  %v357_v1 = vld [vmem:[%s4564_s29 + $0x1d28] sm:$0xff]  ;;  %354 = vst [vmem:[%s4560_s28 + $0x3b8] sm:$0xff] %v353_v63  ;;  %v359_v2 = vld [vmem:[%s4564_s29 + $0x1d30] sm:$0xff] }
  0x61   : >> { %356 = vst [vmem:[%s4560_s28 + $0x400] sm:$0xff] %v355_v0  ;;  %358 = vst [vmem:[%s4560_s28 + $0x408] sm:$0xff] %v357_v1  ;;  %v361_v3 = vld [vmem:[%s4564_s29 + $0x1d38] sm:$0xff]  ;;  %v363_v4 = vld [vmem:[%s4564_s29 + $0x1d40] sm:$0xff] }
  0x62   : >> { %360 = vst [vmem:[%s4560_s28 + $0x410] sm:$0xff] %v359_v2  ;;  %362 = vst [vmem:[%s4560_s28 + $0x418] sm:$0xff] %v361_v3  ;;  %v365_v5 = vld [vmem:[%s4564_s29 + $0x1d48] sm:$0xff]  ;;  %v367_v6 = vld [vmem:[%s4564_s29 + $0x1d50] sm:$0xff] }
  0x63   : >> { %364 = vst [vmem:[%s4560_s28 + $0x420] sm:$0xff] %v363_v4  ;;  %v369_v7 = vld [vmem:[%s4564_s29 + $0x1d58] sm:$0xff]  ;;  %366 = vst [vmem:[%s4560_s28 + $0x428] sm:$0xff] %v365_v5  ;;  %v371_v8 = vld [vmem:[%s4564_s29 + $0x20c4] sm:$0xff] }
  0x64   : >> { %368 = vst [vmem:[%s4560_s28 + $0x430] sm:$0xff] %v367_v6  ;;  %370 = vst [vmem:[%s4560_s28 + $0x438] sm:$0xff] %v369_v7  ;;  %v373_v9 = vld [vmem:[%s4564_s29 + $0x20cc] sm:$0xff]  ;;  %v375_v10 = vld [vmem:[%s4564_s29 + $0x20d4] sm:$0xff] }
  0x65   : >> { %372 = vst [vmem:[%s4560_s28 + $0x480] sm:$0xff] %v371_v8  ;;  %374 = vst [vmem:[%s4560_s28 + $0x488] sm:$0xff] %v373_v9  ;;  %v377_v11 = vld [vmem:[%s4564_s29 + $0x20dc] sm:$0xff]  ;;  %v379_v12 = vld [vmem:[%s4564_s29 + $0x20e4] sm:$0xff] }
  0x66   : >> { %376 = vst [vmem:[%s4560_s28 + $0x490] sm:$0xff] %v375_v10  ;;  %v381_v13 = vld [vmem:[%s4564_s29 + $0x20ec] sm:$0xff]  ;;  %378 = vst [vmem:[%s4560_s28 + $0x498] sm:$0xff] %v377_v11  ;;  %v383_v14 = vld [vmem:[%s4564_s29 + $0x20f4] sm:$0xff] }
  0x67   : >> { %380 = vst [vmem:[%s4560_s28 + $0x4a0] sm:$0xff] %v379_v12  ;;  %382 = vst [vmem:[%s4560_s28 + $0x4a8] sm:$0xff] %v381_v13  ;;  %v385_v15 = vld [vmem:[%s4564_s29 + $0x20fc] sm:$0xff]  ;;  %v387_v16 = vld [vmem:[%s4564_s29 + $0x2468] sm:$0xff] }
  0x68   : >> { %384 = vst [vmem:[%s4560_s28 + $0x4b0] sm:$0xff] %v383_v14  ;;  %386 = vst [vmem:[%s4560_s28 + $0x4b8] sm:$0xff] %v385_v15  ;;  %v389_v17 = vld [vmem:[%s4564_s29 + $0x2470] sm:$0xff]  ;;  %v391_v18 = vld [vmem:[%s4564_s29 + $0x2478] sm:$0xff] }
  0x69   : >> { %388 = vst [vmem:[%s4560_s28 + $0x500] sm:$0xff] %v387_v16  ;;  %v393_v19 = vld [vmem:[%s4564_s29 + $0x2480] sm:$0xff]  ;;  %390 = vst [vmem:[%s4560_s28 + $0x508] sm:$0xff] %v389_v17  ;;  %v395_v20 = vld [vmem:[%s4564_s29 + $0x2488] sm:$0xff] }
  0x6a   : >> { %392 = vst [vmem:[%s4560_s28 + $0x510] sm:$0xff] %v391_v18  ;;  %394 = vst [vmem:[%s4560_s28 + $0x518] sm:$0xff] %v393_v19  ;;  %v397_v21 = vld [vmem:[%s4564_s29 + $0x2490] sm:$0xff]  ;;  %v399_v22 = vld [vmem:[%s4564_s29 + $0x2498] sm:$0xff] }
  0x6b   : >> { %396 = vst [vmem:[%s4560_s28 + $0x520] sm:$0xff] %v395_v20  ;;  %398 = vst [vmem:[%s4560_s28 + $0x528] sm:$0xff] %v397_v21  ;;  %v401_v23 = vld [vmem:[%s4564_s29 + $0x24a0] sm:$0xff]  ;;  %v403_v24 = vld [vmem:[%s4564_s29 + $0x280c] sm:$0xff] }
  0x6c   : >> { %400 = vst [vmem:[%s4560_s28 + $0x530] sm:$0xff] %v399_v22  ;;  %v405_v25 = vld [vmem:[%s4564_s29 + $0x2814] sm:$0xff]  ;;  %402 = vst [vmem:[%s4560_s28 + $0x538] sm:$0xff] %v401_v23  ;;  %v407_v26 = vld [vmem:[%s4564_s29 + $0x281c] sm:$0xff] }
  0x6d   : >> { %404 = vst [vmem:[%s4560_s28 + $0x580] sm:$0xff] %v403_v24  ;;  %406 = vst [vmem:[%s4560_s28 + $0x588] sm:$0xff] %v405_v25  ;;  %v409_v27 = vld [vmem:[%s4564_s29 + $0x2824] sm:$0xff]  ;;  %v411_v28 = vld [vmem:[%s4564_s29 + $0x282c] sm:$0xff] }
  0x6e   : >> { %408 = vst [vmem:[%s4560_s28 + $0x590] sm:$0xff] %v407_v26  ;;  %410 = vst [vmem:[%s4560_s28 + $0x598] sm:$0xff] %v409_v27  ;;  %v413_v29 = vld [vmem:[%s4564_s29 + $0x2834] sm:$0xff]  ;;  %v415_v30 = vld [vmem:[%s4564_s29 + $0x283c] sm:$0xff] }
  0x6f   : >> { %412 = vst [vmem:[%s4560_s28 + $0x5a0] sm:$0xff] %v411_v28  ;;  %v417_v31 = vld [vmem:[%s4564_s29 + $0x2844] sm:$0xff]  ;;  %414 = vst [vmem:[%s4560_s28 + $0x5a8] sm:$0xff] %v413_v29  ;;  %v419_v32 = vld [vmem:[%s4564_s29 + $0x2bb0] sm:$0xff] }
  0x70   : >> { %416 = vst [vmem:[%s4560_s28 + $0x5b0] sm:$0xff] %v415_v30  ;;  %418 = vst [vmem:[%s4560_s28 + $0x5b8] sm:$0xff] %v417_v31  ;;  %v421_v33 = vld [vmem:[%s4564_s29 + $0x2bb8] sm:$0xff]  ;;  %v423_v34 = vld [vmem:[%s4564_s29 + $0x2bc0] sm:$0xff] }
  0x71   : >> { %420 = vst [vmem:[%s4560_s28 + $0x600] sm:$0xff] %v419_v32  ;;  %422 = vst [vmem:[%s4560_s28 + $0x608] sm:$0xff] %v421_v33  ;;  %v425_v35 = vld [vmem:[%s4564_s29 + $0x2bc8] sm:$0xff]  ;;  %v427_v36 = vld [vmem:[%s4564_s29 + $0x2bd0] sm:$0xff] }
  0x72   : >> { %424 = vst [vmem:[%s4560_s28 + $0x610] sm:$0xff] %v423_v34  ;;  %v429_v37 = vld [vmem:[%s4564_s29 + $0x2bd8] sm:$0xff]  ;;  %426 = vst [vmem:[%s4560_s28 + $0x618] sm:$0xff] %v425_v35  ;;  %v431_v38 = vld [vmem:[%s4564_s29 + $0x2be0] sm:$0xff]  ;;  %223 = sbr.rel (!%p220_p2) target bundleno = 64 (0x40), region = 235 }
  0x73   : >> { %428 = vst [vmem:[%s4560_s28 + $0x620] sm:$0xff] %v427_v36  ;;  %430 = vst [vmem:[%s4560_s28 + $0x628] sm:$0xff] %v429_v37  ;;  %v433_v39 = vld [vmem:[%s4564_s29 + $0x2be8] sm:$0xff]  ;;  %v435_v40 = vld [vmem:[%s4564_s29 + $0x2f54] sm:$0xff] }
  0x74   : >> { %432 = vst [vmem:[%s4560_s28 + $0x630] sm:$0xff] %v431_v38  ;;  %434 = vst [vmem:[%s4560_s28 + $0x638] sm:$0xff] %v433_v39  ;;  %v437_v41 = vld [vmem:[%s4564_s29 + $0x2f5c] sm:$0xff]  ;;  %v439_v42 = vld [vmem:[%s4564_s29 + $0x2f64] sm:$0xff] }
  0x75   : >> { %436 = vst [vmem:[%s4560_s28 + $0x680] sm:$0xff] %v435_v40  ;;  %v441_v43 = vld [vmem:[%s4564_s29 + $0x2f6c] sm:$0xff]  ;;  %438 = vst [vmem:[%s4560_s28 + $0x688] sm:$0xff] %v437_v41  ;;  %v443_v44 = vld [vmem:[%s4564_s29 + $0x2f74] sm:$0xff] }
  0x76   : >> { %440 = vst [vmem:[%s4560_s28 + $0x690] sm:$0xff] %v439_v42  ;;  %442 = vst [vmem:[%s4560_s28 + $0x698] sm:$0xff] %v441_v43  ;;  %v445_v45 = vld [vmem:[%s4564_s29 + $0x2f7c] sm:$0xff]  ;;  %v447_v46 = vld [vmem:[%s4564_s29 + $0x2f84] sm:$0xff] }
  0x77   : >> { %444 = vst [vmem:[%s4560_s28 + $0x6a0] sm:$0xff] %v443_v44  ;;  %446 = vst [vmem:[%s4560_s28 + $0x6a8] sm:$0xff] %v445_v45  ;;  %v449_v47 = vld [vmem:[%s4564_s29 + $0x2f8c] sm:$0xff]  ;;  %s6391_s29 = smov %s4858_s7 }
  0x78   : >> { %448 = vst [vmem:[%s4560_s28 + $0x6b0] sm:$0xff] %v447_v46  ;;  %450 = vst [vmem:[%s4560_s28 + $0x6b8] sm:$0xff] %v449_v47  ;;  %s6390_s28 = smov %s4861_s8 }
  0x79 PF: > { %s5063_s9 = sand.u32 7, %s214_s25   ;;  %s4043_s10 = sshll.u32 %s4791_s26, 10 }
  0x7a   : > { %s462_s6 = sshra.s32 %s4043_s10, 4  ;;  %p3743_p3 = scmp.le.s32.totalorder %s5063_s9, 0 }
  0x7b   : > { %s5067_s2 = scalar_lea.vmem %s4776_s11, %s462_s6   ;;  %s5070_s8 = scalar_lea.vmem %s4780_s22, %s462_s6 [#allocation2]  }
  0x7c   : > { %3602 = sbr.rel (%p3743_p3) target bundleno = 141 (0x8d), region = 240  ;;  %s6393_s28 = smov (!%p3743_p3), %s5070_s8 }
  0x7d   : > { %s6394_s29 = smov (!%p3743_p3), %s5067_s2  ;;  %s5079_s30 = smov (!%p3743_p3), 0  }
  0x7e   : > { %s5081_s4 = smov (!%p3743_p3), 0  }
  0x83 LB: >> { %v478_v48 = vld [vmem:[%s4580_s29] sm:$0xff]  ;;  %v482_v50 = vld [vmem:[%s4580_s29 + $0x748] sm:$0xff]  ;;  %s506_s25 = sadd.s32 1, %s4584_s30  ;;  %v486_v52 = vld [vmem:[%s4580_s29 + $0xe90] sm:$0xff]  ;;  %s472_s4 = sadd.s32 1, %s4588_s4   ;;  %s4588_s4 = sphi %s5081_s4, %s472_s4   ;;  %s4584_s30 = sphi %s5079_s30, %s6395_s30   ;;  %s4580_s29 = sphi %s6394_s29, %s511_s29   ;;  %s4576_s28 = sphi %s6393_s28, %s512_s28  }
  0x84   : >> { %v480_v49 = vld [vmem:[%s4580_s29 + $0x3a4] sm:$0xff]  ;;  %479 = vst [vmem:[%s4576_s28] sm:$0xff] %v478_v48  ;;  %483 = vst [vmem:[%s4576_s28 + $0x100] sm:$0xff] %v482_v50  ;;  %v484_v51 = vld [vmem:[%s4580_s29 + $0xaec] sm:$0xff]  ;;  %p507_p4 = scmp.ge.s32.totalorder %s506_s25, %s5063_s9  ;;  %p471_p5 = scmp.ge.s32.totalorder %s472_s4, %s5063_s9 }
  0x85   : >> { %481 = vst [vmem:[%s4576_s28 + $0x80] sm:$0xff] %v480_v49  ;;  %v488_v53 = vld [vmem:[%s4580_s29 + $0x1234] sm:$0xff]  ;;  %485 = vst [vmem:[%s4576_s28 + $0x180] sm:$0xff] %v484_v51  ;;  %v492_v55 = vld [vmem:[%s4580_s29 + $0x197c] sm:$0xff] }
  0x86   : >> { %487 = vst [vmem:[%s4576_s28 + $0x200] sm:$0xff] %v486_v52  ;;  %489 = vst [vmem:[%s4576_s28 + $0x280] sm:$0xff] %v488_v53  ;;  %v490_v54 = vld [vmem:[%s4580_s29 + $0x15d8] sm:$0xff]  ;;  %v494_v56 = vld [vmem:[%s4580_s29 + $0x1d20] sm:$0xff]  ;;  %s6433_s25 = smov (%p507_p4, %s506_s25), 0  ;;  %474 = sbr.rel (!%p471_p5) target bundleno = 131 (0x83), region = 246 }
  0x87   : >> { %491 = vst [vmem:[%s4576_s28 + $0x300] sm:$0xff] %v490_v54  ;;  %493 = vst [vmem:[%s4576_s28 + $0x380] sm:$0xff] %v492_v55  ;;  %v496_v57 = vld [vmem:[%s4580_s29 + $0x20c4] sm:$0xff]  ;;  %v500_v59 = vld [vmem:[%s4580_s29 + $0x280c] sm:$0xff]  ;;  %s3744_s26 = sshll.u32 %s6433_s25, 3  ;;  %s6395_s30 = smov %s6433_s25 }
  0x88   : >> { %495 = vst [vmem:[%s4576_s28 + $0x400] sm:$0xff] %v494_v56  ;;  %v498_v58 = vld [vmem:[%s4580_s29 + $0x2468] sm:$0xff]  ;;  %497 = vst [vmem:[%s4576_s28 + $0x480] sm:$0xff] %v496_v57  ;;  %v502_v60 = vld [vmem:[%s4580_s29 + $0x2bb0] sm:$0xff] }
  0x89   : >> { %499 = vst [vmem:[%s4576_s28 + $0x500] sm:$0xff] %v498_v58  ;;  %501 = vst [vmem:[%s4576_s28 + $0x580] sm:$0xff] %v500_v59  ;;  %v504_v61 = vld [vmem:[%s4580_s29 + $0x2f54] sm:$0xff]  ;;  %s511_s29 = scalar_lea.vmem %s5067_s2, %s3744_s26  }
  0x8a   : >> { %503 = vst [vmem:[%s4576_s28 + $0x600] sm:$0xff] %v502_v60  ;;  %505 = vst [vmem:[%s4576_s28 + $0x680] sm:$0xff] %v504_v61  ;;  %s512_s28 = scalar_lea.vmem %s5070_s8, %s3744_s26 [#allocation2]  }
  0x8d PF: > { %515 = sbr.rel (%p210_p12) target bundleno = 249 (0xf9), region = 69  ;;  %s517_s5 = ssub.s32 (!%p210_p12), %s4778_s21, %s4784_s24 }
  0x8e   : > { %s521_s7 = sshrl.u32 (!%p210_p12), %s4778_s21, 3  ;;  %s5140_s10 = scalar_lea.vmem (!%p210_p12), %s4776_s11, %s517_s5 }
  0x8f   : > { %s5143_s6 = scalar_lea.vmem (!%p210_p12), %s4780_s22, %s517_s5 [#allocation2]  ;;  %s5147_s4 = sshrl.u32 (!%p210_p12), %s521_s7, 3 }
  0x90   : > { %p3746_p7 = scmp.le.s32.totalorder (!%p210_p12), %s5147_s4, 0 }
  0x94   : > { %3616 = sbr.rel (%p3746_p7) target bundleno = 212 (0xd4), region = 251  ;;  %s6396_s2 = smov (!%p3746_p7), %s4780_s22 }
  0x95   : > { %s6397_s9 = smov (!%p3746_p7), %s4776_s11  ;;  %s5156_s8 = smov (!%p3746_p7), 0  }
  0x96   : > { %s5158_s28 = smov (!%p3746_p7), 0  }
  0x9b LB: >> { %v534_v62 = vld [vmem:[%s4596_s9] sm:$0xff]  ;;  %v536_v63 = vld [vmem:[%s4596_s9 + $0x8] sm:$0xff]  ;;  %v538_v0 = vld [vmem:[%s4596_s9 + $0x10] sm:$0xff]  ;;  %s758_s29 = sadd.s32 1, %s4600_s8  ;;  %s528_s28 = sadd.s32 1, %s4604_s28   ;;  %s4604_s28 = sphi %s5158_s28, %s528_s28   ;;  %s4600_s8 = sphi %s5156_s8, %s6400_s8   ;;  %s4596_s9 = sphi %s6397_s9, %s6399_s9   ;;  %s4592_s2 = sphi %s6396_s2, %s6398_s2  }
  0x9c   : >> { %535 = vst [vmem:[%s4592_s2] sm:$0xff] %v534_v62  ;;  %537 = vst [vmem:[%s4592_s2 + $0x8] sm:$0xff] %v536_v63  ;;  %v540_v1 = vld [vmem:[%s4596_s9 + $0x18] sm:$0xff]  ;;  %v542_v2 = vld [vmem:[%s4596_s9 + $0x20] sm:$0xff]  ;;  %p759_p8 = scmp.ge.s32.totalorder %s758_s29, %s5147_s4  ;;  %p527_p9 = scmp.ge.s32.totalorder %s528_s28, %s5147_s4 }
  0x9d   : >> { %539 = vst [vmem:[%s4592_s2 + $0x10] sm:$0xff] %v538_v0  ;;  %v544_v3 = vld [vmem:[%s4596_s9 + $0x28] sm:$0xff]  ;;  %541 = vst [vmem:[%s4592_s2 + $0x18] sm:$0xff] %v540_v1  ;;  %v546_v4 = vld [vmem:[%s4596_s9 + $0x30] sm:$0xff] }
  0x9e   : >> { %543 = vst [vmem:[%s4592_s2 + $0x20] sm:$0xff] %v542_v2  ;;  %545 = vst [vmem:[%s4592_s2 + $0x28] sm:$0xff] %v544_v3  ;;  %v548_v5 = vld [vmem:[%s4596_s9 + $0x38] sm:$0xff]  ;;  %v550_v6 = vld [vmem:[%s4596_s9 + $0x3a4] sm:$0xff]  ;;  %s6435_s29 = smov (%p759_p8, %s758_s29), 0 }
  0x9f   : >> { %547 = vst [vmem:[%s4592_s2 + $0x30] sm:$0xff] %v546_v4  ;;  %549 = vst [vmem:[%s4592_s2 + $0x38] sm:$0xff] %v548_v5  ;;  %v552_v7 = vld [vmem:[%s4596_s9 + $0x3ac] sm:$0xff]  ;;  %v554_v8 = vld [vmem:[%s4596_s9 + $0x3b4] sm:$0xff]  ;;  %s3747_s30 = sshll.u32 %s6435_s29, 6  ;;  %s6400_s8 = smov %s6435_s29 }
  0xa0   : >> { %551 = vst [vmem:[%s4592_s2 + $0x80] sm:$0xff] %v550_v6  ;;  %v556_v9 = vld [vmem:[%s4596_s9 + $0x3bc] sm:$0xff]  ;;  %553 = vst [vmem:[%s4592_s2 + $0x88] sm:$0xff] %v552_v7  ;;  %v558_v10 = vld [vmem:[%s4596_s9 + $0x3c4] sm:$0xff]  ;;  %s5214_s25 = scalar_lea.vmem %s4776_s11, %s3747_s30   ;;  %s5217_s26 = scalar_lea.vmem %s4780_s22, %s3747_s30 [#allocation2]  }
  0xa1   : >> { %555 = vst [vmem:[%s4592_s2 + $0x90] sm:$0xff] %v554_v8  ;;  %557 = vst [vmem:[%s4592_s2 + $0x98] sm:$0xff] %v556_v9  ;;  %v560_v11 = vld [vmem:[%s4596_s9 + $0x3cc] sm:$0xff]  ;;  %v562_v12 = vld [vmem:[%s4596_s9 + $0x3d4] sm:$0xff] }
  0xa2   : >> { %559 = vst [vmem:[%s4592_s2 + $0xa0] sm:$0xff] %v558_v10  ;;  %561 = vst [vmem:[%s4592_s2 + $0xa8] sm:$0xff] %v560_v11  ;;  %v564_v13 = vld [vmem:[%s4596_s9 + $0x3dc] sm:$0xff]  ;;  %v566_v14 = vld [vmem:[%s4596_s9 + $0x748] sm:$0xff] }
  0xa3   : >> { %563 = vst [vmem:[%s4592_s2 + $0xb0] sm:$0xff] %v562_v12  ;;  %v568_v15 = vld [vmem:[%s4596_s9 + $0x750] sm:$0xff]  ;;  %565 = vst [vmem:[%s4592_s2 + $0xb8] sm:$0xff] %v564_v13  ;;  %v570_v16 = vld [vmem:[%s4596_s9 + $0x758] sm:$0xff] }
  0xa4   : >> { %567 = vst [vmem:[%s4592_s2 + $0x100] sm:$0xff] %v566_v14  ;;  %569 = vst [vmem:[%s4592_s2 + $0x108] sm:$0xff] %v568_v15  ;;  %v572_v17 = vld [vmem:[%s4596_s9 + $0x760] sm:$0xff]  ;;  %v574_v18 = vld [vmem:[%s4596_s9 + $0x768] sm:$0xff] }
  0xa5   : >> { %571 = vst [vmem:[%s4592_s2 + $0x110] sm:$0xff] %v570_v16  ;;  %573 = vst [vmem:[%s4592_s2 + $0x118] sm:$0xff] %v572_v17  ;;  %v576_v19 = vld [vmem:[%s4596_s9 + $0x770] sm:$0xff]  ;;  %v578_v20 = vld [vmem:[%s4596_s9 + $0x778] sm:$0xff] }
  0xa6   : >> { %575 = vst [vmem:[%s4592_s2 + $0x120] sm:$0xff] %v574_v18  ;;  %v580_v21 = vld [vmem:[%s4596_s9 + $0x780] sm:$0xff]  ;;  %577 = vst [vmem:[%s4592_s2 + $0x128] sm:$0xff] %v576_v19  ;;  %v582_v22 = vld [vmem:[%s4596_s9 + $0xaec] sm:$0xff] }
  0xa7   : >> { %579 = vst [vmem:[%s4592_s2 + $0x130] sm:$0xff] %v578_v20  ;;  %581 = vst [vmem:[%s4592_s2 + $0x138] sm:$0xff] %v580_v21  ;;  %v584_v23 = vld [vmem:[%s4596_s9 + $0xaf4] sm:$0xff]  ;;  %v586_v24 = vld [vmem:[%s4596_s9 + $0xafc] sm:$0xff] }
  0xa8   : >> { %583 = vst [vmem:[%s4592_s2 + $0x180] sm:$0xff] %v582_v22  ;;  %585 = vst [vmem:[%s4592_s2 + $0x188] sm:$0xff] %v584_v23  ;;  %v588_v25 = vld [vmem:[%s4596_s9 + $0xb04] sm:$0xff]  ;;  %v590_v26 = vld [vmem:[%s4596_s9 + $0xb0c] sm:$0xff] }
  0xa9   : >> { %587 = vst [vmem:[%s4592_s2 + $0x190] sm:$0xff] %v586_v24  ;;  %v592_v27 = vld [vmem:[%s4596_s9 + $0xb14] sm:$0xff]  ;;  %589 = vst [vmem:[%s4592_s2 + $0x198] sm:$0xff] %v588_v25  ;;  %v594_v28 = vld [vmem:[%s4596_s9 + $0xb1c] sm:$0xff] }
  0xaa   : >> { %591 = vst [vmem:[%s4592_s2 + $0x1a0] sm:$0xff] %v590_v26  ;;  %593 = vst [vmem:[%s4592_s2 + $0x1a8] sm:$0xff] %v592_v27  ;;  %v596_v29 = vld [vmem:[%s4596_s9 + $0xb24] sm:$0xff]  ;;  %v598_v30 = vld [vmem:[%s4596_s9 + $0xe90] sm:$0xff] }
  0xab   : >> { %595 = vst [vmem:[%s4592_s2 + $0x1b0] sm:$0xff] %v594_v28  ;;  %597 = vst [vmem:[%s4592_s2 + $0x1b8] sm:$0xff] %v596_v29  ;;  %v600_v31 = vld [vmem:[%s4596_s9 + $0xe98] sm:$0xff]  ;;  %v602_v32 = vld [vmem:[%s4596_s9 + $0xea0] sm:$0xff] }
  0xac   : >> { %599 = vst [vmem:[%s4592_s2 + $0x200] sm:$0xff] %v598_v30  ;;  %v604_v33 = vld [vmem:[%s4596_s9 + $0xea8] sm:$0xff]  ;;  %601 = vst [vmem:[%s4592_s2 + $0x208] sm:$0xff] %v600_v31  ;;  %v606_v34 = vld [vmem:[%s4596_s9 + $0xeb0] sm:$0xff] }
  0xad   : >> { %603 = vst [vmem:[%s4592_s2 + $0x210] sm:$0xff] %v602_v32  ;;  %605 = vst [vmem:[%s4592_s2 + $0x218] sm:$0xff] %v604_v33  ;;  %v608_v35 = vld [vmem:[%s4596_s9 + $0xeb8] sm:$0xff]  ;;  %v610_v36 = vld [vmem:[%s4596_s9 + $0xec0] sm:$0xff] }
  0xae   : >> { %607 = vst [vmem:[%s4592_s2 + $0x220] sm:$0xff] %v606_v34  ;;  %609 = vst [vmem:[%s4592_s2 + $0x228] sm:$0xff] %v608_v35  ;;  %v612_v37 = vld [vmem:[%s4596_s9 + $0xec8] sm:$0xff]  ;;  %v614_v38 = vld [vmem:[%s4596_s9 + $0x1234] sm:$0xff] }
  0xaf   : >> { %611 = vst [vmem:[%s4592_s2 + $0x230] sm:$0xff] %v610_v36  ;;  %v616_v39 = vld [vmem:[%s4596_s9 + $0x123c] sm:$0xff]  ;;  %613 = vst [vmem:[%s4592_s2 + $0x238] sm:$0xff] %v612_v37  ;;  %v618_v40 = vld [vmem:[%s4596_s9 + $0x1244] sm:$0xff] }
  0xb0   : >> { %615 = vst [vmem:[%s4592_s2 + $0x280] sm:$0xff] %v614_v38  ;;  %617 = vst [vmem:[%s4592_s2 + $0x288] sm:$0xff] %v616_v39  ;;  %v620_v41 = vld [vmem:[%s4596_s9 + $0x124c] sm:$0xff]  ;;  %v622_v42 = vld [vmem:[%s4596_s9 + $0x1254] sm:$0xff] }
  0xb1   : >> { %619 = vst [vmem:[%s4592_s2 + $0x290] sm:$0xff] %v618_v40  ;;  %621 = vst [vmem:[%s4592_s2 + $0x298] sm:$0xff] %v620_v41  ;;  %v624_v43 = vld [vmem:[%s4596_s9 + $0x125c] sm:$0xff]  ;;  %v626_v44 = vld [vmem:[%s4596_s9 + $0x1264] sm:$0xff] }
  0xb2   : >> { %623 = vst [vmem:[%s4592_s2 + $0x2a0] sm:$0xff] %v622_v42  ;;  %v628_v45 = vld [vmem:[%s4596_s9 + $0x126c] sm:$0xff]  ;;  %625 = vst [vmem:[%s4592_s2 + $0x2a8] sm:$0xff] %v624_v43  ;;  %v630_v46 = vld [vmem:[%s4596_s9 + $0x15d8] sm:$0xff] }
  0xb3   : >> { %627 = vst [vmem:[%s4592_s2 + $0x2b0] sm:$0xff] %v626_v44  ;;  %629 = vst [vmem:[%s4592_s2 + $0x2b8] sm:$0xff] %v628_v45  ;;  %v632_v47 = vld [vmem:[%s4596_s9 + $0x15e0] sm:$0xff]  ;;  %v634_v48 = vld [vmem:[%s4596_s9 + $0x15e8] sm:$0xff] }
  0xb4   : >> { %631 = vst [vmem:[%s4592_s2 + $0x300] sm:$0xff] %v630_v46  ;;  %633 = vst [vmem:[%s4592_s2 + $0x308] sm:$0xff] %v632_v47  ;;  %v636_v49 = vld [vmem:[%s4596_s9 + $0x15f0] sm:$0xff]  ;;  %v638_v50 = vld [vmem:[%s4596_s9 + $0x15f8] sm:$0xff] }
  0xb5   : >> { %635 = vst [vmem:[%s4592_s2 + $0x310] sm:$0xff] %v634_v48  ;;  %v640_v51 = vld [vmem:[%s4596_s9 + $0x1600] sm:$0xff]  ;;  %637 = vst [vmem:[%s4592_s2 + $0x318] sm:$0xff] %v636_v49  ;;  %v642_v52 = vld [vmem:[%s4596_s9 + $0x1608] sm:$0xff] }
  0xb6   : >> { %639 = vst [vmem:[%s4592_s2 + $0x320] sm:$0xff] %v638_v50  ;;  %641 = vst [vmem:[%s4592_s2 + $0x328] sm:$0xff] %v640_v51  ;;  %v644_v53 = vld [vmem:[%s4596_s9 + $0x1610] sm:$0xff]  ;;  %v646_v54 = vld [vmem:[%s4596_s9 + $0x197c] sm:$0xff] }
  0xb7   : >> { %643 = vst [vmem:[%s4592_s2 + $0x330] sm:$0xff] %v642_v52  ;;  %645 = vst [vmem:[%s4592_s2 + $0x338] sm:$0xff] %v644_v53  ;;  %v648_v55 = vld [vmem:[%s4596_s9 + $0x1984] sm:$0xff]  ;;  %v650_v56 = vld [vmem:[%s4596_s9 + $0x198c] sm:$0xff] }
  0xb8   : >> { %647 = vst [vmem:[%s4592_s2 + $0x380] sm:$0xff] %v646_v54  ;;  %v652_v57 = vld [vmem:[%s4596_s9 + $0x1994] sm:$0xff]  ;;  %649 = vst [vmem:[%s4592_s2 + $0x388] sm:$0xff] %v648_v55  ;;  %v654_v58 = vld [vmem:[%s4596_s9 + $0x199c] sm:$0xff] }
  0xb9   : >> { %651 = vst [vmem:[%s4592_s2 + $0x390] sm:$0xff] %v650_v56  ;;  %653 = vst [vmem:[%s4592_s2 + $0x398] sm:$0xff] %v652_v57  ;;  %v656_v59 = vld [vmem:[%s4596_s9 + $0x19a4] sm:$0xff]  ;;  %v658_v60 = vld [vmem:[%s4596_s9 + $0x19ac] sm:$0xff] }
  0xba   : >> { %655 = vst [vmem:[%s4592_s2 + $0x3a0] sm:$0xff] %v654_v58  ;;  %657 = vst [vmem:[%s4592_s2 + $0x3a8] sm:$0xff] %v656_v59  ;;  %v660_v61 = vld [vmem:[%s4596_s9 + $0x19b4] sm:$0xff]  ;;  %v662_v62 = vld [vmem:[%s4596_s9 + $0x1d20] sm:$0xff] }
  0xbb   : >> { %659 = vst [vmem:[%s4592_s2 + $0x3b0] sm:$0xff] %v658_v60  ;;  %v664_v63 = vld [vmem:[%s4596_s9 + $0x1d28] sm:$0xff]  ;;  %661 = vst [vmem:[%s4592_s2 + $0x3b8] sm:$0xff] %v660_v61  ;;  %v666_v0 = vld [vmem:[%s4596_s9 + $0x1d30] sm:$0xff] }
  0xbc   : >> { %663 = vst [vmem:[%s4592_s2 + $0x400] sm:$0xff] %v662_v62  ;;  %665 = vst [vmem:[%s4592_s2 + $0x408] sm:$0xff] %v664_v63  ;;  %v668_v1 = vld [vmem:[%s4596_s9 + $0x1d38] sm:$0xff]  ;;  %v670_v2 = vld [vmem:[%s4596_s9 + $0x1d40] sm:$0xff] }
  0xbd   : >> { %667 = vst [vmem:[%s4592_s2 + $0x410] sm:$0xff] %v666_v0  ;;  %669 = vst [vmem:[%s4592_s2 + $0x418] sm:$0xff] %v668_v1  ;;  %v672_v3 = vld [vmem:[%s4596_s9 + $0x1d48] sm:$0xff]  ;;  %v674_v4 = vld [vmem:[%s4596_s9 + $0x1d50] sm:$0xff] }
  0xbe   : >> { %671 = vst [vmem:[%s4592_s2 + $0x420] sm:$0xff] %v670_v2  ;;  %v676_v5 = vld [vmem:[%s4596_s9 + $0x1d58] sm:$0xff]  ;;  %673 = vst [vmem:[%s4592_s2 + $0x428] sm:$0xff] %v672_v3  ;;  %v678_v6 = vld [vmem:[%s4596_s9 + $0x20c4] sm:$0xff] }
  0xbf   : >> { %675 = vst [vmem:[%s4592_s2 + $0x430] sm:$0xff] %v674_v4  ;;  %677 = vst [vmem:[%s4592_s2 + $0x438] sm:$0xff] %v676_v5  ;;  %v680_v7 = vld [vmem:[%s4596_s9 + $0x20cc] sm:$0xff]  ;;  %v682_v8 = vld [vmem:[%s4596_s9 + $0x20d4] sm:$0xff] }
  0xc0   : >> { %679 = vst [vmem:[%s4592_s2 + $0x480] sm:$0xff] %v678_v6  ;;  %681 = vst [vmem:[%s4592_s2 + $0x488] sm:$0xff] %v680_v7  ;;  %v684_v9 = vld [vmem:[%s4596_s9 + $0x20dc] sm:$0xff]  ;;  %v686_v10 = vld [vmem:[%s4596_s9 + $0x20e4] sm:$0xff] }
  0xc1   : >> { %683 = vst [vmem:[%s4592_s2 + $0x490] sm:$0xff] %v682_v8  ;;  %v688_v11 = vld [vmem:[%s4596_s9 + $0x20ec] sm:$0xff]  ;;  %685 = vst [vmem:[%s4592_s2 + $0x498] sm:$0xff] %v684_v9  ;;  %v690_v12 = vld [vmem:[%s4596_s9 + $0x20f4] sm:$0xff] }
  0xc2   : >> { %687 = vst [vmem:[%s4592_s2 + $0x4a0] sm:$0xff] %v686_v10  ;;  %689 = vst [vmem:[%s4592_s2 + $0x4a8] sm:$0xff] %v688_v11  ;;  %v692_v13 = vld [vmem:[%s4596_s9 + $0x20fc] sm:$0xff]  ;;  %v694_v14 = vld [vmem:[%s4596_s9 + $0x2468] sm:$0xff] }
  0xc3   : >> { %691 = vst [vmem:[%s4592_s2 + $0x4b0] sm:$0xff] %v690_v12  ;;  %693 = vst [vmem:[%s4592_s2 + $0x4b8] sm:$0xff] %v692_v13  ;;  %v696_v15 = vld [vmem:[%s4596_s9 + $0x2470] sm:$0xff]  ;;  %v698_v16 = vld [vmem:[%s4596_s9 + $0x2478] sm:$0xff] }
  0xc4   : >> { %695 = vst [vmem:[%s4592_s2 + $0x500] sm:$0xff] %v694_v14  ;;  %v700_v17 = vld [vmem:[%s4596_s9 + $0x2480] sm:$0xff]  ;;  %697 = vst [vmem:[%s4592_s2 + $0x508] sm:$0xff] %v696_v15  ;;  %v702_v18 = vld [vmem:[%s4596_s9 + $0x2488] sm:$0xff] }
  0xc5   : >> { %699 = vst [vmem:[%s4592_s2 + $0x510] sm:$0xff] %v698_v16  ;;  %701 = vst [vmem:[%s4592_s2 + $0x518] sm:$0xff] %v700_v17  ;;  %v704_v19 = vld [vmem:[%s4596_s9 + $0x2490] sm:$0xff]  ;;  %v706_v20 = vld [vmem:[%s4596_s9 + $0x2498] sm:$0xff] }
  0xc6   : >> { %703 = vst [vmem:[%s4592_s2 + $0x520] sm:$0xff] %v702_v18  ;;  %705 = vst [vmem:[%s4592_s2 + $0x528] sm:$0xff] %v704_v19  ;;  %v708_v21 = vld [vmem:[%s4596_s9 + $0x24a0] sm:$0xff]  ;;  %v710_v22 = vld [vmem:[%s4596_s9 + $0x280c] sm:$0xff] }
  0xc7   : >> { %707 = vst [vmem:[%s4592_s2 + $0x530] sm:$0xff] %v706_v20  ;;  %v712_v23 = vld [vmem:[%s4596_s9 + $0x2814] sm:$0xff]  ;;  %709 = vst [vmem:[%s4592_s2 + $0x538] sm:$0xff] %v708_v21  ;;  %v714_v24 = vld [vmem:[%s4596_s9 + $0x281c] sm:$0xff] }
  0xc8   : >> { %711 = vst [vmem:[%s4592_s2 + $0x580] sm:$0xff] %v710_v22  ;;  %713 = vst [vmem:[%s4592_s2 + $0x588] sm:$0xff] %v712_v23  ;;  %v716_v25 = vld [vmem:[%s4596_s9 + $0x2824] sm:$0xff]  ;;  %v718_v26 = vld [vmem:[%s4596_s9 + $0x282c] sm:$0xff] }
  0xc9   : >> { %715 = vst [vmem:[%s4592_s2 + $0x590] sm:$0xff] %v714_v24  ;;  %717 = vst [vmem:[%s4592_s2 + $0x598] sm:$0xff] %v716_v25  ;;  %v720_v27 = vld [vmem:[%s4596_s9 + $0x2834] sm:$0xff]  ;;  %v722_v28 = vld [vmem:[%s4596_s9 + $0x283c] sm:$0xff] }
  0xca   : >> { %719 = vst [vmem:[%s4592_s2 + $0x5a0] sm:$0xff] %v718_v26  ;;  %v724_v29 = vld [vmem:[%s4596_s9 + $0x2844] sm:$0xff]  ;;  %721 = vst [vmem:[%s4592_s2 + $0x5a8] sm:$0xff] %v720_v27  ;;  %v726_v30 = vld [vmem:[%s4596_s9 + $0x2bb0] sm:$0xff] }
  0xcb   : >> { %723 = vst [vmem:[%s4592_s2 + $0x5b0] sm:$0xff] %v722_v28  ;;  %725 = vst [vmem:[%s4592_s2 + $0x5b8] sm:$0xff] %v724_v29  ;;  %v728_v31 = vld [vmem:[%s4596_s9 + $0x2bb8] sm:$0xff]  ;;  %v730_v32 = vld [vmem:[%s4596_s9 + $0x2bc0] sm:$0xff] }
  0xcc   : >> { %727 = vst [vmem:[%s4592_s2 + $0x600] sm:$0xff] %v726_v30  ;;  %729 = vst [vmem:[%s4592_s2 + $0x608] sm:$0xff] %v728_v31  ;;  %v732_v33 = vld [vmem:[%s4596_s9 + $0x2bc8] sm:$0xff]  ;;  %v734_v34 = vld [vmem:[%s4596_s9 + $0x2bd0] sm:$0xff] }
  0xcd   : >> { %731 = vst [vmem:[%s4592_s2 + $0x610] sm:$0xff] %v730_v32  ;;  %v736_v35 = vld [vmem:[%s4596_s9 + $0x2bd8] sm:$0xff]  ;;  %733 = vst [vmem:[%s4592_s2 + $0x618] sm:$0xff] %v732_v33  ;;  %v738_v36 = vld [vmem:[%s4596_s9 + $0x2be0] sm:$0xff]  ;;  %530 = sbr.rel (!%p527_p9) target bundleno = 155 (0x9b), region = 257 }
  0xce   : >> { %735 = vst [vmem:[%s4592_s2 + $0x620] sm:$0xff] %v734_v34  ;;  %737 = vst [vmem:[%s4592_s2 + $0x628] sm:$0xff] %v736_v35  ;;  %v740_v37 = vld [vmem:[%s4596_s9 + $0x2be8] sm:$0xff]  ;;  %v742_v38 = vld [vmem:[%s4596_s9 + $0x2f54] sm:$0xff] }
  0xcf   : >> { %739 = vst [vmem:[%s4592_s2 + $0x630] sm:$0xff] %v738_v36  ;;  %741 = vst [vmem:[%s4592_s2 + $0x638] sm:$0xff] %v740_v37  ;;  %v744_v39 = vld [vmem:[%s4596_s9 + $0x2f5c] sm:$0xff]  ;;  %v746_v40 = vld [vmem:[%s4596_s9 + $0x2f64] sm:$0xff] }
  0xd0   : >> { %743 = vst [vmem:[%s4592_s2 + $0x680] sm:$0xff] %v742_v38  ;;  %v748_v41 = vld [vmem:[%s4596_s9 + $0x2f6c] sm:$0xff]  ;;  %745 = vst [vmem:[%s4592_s2 + $0x688] sm:$0xff] %v744_v39  ;;  %v750_v42 = vld [vmem:[%s4596_s9 + $0x2f74] sm:$0xff] }
  0xd1   : >> { %747 = vst [vmem:[%s4592_s2 + $0x690] sm:$0xff] %v746_v40  ;;  %749 = vst [vmem:[%s4592_s2 + $0x698] sm:$0xff] %v748_v41  ;;  %v752_v43 = vld [vmem:[%s4596_s9 + $0x2f7c] sm:$0xff]  ;;  %v754_v44 = vld [vmem:[%s4596_s9 + $0x2f84] sm:$0xff] }
  0xd2   : >> { %751 = vst [vmem:[%s4592_s2 + $0x6a0] sm:$0xff] %v750_v42  ;;  %753 = vst [vmem:[%s4592_s2 + $0x6a8] sm:$0xff] %v752_v43  ;;  %v756_v45 = vld [vmem:[%s4596_s9 + $0x2f8c] sm:$0xff]  ;;  %s6399_s9 = smov %s5214_s25 }
  0xd3   : >> { %755 = vst [vmem:[%s4592_s2 + $0x6b0] sm:$0xff] %v754_v44  ;;  %757 = vst [vmem:[%s4592_s2 + $0x6b8] sm:$0xff] %v756_v45  ;;  %s6398_s2 = smov %s5217_s26 }
  0xd4 PF: > { %s5419_s5 = sand.u32 7, %s521_s7   ;;  %s4045_s30 = sshll.u32 %s5147_s4, 10 }
  0xd5   : > { %s769_s20 = sshra.s32 %s4045_s30, 4  ;;  %p3752_p10 = scmp.le.s32.totalorder %s5419_s5, 0 }
  0xd6   : > { %s5423_s19 = scalar_lea.vmem %s4776_s11, %s769_s20   ;;  %s5426_s26 = scalar_lea.vmem %s4780_s22, %s769_s20 [#allocation2]  }
  0xd7   : > { %3630 = sbr.rel (%p3752_p10) target bundleno = 232 (0xe8), region = 262  ;;  %s6401_s2 = smov (!%p3752_p10), %s5426_s26 }
  0xd8   : > { %s6402_s9 = smov (!%p3752_p10), %s5423_s19  ;;  %s5435_s8 = smov (!%p3752_p10), 0  }
  0xd9   : > { %s5437_s28 = smov (!%p3752_p10), 0  }
  0xde LB: >> { %v785_v46 = vld [vmem:[%s4612_s9] sm:$0xff]  ;;  %v789_v48 = vld [vmem:[%s4612_s9 + $0x748] sm:$0xff]  ;;  %s813_s20 = sadd.s32 1, %s4616_s8  ;;  %v793_v50 = vld [vmem:[%s4612_s9 + $0xe90] sm:$0xff]  ;;  %s779_s28 = sadd.s32 1, %s4620_s28   ;;  %s4620_s28 = sphi %s5437_s28, %s779_s28   ;;  %s4616_s8 = sphi %s5435_s8, %s6403_s8   ;;  %s4612_s9 = sphi %s6402_s9, %s818_s9   ;;  %s4608_s2 = sphi %s6401_s2, %s819_s2  }
  0xdf   : >> { %v787_v47 = vld [vmem:[%s4612_s9 + $0x3a4] sm:$0xff]  ;;  %786 = vst [vmem:[%s4608_s2] sm:$0xff] %v785_v46  ;;  %790 = vst [vmem:[%s4608_s2 + $0x100] sm:$0xff] %v789_v48  ;;  %v791_v49 = vld [vmem:[%s4612_s9 + $0xaec] sm:$0xff]  ;;  %p814_p11 = scmp.ge.s32.totalorder %s813_s20, %s5419_s5  ;;  %p778_p12 = scmp.ge.s32.totalorder %s779_s28, %s5419_s5 }
  0xe0   : >> { %788 = vst [vmem:[%s4608_s2 + $0x80] sm:$0xff] %v787_v47  ;;  %v795_v51 = vld [vmem:[%s4612_s9 + $0x1234] sm:$0xff]  ;;  %792 = vst [vmem:[%s4608_s2 + $0x180] sm:$0xff] %v791_v49  ;;  %v799_v53 = vld [vmem:[%s4612_s9 + $0x197c] sm:$0xff] }
  0xe1   : >> { %794 = vst [vmem:[%s4608_s2 + $0x200] sm:$0xff] %v793_v50  ;;  %796 = vst [vmem:[%s4608_s2 + $0x280] sm:$0xff] %v795_v51  ;;  %v797_v52 = vld [vmem:[%s4612_s9 + $0x15d8] sm:$0xff]  ;;  %v801_v54 = vld [vmem:[%s4612_s9 + $0x1d20] sm:$0xff]  ;;  %s6437_s20 = smov (%p814_p11, %s813_s20), 0  ;;  %781 = sbr.rel (!%p778_p12) target bundleno = 222 (0xde), region = 268 }
  0xe2   : >> { %798 = vst [vmem:[%s4608_s2 + $0x300] sm:$0xff] %v797_v52  ;;  %800 = vst [vmem:[%s4608_s2 + $0x380] sm:$0xff] %v799_v53  ;;  %v803_v55 = vld [vmem:[%s4612_s9 + $0x20c4] sm:$0xff]  ;;  %v807_v57 = vld [vmem:[%s4612_s9 + $0x280c] sm:$0xff]  ;;  %s3753_s7 = sshll.u32 %s6437_s20, 3  ;;  %s6403_s8 = smov %s6437_s20 }
  0xe3   : >> { %802 = vst [vmem:[%s4608_s2 + $0x400] sm:$0xff] %v801_v54  ;;  %v805_v56 = vld [vmem:[%s4612_s9 + $0x2468] sm:$0xff]  ;;  %804 = vst [vmem:[%s4608_s2 + $0x480] sm:$0xff] %v803_v55  ;;  %v809_v58 = vld [vmem:[%s4612_s9 + $0x2bb0] sm:$0xff] }
  0xe4   : >> { %806 = vst [vmem:[%s4608_s2 + $0x500] sm:$0xff] %v805_v56  ;;  %808 = vst [vmem:[%s4608_s2 + $0x580] sm:$0xff] %v807_v57  ;;  %v811_v59 = vld [vmem:[%s4612_s9 + $0x2f54] sm:$0xff]  ;;  %s818_s9 = scalar_lea.vmem %s5423_s19, %s3753_s7  }
  0xe5   : >> { %810 = vst [vmem:[%s4608_s2 + $0x600] sm:$0xff] %v809_v58  ;;  %812 = vst [vmem:[%s4608_s2 + $0x680] sm:$0xff] %v811_v59  ;;  %s819_s2 = scalar_lea.vmem %s5426_s26, %s3753_s7 [#allocation2]  }
  0xe8 PF: > { %s4686_s4 = smov 0  }
  0xe9   : > { %s820_s29 = sshllo.u32 %s4686_s4, %s4784_s24 }
  0xea   : > { %v829_v60 = vld [vmem:[%s5140_s10] sm:%s820_s29]  ;;  %v833_v62 = vld [vmem:[%s5140_s10 + $0x748] sm:%s820_s29] }
  0xeb   : > { %v831_v61 = vld [vmem:[%s5140_s10 + $0x3a4] sm:%s820_s29]  ;;  %830 = vst [vmem:[%s5143_s6] sm:%s820_s29] %v829_v60 }
  0xec   : > { %832 = vst [vmem:[%s5143_s6 + $0x80] sm:%s820_s29] %v831_v61  ;;  %v835_v63 = vld [vmem:[%s5140_s10 + $0xaec] sm:%s820_s29] }
  0xed   : > { %834 = vst [vmem:[%s5143_s6 + $0x100] sm:%s820_s29] %v833_v62  ;;  %836 = vst [vmem:[%s5143_s6 + $0x180] sm:%s820_s29] %v835_v63 }
  0xee   : > { %v837_v0 = vld [vmem:[%s5140_s10 + $0xe90] sm:%s820_s29]  ;;  %v841_v2 = vld [vmem:[%s5140_s10 + $0x15d8] sm:%s820_s29] }
  0xef   : > { %v839_v1 = vld [vmem:[%s5140_s10 + $0x1234] sm:%s820_s29]  ;;  %838 = vst [vmem:[%s5143_s6 + $0x200] sm:%s820_s29] %v837_v0 }
  0xf0   : > { %840 = vst [vmem:[%s5143_s6 + $0x280] sm:%s820_s29] %v839_v1  ;;  %v843_v3 = vld [vmem:[%s5140_s10 + $0x197c] sm:%s820_s29] }
  0xf1   : > { %842 = vst [vmem:[%s5143_s6 + $0x300] sm:%s820_s29] %v841_v2  ;;  %844 = vst [vmem:[%s5143_s6 + $0x380] sm:%s820_s29] %v843_v3 }
  0xf2   : > { %v845_v4 = vld [vmem:[%s5140_s10 + $0x1d20] sm:%s820_s29]  ;;  %v849_v6 = vld [vmem:[%s5140_s10 + $0x2468] sm:%s820_s29] }
  0xf3   : > { %v847_v5 = vld [vmem:[%s5140_s10 + $0x20c4] sm:%s820_s29]  ;;  %846 = vst [vmem:[%s5143_s6 + $0x400] sm:%s820_s29] %v845_v4 }
  0xf4   : > { %848 = vst [vmem:[%s5143_s6 + $0x480] sm:%s820_s29] %v847_v5  ;;  %v851_v7 = vld [vmem:[%s5140_s10 + $0x280c] sm:%s820_s29] }
  0xf5   : > { %850 = vst [vmem:[%s5143_s6 + $0x500] sm:%s820_s29] %v849_v6  ;;  %852 = vst [vmem:[%s5143_s6 + $0x580] sm:%s820_s29] %v851_v7 }
  0xf6   : > { %v853_v8 = vld [vmem:[%s5140_s10 + $0x2bb0] sm:%s820_s29] }
  0xf7   : > { %v855_v9 = vld [vmem:[%s5140_s10 + $0x2f54] sm:%s820_s29]  ;;  %854 = vst [vmem:[%s5143_s6 + $0x600] sm:%s820_s29] %v853_v8 }
  0xf8   : > { %856 = vst [vmem:[%s5143_s6 + $0x680] sm:%s820_s29] %v855_v9 }
  0xf9 PF: > { %p3755_p13 = scmp.ge.u32.totalorder %s4778_s21, 8 }
  0xfa   : > { %s4687_s19 = smov (!%p3755_p13), 0  }
  0xfb   : > { %171 = sbr.rel (%p3755_p13) target bundleno = 267 (0x10b), region = 40  ;;  %s172_s24 = sshllo.u32 (!%p3755_p13), %s4687_s19, %s4778_s21 }
  0xfc   : > { %v181_v10 = vld [vmem:[%s4776_s11] sm:%s172_s24] (!%p3755_p13)  ;;  %v185_v12 = vld [vmem:[%s4776_s11 + $0x748] sm:%s172_s24] (!%p3755_p13) }
  0xfd   : > { %v183_v11 = vld [vmem:[%s4776_s11 + $0x3a4] sm:%s172_s24] (!%p3755_p13)  ;;  %182 = vst [vmem:[%s4780_s22] sm:%s172_s24] (!%p3755_p13), %v181_v10 }
  0xfe   : > { %184 = vst [vmem:[%s4780_s22 + $0x80] sm:%s172_s24] (!%p3755_p13), %v183_v11  ;;  %v187_v13 = vld [vmem:[%s4776_s11 + $0xaec] sm:%s172_s24] (!%p3755_p13) }
  0xff   : > { %186 = vst [vmem:[%s4780_s22 + $0x100] sm:%s172_s24] (!%p3755_p13), %v185_v12  ;;  %188 = vst [vmem:[%s4780_s22 + $0x180] sm:%s172_s24] (!%p3755_p13), %v187_v13 }
 0x100   : > { %v189_v14 = vld [vmem:[%s4776_s11 + $0xe90] sm:%s172_s24] (!%p3755_p13)  ;;  %v193_v16 = vld [vmem:[%s4776_s11 + $0x15d8] sm:%s172_s24] (!%p3755_p13) }
 0x101   : > { %v191_v15 = vld [vmem:[%s4776_s11 + $0x1234] sm:%s172_s24] (!%p3755_p13)  ;;  %190 = vst [vmem:[%s4780_s22 + $0x200] sm:%s172_s24] (!%p3755_p13), %v189_v14 }
 0x102   : > { %192 = vst [vmem:[%s4780_s22 + $0x280] sm:%s172_s24] %v191_v15  ;;  %v195_v17 = vld [vmem:[%s4776_s11 + $0x197c] sm:%s172_s24] }
 0x103   : > { %194 = vst [vmem:[%s4780_s22 + $0x300] sm:%s172_s24] %v193_v16  ;;  %196 = vst [vmem:[%s4780_s22 + $0x380] sm:%s172_s24] %v195_v17 }
 0x104   : > { %v197_v18 = vld [vmem:[%s4776_s11 + $0x1d20] sm:%s172_s24]  ;;  %v201_v20 = vld [vmem:[%s4776_s11 + $0x2468] sm:%s172_s24] }
 0x105   : > { %v199_v19 = vld [vmem:[%s4776_s11 + $0x20c4] sm:%s172_s24]  ;;  %198 = vst [vmem:[%s4780_s22 + $0x400] sm:%s172_s24] %v197_v18 }
 0x106   : > { %200 = vst [vmem:[%s4780_s22 + $0x480] sm:%s172_s24] %v199_v19  ;;  %v203_v21 = vld [vmem:[%s4776_s11 + $0x280c] sm:%s172_s24] }
 0x107   : > { %202 = vst [vmem:[%s4780_s22 + $0x500] sm:%s172_s24] %v201_v20  ;;  %204 = vst [vmem:[%s4780_s22 + $0x580] sm:%s172_s24] %v203_v21 }
 0x108   : > { %v205_v22 = vld [vmem:[%s4776_s11 + $0x2bb0] sm:%s172_s24] }
 0x109   : > { %v207_v23 = vld [vmem:[%s4776_s11 + $0x2f54] sm:%s172_s24]  ;;  %206 = vst [vmem:[%s4780_s22 + $0x600] sm:%s172_s24] %v205_v22 }
 0x10a   : > { %208 = vst [vmem:[%s4780_s22 + $0x680] sm:%s172_s24] %v207_v23 }
 0x10b PF: > { %p3756_p0 = scmp.ge.s32.totalorder %s4556_s18, 1  ;;  %p859_p1 = scmp.lt.s32.totalorder %s4556_s18, 17 }
 0x10d   : > { %p860_p2 = pnand %p3756_p0, %p859_p1 }
 0x10e   : > { %s866_s21 = sand.u32 (!%p860_p2), 1, %s4532_s12   ;;  %v4688_v24 = vmov (!%p860_p2), 0   ;;  %v1124_v25 = vld [vmem:[%s6378_s1] sm:$0xff] (!%p860_p2)  ;;  %vm2222_vm0 = vcmask (!%p860_p2), 1045504   ;;  %vm2218_vm1 = vcmask (!%p860_p2), 883712  }
 0x10f   : > { %863 = sbr.rel (%p860_p2) target bundleno = 888 (0x378), region = 94  ;;  %2351 = vmatprep.mubr.bf16.mxu0 (!%p860_p2), %v4688_v24  ;;  %2392 = vmatprep.mubr.bf16.mxu1 (!%p860_p2), %v4688_v24  ;;  %s3757_s2 = sshll.u32 (!%p860_p2), %s866_s21, 8 }
 0x110   : > { %s4053_s10 = smul.u32 (!%p860_p2), 1792, %s866_s21  ;;  %4372 = vset.pattern.permute.xlu0 (!%p860_p2), %v4688_v24  ;;  %s5882_s12 = scalar_lea.vmem (!%p860_p2), [#allocation3], %s3757_s2  }
 0x111   : > { %1127 = vperm.xlu0 (!%p860_p2), %4372, %v1124_v25  }
 0x112   : > { %s5560_s6 = scalar_lea.vmem (!%p860_p2), [#allocation2], %s4053_s10 }
 0x113   : > { %v900_v26 = vld [vmem:[%s5560_s6] sm:$0xff] (!%p860_p2)  ;;  %v901_v28 = vld [vmem:[%s5560_s6 + $0x8] sm:$0xff] (!%p860_p2)  ;;  %v902_v18 = vld [vmem:[%s5560_s6 + $0x10] sm:$0xff] (!%p860_p2) }
 0x114   : > { %v916_v27 = vld [vmem:[%s5560_s6 + $0x80] sm:$0xff] (!%p860_p2)  ;;  %v917_v30 = vld [vmem:[%s5560_s6 + $0x88] sm:$0xff] (!%p860_p2)  ;;  %v918_v19 = vld [vmem:[%s5560_s6 + $0x90] sm:$0xff] (!%p860_p2) }
 0x115   : > { %v3759_v29 = vcombine.high (!%p860_p2), %v900_v26, %v916_v27  ;;  %v3758_v31 = vcombine.low (!%p860_p2), %v900_v26, %v916_v27  ;;  %v932_v32 = vld [vmem:[%s5560_s6 + $0x100] sm:$0xff] (!%p860_p2)  ;;  %v3761_v34 = vcombine.high (!%p860_p2), %v901_v28, %v917_v30  ;;  %v3760_v35 = vcombine.low (!%p860_p2), %v901_v28, %v917_v30  ;;  %v933_v37 = vld [vmem:[%s5560_s6 + $0x108] sm:$0xff] (!%p860_p2)  ;;  %v903_v20 = vld [vmem:[%s5560_s6 + $0x18] sm:$0xff] (!%p860_p2) }
 0x116   : > { %v948_v33 = vld [vmem:[%s5560_s6 + $0x180] sm:$0xff]  ;;  %v949_v38 = vld [vmem:[%s5560_s6 + $0x188] sm:$0xff]  ;;  %v919_v21 = vld [vmem:[%s5560_s6 + $0x98] sm:$0xff]  ;;  %v3763_v23 = vcombine.high %v902_v18, %v918_v19  ;;  %s4015_s9 = sshll.u32 (%p4759_p6), %s4540_s14, 5  ;;  %s4054_s8 = smul.u32 (%p4759_p6), 233, %s4544_s15 }
 0x117   : > { %v3791_v36 = vcombine.high %v932_v32, %v948_v33  ;;  %v964_v39 = vld [vmem:[%s5560_s6 + $0x200] sm:$0xff]  ;;  %2319 = vmatprep.subr.bf16.mxu0 %v3759_v29  ;;  %v3793_v40 = vcombine.high %v933_v37, %v949_v38  ;;  %v965_v42 = vld [vmem:[%s5560_s6 + $0x208] sm:$0xff]  ;;  %2360 = vmatprep.subr.bf16.mxu1 %v3761_v34  ;;  %v3790_v44 = vcombine.low %v932_v32, %v948_v33  ;;  %v934_v27 = vld [vmem:[%s5560_s6 + $0x110] sm:$0xff]  ;;  %s3079_s28 = ssub.s32 (%p4759_p6), 233, %s4015_s9 }
 0x118   : > { %v980_v41 = vld [vmem:[%s5560_s6 + $0x280] sm:$0xff]  ;;  %v981_v43 = vld [vmem:[%s5560_s6 + $0x288] sm:$0xff]  ;;  %2320 = vmatpush1.bf16.msra.mxu0 %v3758_v31  ;;  %2361 = vmatpush1.bf16.msra.mxu1 %v3760_v35  ;;  %v3792_v45 = vcombine.low %v933_v37, %v949_v38  ;;  %v3765_v26 = vcombine.high %v903_v20, %v919_v21  ;;  %v950_v28 = vld [vmem:[%s5560_s6 + $0x190] sm:$0xff]  ;;  %v3762_v32 = vcombine.low %v902_v18, %v918_v19  ;;  %p3080_p3 = scmp.lt.s32.totalorder (%p4759_p6), %s3079_s28, 32  ;;  %s3085_s20 = sadd.s32 (%p4759_p6), %s4054_s8, %s4015_s9 }
 0x119   : > { %2321 = vmatprep.subr.bf16.mxu0 %v3791_v36  ;;  %v3823_v46 = vcombine.high %v964_v39, %v980_v41  ;;  %2362 = vmatprep.subr.bf16.mxu1 %v3793_v40  ;;  %v3825_v47 = vcombine.high %v965_v42, %v981_v43  ;;  %v996_v48 = vld [vmem:[%s5560_s6 + $0x300] sm:$0xff]  ;;  %v997_v50 = vld [vmem:[%s5560_s6 + $0x308] sm:$0xff]  ;;  %v3822_v52 = vcombine.low %v964_v39, %v980_v41  ;;  %v935_v29 = vld [vmem:[%s5560_s6 + $0x118] sm:$0xff]  ;;  %s4018_s7 = sshll.u32 (%p4759_p6), %s3085_s20, 3 }
 0x11a   : > { %v1012_v49 = vld [vmem:[%s5560_s6 + $0x380] sm:$0xff]  ;;  %v1013_v51 = vld [vmem:[%s5560_s6 + $0x388] sm:$0xff]  ;;  %v3824_v53 = vcombine.low %v965_v42, %v981_v43  ;;  %v951_v30 = vld [vmem:[%s5560_s6 + $0x198] sm:$0xff]  ;;  %v3764_v33 = vcombine.low %v903_v20, %v919_v21  ;;  %v3795_v34 = vcombine.high %v934_v27, %v950_v28  ;;  %v3794_v40 = vcombine.low %v934_v27, %v950_v28  ;;  %s5951_s19 = scalar_lea.vmem (%p4759_p6), %s6380_s3, %s4018_s7  }
 0x11b   : > { %v3855_v54 = vcombine.high %v996_v48, %v1012_v49  ;;  %v3857_v55 = vcombine.high %v997_v50, %v1013_v51  ;;  %v1028_v56 = vld [vmem:[%s5560_s6 + $0x400] sm:$0xff]  ;;  %v1029_v58 = vld [vmem:[%s5560_s6 + $0x408] sm:$0xff]  ;;  %v3854_v60 = vcombine.low %v996_v48, %v1012_v49  ;;  %v3856_v61 = vcombine.low %v997_v50, %v1013_v51  ;;  %v966_v36 = vld [vmem:[%s5560_s6 + $0x210] sm:$0xff] }
 0x11c   : > { %2322 = vmatpush1.bf16.msra.mxu0 %v3790_v44  ;;  %2363 = vmatpush1.bf16.msra.mxu1 %v3792_v45  ;;  %v1044_v57 = vld [vmem:[%s5560_s6 + $0x480] sm:$0xff]  ;;  %v1045_v59 = vld [vmem:[%s5560_s6 + $0x488] sm:$0xff]  ;;  %v3797_v35 = vcombine.high %v935_v29, %v951_v30  ;;  %v982_v37 = vld [vmem:[%s5560_s6 + $0x290] sm:$0xff]  ;;  %v3796_v41 = vcombine.low %v935_v29, %v951_v30 }
 0x11d   : > { %2323 = vmatprep.subr.bf16.mxu0 %v3823_v46  ;;  %2364 = vmatprep.subr.bf16.mxu1 %v3825_v47  ;;  %v3887_v62 = vcombine.high %v1028_v56, %v1044_v57  ;;  %v3889_v63 = vcombine.high %v1029_v58, %v1045_v59  ;;  %v1060_v0 = vld [vmem:[%s5560_s6 + $0x500] sm:$0xff]  ;;  %v1061_v2 = vld [vmem:[%s5560_s6 + $0x508] sm:$0xff]  ;;  %v3886_v4 = vcombine.low %v1028_v56, %v1044_v57  ;;  %v967_v38 = vld [vmem:[%s5560_s6 + $0x218] sm:$0xff] }
 0x11e   : > { %v1076_v1 = vld [vmem:[%s5560_s6 + $0x580] sm:$0xff]  ;;  %v1077_v3 = vld [vmem:[%s5560_s6 + $0x588] sm:$0xff]  ;;  %v3888_v5 = vcombine.low %v1029_v58, %v1045_v59  ;;  %v983_v39 = vld [vmem:[%s5560_s6 + $0x298] sm:$0xff]  ;;  %v3827_v42 = vcombine.high %v966_v36, %v982_v37  ;;  %v3826_v48 = vcombine.low %v966_v36, %v982_v37 }
 0x11f   : > { %v3919_v6 = vcombine.high %v1060_v0, %v1076_v1  ;;  %v3921_v7 = vcombine.high %v1061_v2, %v1077_v3  ;;  %v1092_v8 = vld [vmem:[%s5560_s6 + $0x600] sm:$0xff]  ;;  %v1093_v10 = vld [vmem:[%s5560_s6 + $0x608] sm:$0xff]  ;;  %v3918_v12 = vcombine.low %v1060_v0, %v1076_v1  ;;  %v3920_v13 = vcombine.low %v1061_v2, %v1077_v3  ;;  %v998_v44 = vld [vmem:[%s5560_s6 + $0x310] sm:$0xff] }
 0x120   : > { %2324 = vmatpush1.bf16.msra.mxu0 %v3822_v52  ;;  %2365 = vmatpush1.bf16.msra.mxu1 %v3824_v53  ;;  %v1108_v9 = vld [vmem:[%s5560_s6 + $0x680] sm:$0x33]  ;;  %v1109_v11 = vld [vmem:[%s5560_s6 + $0x688] sm:$0x33]  ;;  %v3829_v43 = vcombine.high %v967_v38, %v983_v39  ;;  %v1014_v45 = vld [vmem:[%s5560_s6 + $0x390] sm:$0xff]  ;;  %v3828_v49 = vcombine.low %v967_v38, %v983_v39 }
 0x121   : > { %2325 = vmatprep.subr.bf16.mxu0 %v3855_v54  ;;  %2366 = vmatprep.subr.bf16.mxu1 %v3857_v55  ;;  %v3951_v14 = vcombine.high %v1092_v8, %v1108_v9  ;;  %v3950_v15 = vcombine.low %v1092_v8, %v1108_v9  ;;  %v3953_v16 = vcombine.high %v1093_v10, %v1109_v11  ;;  %v5605_v31 = vld [vmem:[%s6377_s0] sm:$0xf]  ;;  %v999_v46 = vld [vmem:[%s5560_s6 + $0x318] sm:$0xff]  ;;  %v1030_v52 = vld [vmem:[%s5560_s6 + $0x410] sm:$0xff] }
 0x122   : > { %v3952_v17 = vcombine.low %v1093_v10, %v1109_v11  ;;  %v1015_v47 = vld [vmem:[%s5560_s6 + $0x398] sm:$0xff]  ;;  %v3859_v50 = vcombine.high %v998_v44, %v1014_v45  ;;  %v1046_v53 = vld [vmem:[%s5560_s6 + $0x490] sm:$0xff]  ;;  %v3858_v56 = vcombine.low %v998_v44, %v1014_v45 }
 0x123   : > { %v2224_v22 = vsel %vm2222_vm0, %v3950_v15, 0  ;;  %v3861_v51 = vcombine.high %v999_v46, %v1015_v47  ;;  %v1031_v54 = vld [vmem:[%s5560_s6 + $0x418] sm:$0xff]  ;;  %v3860_v57 = vcombine.low %v999_v46, %v1015_v47  ;;  %v3891_v58 = vcombine.high %v1030_v52, %v1046_v53  ;;  %v920_v15 = vld [vmem:[%s5560_s6 + $0xa0] sm:$0xff] }
 0x124   : > { %2326 = vmatpush1.bf16.msra.mxu0 %v3854_v60  ;;  %2367 = vmatpush1.bf16.msra.mxu1 %v3856_v61  ;;  %v2230_v25 = vsel %vm2222_vm0, %v3952_v17, 0  ;;  %v1047_v55 = vld [vmem:[%s5560_s6 + $0x498] sm:$0xff]  ;;  %v1062_v60 = vld [vmem:[%s5560_s6 + $0x510] sm:$0xff]  ;;  %v3890_v0 = vcombine.low %v1030_v52, %v1046_v53  ;;  %v921_v17 = vld [vmem:[%s5560_s6 + $0xa8] sm:$0xff] }
 0x125   : > { %2327 = vmatprep.subr.bf16.mxu0 %v3887_v62  ;;  %2368 = vmatprep.subr.bf16.mxu1 %v3889_v63  ;;  %v3893_v59 = vcombine.high %v1031_v54, %v1047_v55  ;;  %v1078_v61 = vld [vmem:[%s5560_s6 + $0x590] sm:$0xff]  ;;  %v1063_v62 = vld [vmem:[%s5560_s6 + $0x518] sm:$0xff]  ;;  %v3892_v1 = vcombine.low %v1031_v54, %v1047_v55 }
 0x126   : > { %v1079_v63 = vld [vmem:[%s5560_s6 + $0x598] sm:$0xff]  ;;  %v3923_v2 = vcombine.high %v1062_v60, %v1078_v61  ;;  %v3922_v8 = vcombine.low %v1062_v60, %v1078_v61 }
 0x127   : > { %v3925_v3 = vcombine.high %v1063_v62, %v1079_v63  ;;  %v3924_v9 = vcombine.low %v1063_v62, %v1079_v63 }
 0x128   : > { %2328 = vmatpush1.bf16.msra.mxu0 %v3886_v4  ;;  %2369 = vmatpush1.bf16.msra.mxu1 %v3888_v5  ;;  %v1094_v4 = vld [vmem:[%s5560_s6 + $0x610] sm:$0xff] }
 0x129   : > { %2329 = vmatprep.subr.bf16.mxu0 %v3919_v6  ;;  %2370 = vmatprep.subr.bf16.mxu1 %v3921_v7  ;;  %v1110_v5 = vld [vmem:[%s5560_s6 + $0x690] sm:$0x33]  ;;  %v1095_v6 = vld [vmem:[%s5560_s6 + $0x618] sm:$0xff] }
 0x12a   : > { %v1111_v7 = vld [vmem:[%s5560_s6 + $0x698] sm:$0x33]  ;;  %v3955_v10 = vcombine.high %v1094_v4, %v1110_v5  ;;  %v3954_v11 = vcombine.low %v1094_v4, %v1110_v5 }
 0x12c   : > { %2330 = vmatpush1.bf16.msra.mxu0 %v3918_v12  ;;  %2371 = vmatpush1.bf16.msra.mxu1 %v3920_v13  ;;  %v3957_v12 = vcombine.high %v1095_v6, %v1111_v7  ;;  %v3956_v13 = vcombine.low %v1095_v6, %v1111_v7  ;;  %v2236_v18 = vsel %vm2222_vm0, %v3954_v11, 0  ;;  %v922_v11 = vld [vmem:[%s5560_s6 + $0xb0] sm:$0xff] }
 0x12d   : > { %3982 = vmatprep.subr.msk.bf16.mxu0 %vm2222_vm0, %v3951_v14  ;;  %3984 = vmatprep.subr.msk.bf16.mxu1 %vm2222_vm0, %v3953_v16  ;;  %v904_v14 = vld [vmem:[%s5560_s6 + $0x20] sm:$0xff]  ;;  %v905_v16 = vld [vmem:[%s5560_s6 + $0x28] sm:$0xff] }
 0x12e   : > { %v3767_v19 = vcombine.high %v904_v14, %v920_v15  ;;  %v2242_v20 = vsel %vm2222_vm0, %v3956_v13, 0  ;;  %v3769_v21 = vcombine.high %v905_v16, %v921_v17  ;;  %v3766_v27 = vcombine.low %v904_v14, %v920_v15  ;;  %v923_v13 = vld [vmem:[%s5560_s6 + $0xb8] sm:$0xff] }
 0x12f   : > { %v3768_v28 = vcombine.low %v905_v16, %v921_v17 }
 0x130   : > { %2332 = vmatpush1.bf16.msra.mxu0 %v2224_v22  ;;  %2373 = vmatpush1.bf16.msra.mxu1 %v2230_v25  ;;  %v936_v22 = vld [vmem:[%s5560_s6 + $0x120] sm:$0xff]  ;;  %v937_v25 = vld [vmem:[%s5560_s6 + $0x128] sm:$0xff] }
 0x131   : > { %2401 = vmatprep.subr.bf16.mxu0 %v3763_v23  ;;  %2442 = vmatprep.subr.bf16.mxu1 %v3765_v26  ;;  %v952_v23 = vld [vmem:[%s5560_s6 + $0x1a0] sm:$0xff]  ;;  %v953_v26 = vld [vmem:[%s5560_s6 + $0x1a8] sm:$0xff] }
 0x132   : > { %v3799_v29 = vcombine.high %v936_v22, %v952_v23  ;;  %v3801_v30 = vcombine.high %v937_v25, %v953_v26  ;;  %v3798_v36 = vcombine.low %v936_v22, %v952_v23  ;;  %v3800_v37 = vcombine.low %v937_v25, %v953_v26 }
 0x133   : > { %3983 = vmatmul.mubr.msk.bf16.vlgmr.msra.gmra.mrb[0].mxu0 %vm2218_vm1, %v5605_v31  ;;  %3985 = vmatmul.mubr.msk.bf16.vlgmr.msra.gmra.mrb[0].mxu1 %vm2218_vm1, %v5605_v31 }
 0x134   : > { %2402 = vmatpush1.bf16.msra.mxu0 %v3762_v32  ;;  %2443 = vmatpush1.bf16.msra.mxu1 %v3764_v33  ;;  %v968_v32 = vld [vmem:[%s5560_s6 + $0x220] sm:$0xff] }
 0x135   : > { %2403 = vmatprep.subr.bf16.mxu0 %v3795_v34  ;;  %2444 = vmatprep.subr.bf16.mxu1 %v3797_v35  ;;  %v984_v33 = vld [vmem:[%s5560_s6 + $0x2a0] sm:$0xff]  ;;  %v969_v34 = vld [vmem:[%s5560_s6 + $0x228] sm:$0xff] }
 0x136   : > { %2433 = vmatprep.mubr.bf16.mxu0 %v4688_v24  ;;  %2474 = vmatprep.mubr.bf16.mxu1 %v4688_v24  ;;  %v985_v35 = vld [vmem:[%s5560_s6 + $0x2a8] sm:$0xff]  ;;  %v3831_v38 = vcombine.high %v968_v32, %v984_v33  ;;  %v3830_v44 = vcombine.low %v968_v32, %v984_v33 }
 0x137   : > { %v3833_v39 = vcombine.high %v969_v34, %v985_v35  ;;  %v3832_v45 = vcombine.low %v969_v34, %v985_v35 }
 0x138   : > { %2404 = vmatpush1.bf16.msra.mxu0 %v3794_v40  ;;  %2445 = vmatpush1.bf16.msra.mxu1 %v3796_v41  ;;  %v1000_v40 = vld [vmem:[%s5560_s6 + $0x320] sm:$0xff] }
 0x139   : > { %2405 = vmatprep.subr.bf16.mxu0 %v3827_v42  ;;  %2446 = vmatprep.subr.bf16.mxu1 %v3829_v43  ;;  %v1016_v41 = vld [vmem:[%s5560_s6 + $0x3a0] sm:$0xff]  ;;  %v1001_v42 = vld [vmem:[%s5560_s6 + $0x328] sm:$0xff] }
 0x13a   : > { %v1017_v43 = vld [vmem:[%s5560_s6 + $0x3a8] sm:$0xff]  ;;  %v3863_v46 = vcombine.high %v1000_v40, %v1016_v41  ;;  %v3862_v52 = vcombine.low %v1000_v40, %v1016_v41 }
 0x13b   : > { %v3865_v47 = vcombine.high %v1001_v42, %v1017_v43  ;;  %v3864_v53 = vcombine.low %v1001_v42, %v1017_v43 }
 0x13c   : > { %2406 = vmatpush1.bf16.msra.mxu0 %v3826_v48  ;;  %2447 = vmatpush1.bf16.msra.mxu1 %v3828_v49  ;;  %v1032_v48 = vld [vmem:[%s5560_s6 + $0x420] sm:$0xff] }
 0x13d   : > { %2407 = vmatprep.subr.bf16.mxu0 %v3859_v50  ;;  %2448 = vmatprep.subr.bf16.mxu1 %v3861_v51  ;;  %v1048_v49 = vld [vmem:[%s5560_s6 + $0x4a0] sm:$0xff]  ;;  %v1033_v50 = vld [vmem:[%s5560_s6 + $0x428] sm:$0xff] }
 0x13e   : > { %v1049_v51 = vld [vmem:[%s5560_s6 + $0x4a8] sm:$0xff]  ;;  %v3895_v54 = vcombine.high %v1032_v48, %v1048_v49  ;;  %v3894_v60 = vcombine.low %v1032_v48, %v1048_v49 }
 0x13f   : > { %v3897_v55 = vcombine.high %v1033_v50, %v1049_v51  ;;  %v3896_v61 = vcombine.low %v1033_v50, %v1049_v51 }
 0x140   : > { %2408 = vmatpush1.bf16.msra.mxu0 %v3858_v56  ;;  %2449 = vmatpush1.bf16.msra.mxu1 %v3860_v57  ;;  %v1064_v56 = vld [vmem:[%s5560_s6 + $0x520] sm:$0xff] }
 0x141   : > { %2409 = vmatprep.subr.bf16.mxu0 %v3891_v58  ;;  %2450 = vmatprep.subr.bf16.mxu1 %v3893_v59  ;;  %v1080_v57 = vld [vmem:[%s5560_s6 + $0x5a0] sm:$0xff]  ;;  %v1065_v58 = vld [vmem:[%s5560_s6 + $0x528] sm:$0xff] }
 0x142   : > { %v1081_v59 = vld [vmem:[%s5560_s6 + $0x5a8] sm:$0xff]  ;;  %v3927_v62 = vcombine.high %v1064_v56, %v1080_v57  ;;  %v3926_v4 = vcombine.low %v1064_v56, %v1080_v57 }
 0x143   : > { %v3929_v63 = vcombine.high %v1065_v58, %v1081_v59  ;;  %v3928_v5 = vcombine.low %v1065_v58, %v1081_v59 }
 0x144   : > { %2410 = vmatpush1.bf16.msra.mxu0 %v3890_v0  ;;  %2451 = vmatpush1.bf16.msra.mxu1 %v3892_v1  ;;  %v1096_v0 = vld [vmem:[%s5560_s6 + $0x620] sm:$0xff] }
 0x145   : > { %2411 = vmatprep.subr.bf16.mxu0 %v3923_v2  ;;  %2452 = vmatprep.subr.bf16.mxu1 %v3925_v3  ;;  %v1112_v1 = vld [vmem:[%s5560_s6 + $0x6a0] sm:$0x33]  ;;  %v1097_v2 = vld [vmem:[%s5560_s6 + $0x628] sm:$0xff] }
 0x146   : > { %v1113_v3 = vld [vmem:[%s5560_s6 + $0x6a8] sm:$0x33]  ;;  %v3959_v6 = vcombine.high %v1096_v0, %v1112_v1  ;;  %v3958_v7 = vcombine.low %v1096_v0, %v1112_v1 }
 0x148   : > { %2412 = vmatpush1.bf16.msra.mxu0 %v3922_v8  ;;  %2453 = vmatpush1.bf16.msra.mxu1 %v3924_v9  ;;  %v3961_v8 = vcombine.high %v1097_v2, %v1113_v3  ;;  %v3960_v9 = vcombine.low %v1097_v2, %v1113_v3  ;;  %v2248_v14 = vsel %vm2222_vm0, %v3958_v7, 0  ;;  %v924_v7 = vld [vmem:[%s5560_s6 + $0xc0] sm:$0xff] }
 0x149   : > { %3986 = vmatprep.subr.msk.bf16.mxu0 %vm2222_vm0, %v3955_v10  ;;  %3988 = vmatprep.subr.msk.bf16.mxu1 %vm2222_vm0, %v3957_v12  ;;  %v906_v10 = vld [vmem:[%s5560_s6 + $0x30] sm:$0xff]  ;;  %v907_v12 = vld [vmem:[%s5560_s6 + $0x38] sm:$0xff] }
 0x14a   : > { %v3771_v15 = vcombine.high %v906_v10, %v922_v11  ;;  %v2254_v16 = vsel %vm2222_vm0, %v3960_v9, 0  ;;  %v3773_v17 = vcombine.high %v907_v12, %v923_v13  ;;  %v3770_v22 = vcombine.low %v906_v10, %v922_v11  ;;  %v925_v9 = vld [vmem:[%s5560_s6 + $0xc8] sm:$0xff] }
 0x14b   : > { %v3772_v23 = vcombine.low %v907_v12, %v923_v13 }
 0x14c   : > { %2414 = vmatpush1.bf16.msra.mxu0 %v2236_v18  ;;  %2455 = vmatpush1.bf16.msra.mxu1 %v2242_v20  ;;  %v938_v18 = vld [vmem:[%s5560_s6 + $0x130] sm:$0xff]  ;;  %v939_v20 = vld [vmem:[%s5560_s6 + $0x138] sm:$0xff] }
 0x14d   : > { %2483 = vmatprep.subr.bf16.mxu0 %v3767_v19  ;;  %2524 = vmatprep.subr.bf16.mxu1 %v3769_v21  ;;  %v954_v19 = vld [vmem:[%s5560_s6 + $0x1b0] sm:$0xff]  ;;  %v955_v21 = vld [vmem:[%s5560_s6 + $0x1b8] sm:$0xff] }
 0x14e   : > { %v3803_v25 = vcombine.high %v938_v18, %v954_v19  ;;  %v3805_v26 = vcombine.high %v939_v20, %v955_v21  ;;  %v3802_v32 = vcombine.low %v938_v18, %v954_v19  ;;  %v3804_v33 = vcombine.low %v939_v20, %v955_v21 }
 0x14f   : > { %3987 = vmatmul.mubr.msk.bf16.vlgmr.msra.gmra.mrb[4].mxu0 %vm2218_vm1, %v5605_v31  ;;  %3989 = vmatmul.mubr.msk.bf16.vlgmr.msra.gmra.mrb[4].mxu1 %vm2218_vm1, %v5605_v31 }
 0x150   : > { %2484 = vmatpush1.bf16.msra.mxu0 %v3766_v27  ;;  %2525 = vmatpush1.bf16.msra.mxu1 %v3768_v28  ;;  %v970_v27 = vld [vmem:[%s5560_s6 + $0x230] sm:$0xff] }
 0x151   : > { %2485 = vmatprep.subr.bf16.mxu0 %v3799_v29  ;;  %2526 = vmatprep.subr.bf16.mxu1 %v3801_v30  ;;  %v986_v28 = vld [vmem:[%s5560_s6 + $0x2b0] sm:$0xff]  ;;  %v971_v29 = vld [vmem:[%s5560_s6 + $0x238] sm:$0xff] }
 0x152   : > { %2515 = vmatprep.mubr.bf16.mxu0 %v4688_v24  ;;  %2556 = vmatprep.mubr.bf16.mxu1 %v4688_v24  ;;  %v987_v30 = vld [vmem:[%s5560_s6 + $0x2b8] sm:$0xff]  ;;  %v3835_v34 = vcombine.high %v970_v27, %v986_v28  ;;  %v3834_v40 = vcombine.low %v970_v27, %v986_v28 }
 0x153   : > { %v3837_v35 = vcombine.high %v971_v29, %v987_v30  ;;  %v3836_v41 = vcombine.low %v971_v29, %v987_v30 }
 0x154   : > { %2486 = vmatpush1.bf16.msra.mxu0 %v3798_v36  ;;  %2527 = vmatpush1.bf16.msra.mxu1 %v3800_v37  ;;  %v1002_v36 = vld [vmem:[%s5560_s6 + $0x330] sm:$0xff] }
 0x155   : > { %2487 = vmatprep.subr.bf16.mxu0 %v3831_v38  ;;  %2528 = vmatprep.subr.bf16.mxu1 %v3833_v39  ;;  %v1018_v37 = vld [vmem:[%s5560_s6 + $0x3b0] sm:$0xff]  ;;  %v1003_v38 = vld [vmem:[%s5560_s6 + $0x338] sm:$0xff] }
 0x156   : > { %v1019_v39 = vld [vmem:[%s5560_s6 + $0x3b8] sm:$0xff]  ;;  %v3867_v42 = vcombine.high %v1002_v36, %v1018_v37  ;;  %v3866_v48 = vcombine.low %v1002_v36, %v1018_v37 }
 0x157   : > { %v3869_v43 = vcombine.high %v1003_v38, %v1019_v39  ;;  %v3868_v49 = vcombine.low %v1003_v38, %v1019_v39 }
 0x158   : > { %2488 = vmatpush1.bf16.msra.mxu0 %v3830_v44  ;;  %2529 = vmatpush1.bf16.msra.mxu1 %v3832_v45  ;;  %v1034_v44 = vld [vmem:[%s5560_s6 + $0x430] sm:$0xff] }
 0x159   : > { %2489 = vmatprep.subr.bf16.mxu0 %v3863_v46  ;;  %2530 = vmatprep.subr.bf16.mxu1 %v3865_v47  ;;  %v1050_v45 = vld [vmem:[%s5560_s6 + $0x4b0] sm:$0xff]  ;;  %v1035_v46 = vld [vmem:[%s5560_s6 + $0x438] sm:$0xff] }
 0x15a   : > { %v1051_v47 = vld [vmem:[%s5560_s6 + $0x4b8] sm:$0xff]  ;;  %v3899_v50 = vcombine.high %v1034_v44, %v1050_v45  ;;  %v3898_v56 = vcombine.low %v1034_v44, %v1050_v45 }
 0x15b   : > { %v3901_v51 = vcombine.high %v1035_v46, %v1051_v47  ;;  %v3900_v57 = vcombine.low %v1035_v46, %v1051_v47 }
 0x15c   : > { %2490 = vmatpush1.bf16.msra.mxu0 %v3862_v52  ;;  %2531 = vmatpush1.bf16.msra.mxu1 %v3864_v53  ;;  %v1066_v52 = vld [vmem:[%s5560_s6 + $0x530] sm:$0xff] }
 0x15d   : > { %2491 = vmatprep.subr.bf16.mxu0 %v3895_v54  ;;  %2532 = vmatprep.subr.bf16.mxu1 %v3897_v55  ;;  %v1082_v53 = vld [vmem:[%s5560_s6 + $0x5b0] sm:$0xff]  ;;  %v1067_v54 = vld [vmem:[%s5560_s6 + $0x538] sm:$0xff] }
 0x15e   : > { %v1083_v55 = vld [vmem:[%s5560_s6 + $0x5b8] sm:$0xff]  ;;  %v3931_v58 = vcombine.high %v1066_v52, %v1082_v53  ;;  %v3930_v0 = vcombine.low %v1066_v52, %v1082_v53 }
 0x15f   : > { %v3933_v59 = vcombine.high %v1067_v54, %v1083_v55  ;;  %v3932_v1 = vcombine.low %v1067_v54, %v1083_v55 }
 0x160   : > { %2492 = vmatpush1.bf16.msra.mxu0 %v3894_v60  ;;  %2533 = vmatpush1.bf16.msra.mxu1 %v3896_v61  ;;  %v1098_v60 = vld [vmem:[%s5560_s6 + $0x630] sm:$0xff] }
 0x161   : > { %2493 = vmatprep.subr.bf16.mxu0 %v3927_v62  ;;  %2534 = vmatprep.subr.bf16.mxu1 %v3929_v63  ;;  %v1114_v61 = vld [vmem:[%s5560_s6 + $0x6b0] sm:$0x33]  ;;  %v1099_v62 = vld [vmem:[%s5560_s6 + $0x638] sm:$0xff] }
 0x162   : > { %v1115_v63 = vld [vmem:[%s5560_s6 + $0x6b8] sm:$0x33]  ;;  %v3963_v2 = vcombine.high %v1098_v60, %v1114_v61  ;;  %v3962_v3 = vcombine.low %v1098_v60, %v1114_v61 }
 0x164   : > { %2494 = vmatpush1.bf16.msra.mxu0 %v3926_v4  ;;  %2535 = vmatpush1.bf16.msra.mxu1 %v3928_v5  ;;  %v3965_v4 = vcombine.high %v1099_v62, %v1115_v63  ;;  %v3964_v5 = vcombine.low %v1099_v62, %v1115_v63  ;;  %v2260_v10 = vsel %vm2222_vm0, %v3962_v3, 0  ;;  %v926_v3 = vld [vmem:[%s5560_s6 + $0xd0] sm:$0xff] }
 0x165   : > { %3990 = vmatprep.subr.msk.bf16.mxu0 %vm2222_vm0, %v3959_v6  ;;  %3992 = vmatprep.subr.msk.bf16.mxu1 %vm2222_vm0, %v3961_v8  ;;  %v908_v6 = vld [vmem:[%s5560_s6 + $0x40] sm:$0xff]  ;;  %v909_v8 = vld [vmem:[%s5560_s6 + $0x48] sm:$0xff] }
 0x166   : > { %v3775_v11 = vcombine.high %v908_v6, %v924_v7  ;;  %v2266_v12 = vsel %vm2222_vm0, %v3964_v5, 0  ;;  %v3777_v13 = vcombine.high %v909_v8, %v925_v9  ;;  %v3774_v18 = vcombine.low %v908_v6, %v924_v7  ;;  %v927_v5 = vld [vmem:[%s5560_s6 + $0xd8] sm:$0xff] }
 0x167   : > { %v3776_v19 = vcombine.low %v909_v8, %v925_v9 }
 0x168   : > { %2496 = vmatpush1.bf16.msra.mxu0 %v2248_v14  ;;  %2537 = vmatpush1.bf16.msra.mxu1 %v2254_v16  ;;  %v940_v14 = vld [vmem:[%s5560_s6 + $0x140] sm:$0xff]  ;;  %v941_v16 = vld [vmem:[%s5560_s6 + $0x148] sm:$0xff] }
 0x169   : > { %2565 = vmatprep.subr.bf16.mxu0 %v3771_v15  ;;  %2606 = vmatprep.subr.bf16.mxu1 %v3773_v17  ;;  %v956_v15 = vld [vmem:[%s5560_s6 + $0x1c0] sm:$0xff]  ;;  %v957_v17 = vld [vmem:[%s5560_s6 + $0x1c8] sm:$0xff] }
 0x16a   : > { %v3807_v20 = vcombine.high %v940_v14, %v956_v15  ;;  %v3809_v21 = vcombine.high %v941_v16, %v957_v17  ;;  %v3806_v27 = vcombine.low %v940_v14, %v956_v15  ;;  %v3808_v28 = vcombine.low %v941_v16, %v957_v17 }
 0x16b   : > { %3991 = vmatmul.mubr.msk.bf16.vlgmr.msra.gmra.mrb[8].mxu0 %vm2218_vm1, %v5605_v31  ;;  %3993 = vmatmul.mubr.msk.bf16.vlgmr.msra.gmra.mrb[8].mxu1 %vm2218_vm1, %v5605_v31 }
 0x16c   : > { %2566 = vmatpush1.bf16.msra.mxu0 %v3770_v22  ;;  %2607 = vmatpush1.bf16.msra.mxu1 %v3772_v23  ;;  %v972_v22 = vld [vmem:[%s5560_s6 + $0x240] sm:$0xff] }
 0x16d   : > { %2567 = vmatprep.subr.bf16.mxu0 %v3803_v25  ;;  %2608 = vmatprep.subr.bf16.mxu1 %v3805_v26  ;;  %v988_v23 = vld [vmem:[%s5560_s6 + $0x2c0] sm:$0xff]  ;;  %v973_v25 = vld [vmem:[%s5560_s6 + $0x248] sm:$0xff] }
 0x16e   : > { %2597 = vmatprep.mubr.bf16.mxu0 %v4688_v24  ;;  %2638 = vmatprep.mubr.bf16.mxu1 %v4688_v24  ;;  %v989_v26 = vld [vmem:[%s5560_s6 + $0x2c8] sm:$0xff]  ;;  %v3839_v29 = vcombine.high %v972_v22, %v988_v23  ;;  %v3838_v36 = vcombine.low %v972_v22, %v988_v23 }
 0x16f   : > { %v3841_v30 = vcombine.high %v973_v25, %v989_v26  ;;  %v3840_v37 = vcombine.low %v973_v25, %v989_v26 }
 0x170   : > { %2568 = vmatpush1.bf16.msra.mxu0 %v3802_v32  ;;  %2609 = vmatpush1.bf16.msra.mxu1 %v3804_v33  ;;  %v1004_v32 = vld [vmem:[%s5560_s6 + $0x340] sm:$0xff] }
 0x171   : > { %2569 = vmatprep.subr.bf16.mxu0 %v3835_v34  ;;  %2610 = vmatprep.subr.bf16.mxu1 %v3837_v35  ;;  %v1020_v33 = vld [vmem:[%s5560_s6 + $0x3c0] sm:$0xff]  ;;  %v1005_v34 = vld [vmem:[%s5560_s6 + $0x348] sm:$0xff] }
 0x172   : > { %v1021_v35 = vld [vmem:[%s5560_s6 + $0x3c8] sm:$0xff]  ;;  %v3871_v38 = vcombine.high %v1004_v32, %v1020_v33  ;;  %v3870_v44 = vcombine.low %v1004_v32, %v1020_v33 }
 0x173   : > { %v3873_v39 = vcombine.high %v1005_v34, %v1021_v35  ;;  %v3872_v45 = vcombine.low %v1005_v34, %v1021_v35 }
 0x174   : > { %2570 = vmatpush1.bf16.msra.mxu0 %v3834_v40  ;;  %2611 = vmatpush1.bf16.msra.mxu1 %v3836_v41  ;;  %v1036_v40 = vld [vmem:[%s5560_s6 + $0x440] sm:$0xff] }
 0x175   : > { %2571 = vmatprep.subr.bf16.mxu0 %v3867_v42  ;;  %2612 = vmatprep.subr.bf16.mxu1 %v3869_v43  ;;  %v1052_v41 = vld [vmem:[%s5560_s6 + $0x4c0] sm:$0xff]  ;;  %v1037_v42 = vld [vmem:[%s5560_s6 + $0x448] sm:$0xff] }
 0x176   : > { %v1053_v43 = vld [vmem:[%s5560_s6 + $0x4c8] sm:$0xff]  ;;  %v3903_v46 = vcombine.high %v1036_v40, %v1052_v41  ;;  %v3902_v52 = vcombine.low %v1036_v40, %v1052_v41 }
 0x177   : > { %v3905_v47 = vcombine.high %v1037_v42, %v1053_v43  ;;  %v3904_v53 = vcombine.low %v1037_v42, %v1053_v43 }
 0x178   : > { %2572 = vmatpush1.bf16.msra.mxu0 %v3866_v48  ;;  %2613 = vmatpush1.bf16.msra.mxu1 %v3868_v49  ;;  %v1068_v48 = vld [vmem:[%s5560_s6 + $0x540] sm:$0xff] }
 0x179   : > { %2573 = vmatprep.subr.bf16.mxu0 %v3899_v50  ;;  %2614 = vmatprep.subr.bf16.mxu1 %v3901_v51  ;;  %v1084_v49 = vld [vmem:[%s5560_s6 + $0x5c0] sm:$0xff]  ;;  %v1069_v50 = vld [vmem:[%s5560_s6 + $0x548] sm:$0xff] }
 0x17a   : > { %v1085_v51 = vld [vmem:[%s5560_s6 + $0x5c8] sm:$0xff]  ;;  %v3935_v54 = vcombine.high %v1068_v48, %v1084_v49  ;;  %v3934_v60 = vcombine.low %v1068_v48, %v1084_v49 }
 0x17b   : > { %v3937_v55 = vcombine.high %v1069_v50, %v1085_v51  ;;  %v3936_v61 = vcombine.low %v1069_v50, %v1085_v51 }
 0x17c   : > { %2574 = vmatpush1.bf16.msra.mxu0 %v3898_v56  ;;  %2615 = vmatpush1.bf16.msra.mxu1 %v3900_v57  ;;  %v1100_v56 = vld [vmem:[%s5560_s6 + $0x640] sm:$0xff] }
 0x17d   : > { %2575 = vmatprep.subr.bf16.mxu0 %v3931_v58  ;;  %2616 = vmatprep.subr.bf16.mxu1 %v3933_v59  ;;  %v1116_v57 = vld [vmem:[%s5560_s6 + $0x6c0] sm:$0x33]  ;;  %v1101_v58 = vld [vmem:[%s5560_s6 + $0x648] sm:$0xff] }
 0x17e   : > { %v1117_v59 = vld [vmem:[%s5560_s6 + $0x6c8] sm:$0x33]  ;;  %v3967_v62 = vcombine.high %v1100_v56, %v1116_v57  ;;  %v3966_v63 = vcombine.low %v1100_v56, %v1116_v57 }
 0x180   : > { %2576 = vmatpush1.bf16.msra.mxu0 %v3930_v0  ;;  %2617 = vmatpush1.bf16.msra.mxu1 %v3932_v1  ;;  %v3969_v0 = vcombine.high %v1101_v58, %v1117_v59  ;;  %v3968_v1 = vcombine.low %v1101_v58, %v1117_v59  ;;  %v2272_v6 = vsel %vm2222_vm0, %v3966_v63, 0  ;;  %v928_v63 = vld [vmem:[%s5560_s6 + $0xe0] sm:$0xff] }
 0x181   : > { %3994 = vmatprep.subr.msk.bf16.mxu0 %vm2222_vm0, %v3963_v2  ;;  %3996 = vmatprep.subr.msk.bf16.mxu1 %vm2222_vm0, %v3965_v4  ;;  %v910_v2 = vld [vmem:[%s5560_s6 + $0x50] sm:$0xff]  ;;  %v911_v4 = vld [vmem:[%s5560_s6 + $0x58] sm:$0xff] }
 0x182   : > { %v3779_v7 = vcombine.high %v910_v2, %v926_v3  ;;  %v2278_v8 = vsel %vm2222_vm0, %v3968_v1, 0  ;;  %v3781_v9 = vcombine.high %v911_v4, %v927_v5  ;;  %v3778_v14 = vcombine.low %v910_v2, %v926_v3  ;;  %v929_v1 = vld [vmem:[%s5560_s6 + $0xe8] sm:$0xff] }
 0x183   : > { %v3780_v15 = vcombine.low %v911_v4, %v927_v5 }
 0x184   : > { %2578 = vmatpush1.bf16.msra.mxu0 %v2260_v10  ;;  %2619 = vmatpush1.bf16.msra.mxu1 %v2266_v12  ;;  %v942_v10 = vld [vmem:[%s5560_s6 + $0x150] sm:$0xff]  ;;  %v943_v12 = vld [vmem:[%s5560_s6 + $0x158] sm:$0xff] }
 0x185   : > { %2647 = vmatprep.subr.bf16.mxu0 %v3775_v11  ;;  %2688 = vmatprep.subr.bf16.mxu1 %v3777_v13  ;;  %v958_v11 = vld [vmem:[%s5560_s6 + $0x1d0] sm:$0xff]  ;;  %v959_v13 = vld [vmem:[%s5560_s6 + $0x1d8] sm:$0xff] }
 0x186   : > { %v3811_v16 = vcombine.high %v942_v10, %v958_v11  ;;  %v3813_v17 = vcombine.high %v943_v12, %v959_v13  ;;  %v3810_v22 = vcombine.low %v942_v10, %v958_v11  ;;  %v3812_v23 = vcombine.low %v943_v12, %v959_v13 }
 0x187   : > { %3995 = vmatmul.mubr.msk.bf16.vlgmr.msra.gmra.mrb[12].mxu0 %vm2218_vm1, %v5605_v31  ;;  %3997 = vmatmul.mubr.msk.bf16.vlgmr.msra.gmra.mrb[12].mxu1 %vm2218_vm1, %v5605_v31 }
 0x188   : > { %2648 = vmatpush1.bf16.msra.mxu0 %v3774_v18  ;;  %2689 = vmatpush1.bf16.msra.mxu1 %v3776_v19  ;;  %v974_v18 = vld [vmem:[%s5560_s6 + $0x250] sm:$0xff] }
 0x189   : > { %2649 = vmatprep.subr.bf16.mxu0 %v3807_v20  ;;  %2690 = vmatprep.subr.bf16.mxu1 %v3809_v21  ;;  %v990_v19 = vld [vmem:[%s5560_s6 + $0x2d0] sm:$0xff]  ;;  %v975_v20 = vld [vmem:[%s5560_s6 + $0x258] sm:$0xff] }
 0x18a   : > { %2679 = vmatprep.mubr.bf16.mxu0 %v4688_v24  ;;  %2720 = vmatprep.mubr.bf16.mxu1 %v4688_v24  ;;  %v991_v21 = vld [vmem:[%s5560_s6 + $0x2d8] sm:$0xff]  ;;  %v3843_v25 = vcombine.high %v974_v18, %v990_v19  ;;  %v3842_v32 = vcombine.low %v974_v18, %v990_v19 }
 0x18b   : > { %v3845_v26 = vcombine.high %v975_v20, %v991_v21  ;;  %v3844_v33 = vcombine.low %v975_v20, %v991_v21 }
 0x18c   : > { %2650 = vmatpush1.bf16.msra.mxu0 %v3806_v27  ;;  %2691 = vmatpush1.bf16.msra.mxu1 %v3808_v28  ;;  %v1006_v27 = vld [vmem:[%s5560_s6 + $0x350] sm:$0xff] }
 0x18d   : > { %2651 = vmatprep.subr.bf16.mxu0 %v3839_v29  ;;  %2692 = vmatprep.subr.bf16.mxu1 %v3841_v30  ;;  %v1022_v28 = vld [vmem:[%s5560_s6 + $0x3d0] sm:$0xff]  ;;  %v1007_v29 = vld [vmem:[%s5560_s6 + $0x358] sm:$0xff] }
 0x18e   : > { %v1023_v30 = vld [vmem:[%s5560_s6 + $0x3d8] sm:$0xff]  ;;  %v3875_v34 = vcombine.high %v1006_v27, %v1022_v28  ;;  %v3874_v40 = vcombine.low %v1006_v27, %v1022_v28 }
 0x18f   : > { %v3877_v35 = vcombine.high %v1007_v29, %v1023_v30  ;;  %v3876_v41 = vcombine.low %v1007_v29, %v1023_v30  ;;  %v1040_v30 = vld [vmem:[%s5560_s6 + $0x460] sm:$0xff] }
 0x190   : > { %2652 = vmatpush1.bf16.msra.mxu0 %v3838_v36  ;;  %2693 = vmatpush1.bf16.msra.mxu1 %v3840_v37  ;;  %v1038_v36 = vld [vmem:[%s5560_s6 + $0x450] sm:$0xff] }
 0x191   : > { %2653 = vmatprep.subr.bf16.mxu0 %v3871_v38  ;;  %2694 = vmatprep.subr.bf16.mxu1 %v3873_v39  ;;  %v1054_v37 = vld [vmem:[%s5560_s6 + $0x4d0] sm:$0xff]  ;;  %v1039_v38 = vld [vmem:[%s5560_s6 + $0x458] sm:$0xff] }
 0x192   : > { %v1055_v39 = vld [vmem:[%s5560_s6 + $0x4d8] sm:$0xff]  ;;  %v3907_v42 = vcombine.high %v1038_v36, %v1054_v37  ;;  %v3906_v48 = vcombine.low %v1038_v36, %v1054_v37 }
 0x193   : > { %v3909_v43 = vcombine.high %v1039_v38, %v1055_v39  ;;  %v3908_v49 = vcombine.low %v1039_v38, %v1055_v39  ;;  %v1072_v39 = vld [vmem:[%s5560_s6 + $0x560] sm:$0xff] }
 0x194   : > { %2654 = vmatpush1.bf16.msra.mxu0 %v3870_v44  ;;  %2695 = vmatpush1.bf16.msra.mxu1 %v3872_v45  ;;  %v1070_v44 = vld [vmem:[%s5560_s6 + $0x550] sm:$0xff] }
 0x195   : > { %2655 = vmatprep.subr.bf16.mxu0 %v3903_v46  ;;  %2696 = vmatprep.subr.bf16.mxu1 %v3905_v47  ;;  %v1086_v45 = vld [vmem:[%s5560_s6 + $0x5d0] sm:$0xff]  ;;  %v1071_v46 = vld [vmem:[%s5560_s6 + $0x558] sm:$0xff] }
 0x196   : > { %v1087_v47 = vld [vmem:[%s5560_s6 + $0x5d8] sm:$0xff]  ;;  %v3939_v50 = vcombine.high %v1070_v44, %v1086_v45  ;;  %v3938_v56 = vcombine.low %v1070_v44, %v1086_v45 }
 0x197   : > { %v3941_v51 = vcombine.high %v1071_v46, %v1087_v47  ;;  %v3940_v57 = vcombine.low %v1071_v46, %v1087_v47  ;;  %v1104_v47 = vld [vmem:[%s5560_s6 + $0x660] sm:$0xff] }
 0x198   : > { %2656 = vmatpush1.bf16.msra.mxu0 %v3902_v52  ;;  %2697 = vmatpush1.bf16.msra.mxu1 %v3904_v53  ;;  %v1102_v52 = vld [vmem:[%s5560_s6 + $0x650] sm:$0xff] }
 0x199   : > { %2657 = vmatprep.subr.bf16.mxu0 %v3935_v54  ;;  %2698 = vmatprep.subr.bf16.mxu1 %v3937_v55  ;;  %v1118_v53 = vld [vmem:[%s5560_s6 + $0x6d0] sm:$0x33]  ;;  %v1103_v54 = vld [vmem:[%s5560_s6 + $0x658] sm:$0xff] }
 0x19a   : > { %v1119_v55 = vld [vmem:[%s5560_s6 + $0x6d8] sm:$0x33]  ;;  %v3971_v58 = vcombine.high %v1102_v52, %v1118_v53  ;;  %v3970_v59 = vcombine.low %v1102_v52, %v1118_v53 }
 0x19c   : > { %2658 = vmatpush1.bf16.msra.mxu0 %v3934_v60  ;;  %2699 = vmatpush1.bf16.msra.mxu1 %v3936_v61  ;;  %v3973_v60 = vcombine.high %v1103_v54, %v1119_v55  ;;  %v3972_v61 = vcombine.low %v1103_v54, %v1119_v55  ;;  %v2284_v2 = vsel %vm2222_vm0, %v3970_v59, 0  ;;  %v915_v59 = vld [vmem:[%s5560_s6 + $0x78] sm:$0xff] }
 0x19d   : > { %3998 = vmatprep.subr.msk.bf16.mxu0 %vm2222_vm0, %v3967_v62  ;;  %4000 = vmatprep.subr.msk.bf16.mxu1 %vm2222_vm0, %v3969_v0  ;;  %v912_v62 = vld [vmem:[%s5560_s6 + $0x60] sm:$0xff]  ;;  %v913_v0 = vld [vmem:[%s5560_s6 + $0x68] sm:$0xff] }
 0x19e   : > { %v3783_v3 = vcombine.high %v912_v62, %v928_v63  ;;  %v2290_v4 = vsel %vm2222_vm0, %v3972_v61, 0  ;;  %v3785_v5 = vcombine.high %v913_v0, %v929_v1  ;;  %v3782_v10 = vcombine.low %v912_v62, %v928_v63 }
 0x19f   : > { %v3784_v11 = vcombine.low %v913_v0, %v929_v1  ;;  %v946_v1 = vld [vmem:[%s5560_s6 + $0x170] sm:$0xff] }
 0x1a0   : > { %2660 = vmatpush1.bf16.msra.mxu0 %v2272_v6  ;;  %2701 = vmatpush1.bf16.msra.mxu1 %v2278_v8  ;;  %v944_v6 = vld [vmem:[%s5560_s6 + $0x160] sm:$0xff]  ;;  %v945_v8 = vld [vmem:[%s5560_s6 + $0x168] sm:$0xff] }
 0x1a1   : > { %2729 = vmatprep.subr.bf16.mxu0 %v3779_v7  ;;  %2770 = vmatprep.subr.bf16.mxu1 %v3781_v9  ;;  %v960_v7 = vld [vmem:[%s5560_s6 + $0x1e0] sm:$0xff]  ;;  %v961_v9 = vld [vmem:[%s5560_s6 + $0x1e8] sm:$0xff] }
 0x1a2   : > { %v3815_v12 = vcombine.high %v944_v6, %v960_v7  ;;  %v3817_v13 = vcombine.high %v945_v8, %v961_v9  ;;  %v3814_v18 = vcombine.low %v944_v6, %v960_v7  ;;  %v3816_v19 = vcombine.low %v945_v8, %v961_v9  ;;  %v978_v9 = vld [vmem:[%s5560_s6 + $0x270] sm:$0xff] }
 0x1a3   : > { %3999 = vmatmul.mubr.msk.bf16.vlgmr.msra.gmra.mrb[16].mxu0 %vm2218_vm1, %v5605_v31  ;;  %4001 = vmatmul.mubr.msk.bf16.vlgmr.msra.gmra.mrb[16].mxu1 %vm2218_vm1, %v5605_v31 }
 0x1a4   : > { %2730 = vmatpush1.bf16.msra.mxu0 %v3778_v14  ;;  %2771 = vmatpush1.bf16.msra.mxu1 %v3780_v15  ;;  %v976_v14 = vld [vmem:[%s5560_s6 + $0x260] sm:$0xff] }
 0x1a5   : > { %2731 = vmatprep.subr.bf16.mxu0 %v3811_v16  ;;  %2772 = vmatprep.subr.bf16.mxu1 %v3813_v17  ;;  %v992_v15 = vld [vmem:[%s5560_s6 + $0x2e0] sm:$0xff]  ;;  %v977_v16 = vld [vmem:[%s5560_s6 + $0x268] sm:$0xff] }
 0x1a6   : > { %2761 = vmatprep.mubr.bf16.mxu0 %v4688_v24  ;;  %2802 = vmatprep.mubr.bf16.mxu1 %v4688_v24  ;;  %v993_v17 = vld [vmem:[%s5560_s6 + $0x2e8] sm:$0xff]  ;;  %v3847_v20 = vcombine.high %v976_v14, %v992_v15 }
 0x1a7   : > { %v3849_v21 = vcombine.high %v977_v16, %v993_v17  ;;  %v3848_v27 = vcombine.low %v977_v16, %v993_v17 }
 0x1a8   : > { %2732 = vmatpush1.bf16.msra.mxu0 %v3810_v22  ;;  %2773 = vmatpush1.bf16.msra.mxu1 %v3812_v23  ;;  %v1008_v22 = vld [vmem:[%s5560_s6 + $0x360] sm:$0xff] }
 0x1a9   : > { %2733 = vmatprep.subr.bf16.mxu0 %v3843_v25  ;;  %2774 = vmatprep.subr.bf16.mxu1 %v3845_v26  ;;  %v1024_v23 = vld [vmem:[%s5560_s6 + $0x3e0] sm:$0xff]  ;;  %v1009_v25 = vld [vmem:[%s5560_s6 + $0x368] sm:$0xff] }
 0x1aa   : > { %v1025_v26 = vld [vmem:[%s5560_s6 + $0x3e8] sm:$0xff]  ;;  %v3879_v28 = vcombine.high %v1008_v22, %v1024_v23 }
 0x1ab   : > { %v3881_v29 = vcombine.high %v1009_v25, %v1025_v26  ;;  %v3880_v36 = vcombine.low %v1009_v25, %v1025_v26 }
 0x1ac   : > { %2734 = vmatpush1.bf16.msra.mxu0 %v3842_v32  ;;  %2775 = vmatpush1.bf16.msra.mxu1 %v3844_v33  ;;  %v1056_v32 = vld [vmem:[%s5560_s6 + $0x4e0] sm:$0xff]  ;;  %v1041_v33 = vld [vmem:[%s5560_s6 + $0x468] sm:$0xff] }
 0x1ad   : > { %2735 = vmatprep.subr.bf16.mxu0 %v3875_v34  ;;  %2776 = vmatprep.subr.bf16.mxu1 %v3877_v35  ;;  %v1057_v34 = vld [vmem:[%s5560_s6 + $0x4e8] sm:$0xff]  ;;  %v3878_v35 = vcombine.low %v1008_v22, %v1024_v23  ;;  %v3911_v37 = vcombine.high %v1040_v30, %v1056_v32 }
 0x1ae   : > { %v3913_v38 = vcombine.high %v1041_v33, %v1057_v34  ;;  %v3912_v44 = vcombine.low %v1041_v33, %v1057_v34  ;;  %v1074_v34 = vld [vmem:[%s5560_s6 + $0x570] sm:$0xff] }
 0x1b0   : > { %2736 = vmatpush1.bf16.msra.mxu0 %v3874_v40  ;;  %2777 = vmatpush1.bf16.msra.mxu1 %v3876_v41  ;;  %v1088_v40 = vld [vmem:[%s5560_s6 + $0x5e0] sm:$0xff]  ;;  %v1073_v41 = vld [vmem:[%s5560_s6 + $0x568] sm:$0xff] }
 0x1b1   : > { %2737 = vmatprep.subr.bf16.mxu0 %v3907_v42  ;;  %2778 = vmatprep.subr.bf16.mxu1 %v3909_v43  ;;  %v1089_v42 = vld [vmem:[%s5560_s6 + $0x5e8] sm:$0xff]  ;;  %v3910_v43 = vcombine.low %v1040_v30, %v1056_v32  ;;  %v3943_v45 = vcombine.high %v1072_v39, %v1088_v40 }
 0x1b2   : > { %v3945_v46 = vcombine.high %v1073_v41, %v1089_v42  ;;  %v3944_v52 = vcombine.low %v1073_v41, %v1089_v42  ;;  %v1106_v42 = vld [vmem:[%s5560_s6 + $0x670] sm:$0xff] }
 0x1b4   : > { %2738 = vmatpush1.bf16.msra.mxu0 %v3906_v48  ;;  %2779 = vmatpush1.bf16.msra.mxu1 %v3908_v49  ;;  %v1120_v48 = vld [vmem:[%s5560_s6 + $0x6e0] sm:$0x33]  ;;  %v1105_v49 = vld [vmem:[%s5560_s6 + $0x668] sm:$0xff] }
 0x1b5   : > { %2739 = vmatprep.subr.bf16.mxu0 %v3939_v50  ;;  %2780 = vmatprep.subr.bf16.mxu1 %v3941_v51  ;;  %v1121_v50 = vld [vmem:[%s5560_s6 + $0x6e8] sm:$0x33]  ;;  %v3942_v51 = vcombine.low %v1072_v39, %v1088_v40  ;;  %v3975_v53 = vcombine.high %v1104_v47, %v1120_v48  ;;  %v3974_v54 = vcombine.low %v1104_v47, %v1120_v48 }
 0x1b6   : > { %v3977_v55 = vcombine.high %v1105_v49, %v1121_v50 }
 0x1b7   : > { %v2296_v61 = vsel %vm2222_vm0, %v3974_v54, 0  ;;  %v5874_v54 = vpop.permute.xlu0 %1127 }
 0x1b8   : > { %2740 = vmatpush1.bf16.msra.mxu0 %v3938_v56  ;;  %2781 = vmatpush1.bf16.msra.mxu1 %v3940_v57  ;;  %v3976_v56 = vcombine.low %v1105_v49, %v1121_v50  ;;  %v914_v57 = vld [vmem:[%s5560_s6 + $0x70] sm:$0xff] }
 0x1b9   : > { %4002 = vmatprep.subr.msk.bf16.mxu0 %vm2222_vm0, %v3971_v58  ;;  %4004 = vmatprep.subr.msk.bf16.mxu1 %vm2222_vm0, %v3973_v60  ;;  %v930_v58 = vld [vmem:[%s5560_s6 + $0xf0] sm:$0xff]  ;;  %v931_v60 = vld [vmem:[%s5560_s6 + $0xf8] sm:$0xff] }
 0x1ba   : > { %v3787_v62 = vcombine.high %v914_v57, %v930_v58  ;;  %v2302_v63 = vsel %vm2222_vm0, %v3976_v56, 0  ;;  %v3789_v0 = vcombine.high %v915_v59, %v931_v60  ;;  %v3788_v6 = vcombine.low %v915_v59, %v931_v60 }
 0x1bc   : > { %2742 = vmatpush1.bf16.msra.mxu0 %v2284_v2  ;;  %2783 = vmatpush1.bf16.msra.mxu1 %v2290_v4  ;;  %v962_v2 = vld [vmem:[%s5560_s6 + $0x1f0] sm:$0xff]  ;;  %v963_v4 = vld [vmem:[%s5560_s6 + $0x1f8] sm:$0xff] }
 0x1bd   : > { %2811 = vmatprep.subr.bf16.mxu0 %v3783_v3  ;;  %2852 = vmatprep.subr.bf16.mxu1 %v3785_v5  ;;  %v947_v3 = vld [vmem:[%s5560_s6 + $0x178] sm:$0xff]  ;;  %v3786_v5 = vcombine.low %v914_v57, %v930_v58  ;;  %v3819_v7 = vcombine.high %v946_v1, %v962_v2 }
 0x1be   : > { %v3821_v8 = vcombine.high %v947_v3, %v963_v4 }
 0x1bf   : > { %4003 = vmatmul.mubr.msk.bf16.vlgmr.msra.gmra.mrb[20].mxu0 %vm2218_vm1, %v5605_v31  ;;  %4005 = vmatmul.mubr.msk.bf16.vlgmr.msra.gmra.mrb[20].mxu1 %vm2218_vm1, %v5605_v31  ;;  %v3846_v31 = vcombine.low %v976_v14, %v992_v15  ;;  %v3818_v14 = vcombine.low %v946_v1, %v962_v2  ;;  %v3820_v15 = vcombine.low %v947_v3, %v963_v4 }
 0x1c0   : > { %2812 = vmatpush1.bf16.msra.mxu0 %v3782_v10  ;;  %2853 = vmatpush1.bf16.msra.mxu1 %v3784_v11  ;;  %v994_v10 = vld [vmem:[%s5560_s6 + $0x2f0] sm:$0xff]  ;;  %v5840_v11 = vld [vmem:[%s6377_s0] sm:$0xf] }
 0x1c1   : > { %2813 = vmatprep.subr.bf16.mxu0 %v3815_v12  ;;  %2854 = vmatprep.subr.bf16.mxu1 %v3817_v13  ;;  %v979_v12 = vld [vmem:[%s5560_s6 + $0x278] sm:$0xff]  ;;  %v3851_v16 = vcombine.high %v978_v9, %v994_v10  ;;  %v3850_v22 = vcombine.low %v978_v9, %v994_v10 }
 0x1c2   : > { %2843 = vmatprep.mubr.bf16.mxu0 %v4688_v24  ;;  %2884 = vmatprep.mubr.bf16.mxu1 %v4688_v24  ;;  %v995_v13 = vld [vmem:[%s5560_s6 + $0x2f8] sm:$0xff] }
 0x1c3   : > { %v3853_v17 = vcombine.high %v979_v12, %v995_v13  ;;  %v3852_v23 = vcombine.low %v979_v12, %v995_v13 }
 0x1c4   : > { %2814 = vmatpush1.bf16.msra.mxu0 %v3814_v18  ;;  %2855 = vmatpush1.bf16.msra.mxu1 %v3816_v19  ;;  %v1010_v18 = vld [vmem:[%s5560_s6 + $0x370] sm:$0xff] }
 0x1c5   : > { %2815 = vmatprep.subr.bf16.mxu0 %v3847_v20  ;;  %2856 = vmatprep.subr.bf16.mxu1 %v3849_v21  ;;  %v1026_v19 = vld [vmem:[%s5560_s6 + $0x3f0] sm:$0xff]  ;;  %v1011_v20 = vld [vmem:[%s5560_s6 + $0x378] sm:$0xff] }
 0x1c6   : > { %v1027_v21 = vld [vmem:[%s5560_s6 + $0x3f8] sm:$0xff]  ;;  %v3883_v25 = vcombine.high %v1010_v18, %v1026_v19  ;;  %v3882_v30 = vcombine.low %v1010_v18, %v1026_v19 }
 0x1c7   : > { %v3885_v26 = vcombine.high %v1011_v20, %v1027_v21 }
 0x1c8   : > { %2816 = vmatpush1.bf16.msra.mxu0 %v3846_v31  ;;  %2857 = vmatpush1.bf16.msra.mxu1 %v3848_v27  ;;  %v1042_v31 = vld [vmem:[%s5560_s6 + $0x470] sm:$0xff] }
 0x1c9   : > { %2817 = vmatprep.subr.bf16.mxu0 %v3879_v28  ;;  %2858 = vmatprep.subr.bf16.mxu1 %v3881_v29  ;;  %v1058_v27 = vld [vmem:[%s5560_s6 + $0x4f0] sm:$0xff]  ;;  %v1043_v28 = vld [vmem:[%s5560_s6 + $0x478] sm:$0xff] }
 0x1ca   : > { %v1059_v29 = vld [vmem:[%s5560_s6 + $0x4f8] sm:$0xff]  ;;  %v3915_v32 = vcombine.high %v1042_v31, %v1058_v27 }
 0x1cb   : > { %v3917_v33 = vcombine.high %v1043_v28, %v1059_v29  ;;  %v3916_v39 = vcombine.low %v1043_v28, %v1059_v29 }
 0x1cc   : > { %2818 = vmatpush1.bf16.msra.mxu0 %v3878_v35  ;;  %2859 = vmatpush1.bf16.msra.mxu1 %v3880_v36  ;;  %v1090_v35 = vld [vmem:[%s5560_s6 + $0x5f0] sm:$0xff]  ;;  %v1075_v36 = vld [vmem:[%s5560_s6 + $0x578] sm:$0xff] }
 0x1cd   : > { %2819 = vmatprep.subr.bf16.mxu0 %v3911_v37  ;;  %2860 = vmatprep.subr.bf16.mxu1 %v3913_v38  ;;  %v1091_v37 = vld [vmem:[%s5560_s6 + $0x5f8] sm:$0xff]  ;;  %v3914_v38 = vcombine.low %v1042_v31, %v1058_v27  ;;  %v3947_v40 = vcombine.high %v1074_v34, %v1090_v35 }
 0x1ce   : > { %v3949_v41 = vcombine.high %v1075_v36, %v1091_v37  ;;  %v3948_v47 = vcombine.low %v1075_v36, %v1091_v37 }
 0x1d0   : > { %2820 = vmatpush1.bf16.msra.mxu0 %v3910_v43  ;;  %2861 = vmatpush1.bf16.msra.mxu1 %v3912_v44  ;;  %v1122_v43 = vld [vmem:[%s5560_s6 + $0x6f0] sm:$0x33]  ;;  %v1107_v44 = vld [vmem:[%s5560_s6 + $0x678] sm:$0xff] }
 0x1d1   : > { %2821 = vmatprep.subr.bf16.mxu0 %v3943_v45  ;;  %2862 = vmatprep.subr.bf16.mxu1 %v3945_v46  ;;  %v1123_v45 = vld [vmem:[%s5560_s6 + $0x6f8] sm:$0x33]  ;;  %v3946_v46 = vcombine.low %v1074_v34, %v1090_v35  ;;  %v3979_v48 = vcombine.high %v1106_v42, %v1122_v43  ;;  %v3978_v49 = vcombine.low %v1106_v42, %v1122_v43 }
 0x1d2   : > { %v3981_v50 = vcombine.high %v1107_v44, %v1123_v45 }
 0x1d4   : > { %2822 = vmatpush1.bf16.msra.mxu0 %v3942_v51  ;;  %2863 = vmatpush1.bf16.msra.mxu1 %v3944_v52  ;;  %v3980_v51 = vcombine.low %v1107_v44, %v1123_v45  ;;  %v2308_v52 = vsel %vm2222_vm0, %v3978_v49, 0 }
 0x1d5   : > { %4006 = vmatprep.subr.msk.bf16.mxu0 %vm2222_vm0, %v3975_v53  ;;  %4008 = vmatprep.subr.msk.bf16.mxu1 %vm2222_vm0, %v3977_v55 }
 0x1d6   : > { %v2314_v53 = vsel %vm2222_vm0, %v3980_v51, 0 }
 0x1d8   : > { %2824 = vmatpush1.bf16.msra.mxu0 %v2296_v61  ;;  %2865 = vmatpush1.bf16.msra.mxu1 %v2302_v63 }
 0x1d9   : > { %2893 = vmatprep.subr.bf16.mxu0 %v3787_v62  ;;  %2934 = vmatprep.subr.bf16.mxu1 %v3789_v0 }
 0x1db   : > { %4007 = vmatmul.mubr.msk.bf16.vlgmr.msra.gmra.mrb[24].mxu0 %vm2218_vm1, %v5840_v11  ;;  %4009 = vmatmul.mubr.msk.bf16.vlgmr.msra.gmra.mrb[24].mxu1 %vm2218_vm1, %v5840_v11 }
 0x1dc   : > { %2894 = vmatpush1.bf16.msra.mxu0 %v3786_v5  ;;  %2935 = vmatpush1.bf16.msra.mxu1 %v3788_v6 }
 0x1dd   : > { %2895 = vmatprep.subr.bf16.mxu0 %v3819_v7  ;;  %2936 = vmatprep.subr.bf16.mxu1 %v3821_v8 }
 0x1de   : > { %2925 = vmatprep.mubr.bf16.mxu0 %v4688_v24  ;;  %2966 = vmatprep.mubr.bf16.mxu1 %v4688_v24  ;;  %v3884_v24 = vcombine.low %v1011_v20, %v1027_v21 }
 0x1e0   : > { %2896 = vmatpush1.bf16.msra.mxu0 %v3818_v14  ;;  %2937 = vmatpush1.bf16.msra.mxu1 %v3820_v15 }
 0x1e1   : > { %2897 = vmatprep.subr.bf16.mxu0 %v3851_v16  ;;  %2938 = vmatprep.subr.bf16.mxu1 %v3853_v17 }
 0x1e4   : > { %2898 = vmatpush1.bf16.msra.mxu0 %v3850_v22  ;;  %2939 = vmatpush1.bf16.msra.mxu1 %v3852_v23 }
 0x1e5   : > { %2899 = vmatprep.subr.bf16.mxu0 %v3883_v25  ;;  %2940 = vmatprep.subr.bf16.mxu1 %v3885_v26 }
 0x1e8   : > { %2900 = vmatpush1.bf16.msra.mxu0 %v3882_v30  ;;  %2941 = vmatpush1.bf16.msra.mxu1 %v3884_v24 }
 0x1e9   : > { %2901 = vmatprep.subr.bf16.mxu0 %v3915_v32  ;;  %2942 = vmatprep.subr.bf16.mxu1 %v3917_v33 }
 0x1ec   : > { %2902 = vmatpush1.bf16.msra.mxu0 %v3914_v38  ;;  %2943 = vmatpush1.bf16.msra.mxu1 %v3916_v39 }
 0x1ed   : > { %2903 = vmatprep.subr.bf16.mxu0 %v3947_v40  ;;  %2944 = vmatprep.subr.bf16.mxu1 %v3949_v41 }
 0x1f0   : > { %2904 = vmatpush1.bf16.msra.mxu0 %v3946_v46  ;;  %2945 = vmatpush1.bf16.msra.mxu1 %v3948_v47 }
 0x1f1   : > { %4010 = vmatprep.subr.msk.bf16.mxu0 %vm2222_vm0, %v3979_v48  ;;  %4012 = vmatprep.subr.msk.bf16.mxu1 %vm2222_vm0, %v3981_v50 }
 0x1f4   : > { %2906 = vmatpush1.bf16.msra.mxu0 %v2308_v52  ;;  %2947 = vmatpush1.bf16.msra.mxu1 %v2314_v53 }
 0x1f7   : > { %4011 = vmatmul.mubr.msk.bf16.vlgmr.msra.gmra.mrb[28].mxu0 %vm2218_vm1, %v5840_v11  ;;  %4013 = vmatmul.mubr.msk.bf16.vlgmr.msra.gmra.mrb[28].mxu1 %vm2218_vm1, %v5840_v11 }
 0x206   : > { %v2353_v55 = vpop.f32.mrb[0].mxu0  ;;  %v2394_v56 = vpop.f32.mrb[0].mxu1 }
 0x207   : > { %v2354_v57 = vadd.f32 %v2353_v55, %v5874_v54  ;;  %v2355_v58 = vpop.f32.mrb[1].mxu0  ;;  %v2395_v59 = vadd.f32 %v2394_v56, %v5874_v54  ;;  %v2396_v61 = vpop.f32.mrb[1].mxu1 }
 0x208   : > { %v2356_v60 = vadd.f32 %v2355_v58, %v5874_v54  ;;  %v2357_v62 = vpop.f32.mrb[2].mxu0  ;;  %v2397_v0 = vadd.f32 %v2396_v61, %v5874_v54  ;;  %v2398_v1 = vpop.f32.mrb[2].mxu1 }
 0x209   : > { %v2975_v63 = vmax.f32 %v2354_v57, -1.0  ;;  %v2358_v2 = vpop.f32.mrb[3].mxu0  ;;  %v2977_v3 = vmax.f32 %v2395_v59, -1.0  ;;  %v2399_v5 = vpop.f32.mrb[3].mxu1 }
 0x20a   : > { %v2976_v4 = vmax.f32 %v2356_v60, -1.0  ;;  %v2978_v7 = vmax.f32 %v2397_v0, -1.0 }
 0x20b   : > { %v3007_v6 = vmul.f32 0.5, %v2975_v63  ;;  %v3009_v8 = vmul.f32 0.5, %v2977_v3 }
 0x20c   : > { %v3008_v9 = vmul.f32 0.5, %v2976_v4  ;;  %v3010_v10 = vmul.f32 0.5, %v2978_v7 }
 0x20d   : > { %3039 = vst [vmem:[%s5882_s12] sm:$0xff] %v3007_v6  ;;  %3041 = vst [vmem:[%s5882_s12 + $0x10] sm:$0xff] %v3009_v8 }
 0x20e   : > { %3040 = vst [vmem:[%s5882_s12 + $0x8] sm:$0xff] %v3008_v9  ;;  %3042 = vst [vmem:[%s5882_s12 + $0x18] sm:$0xff] %v3010_v10 }
 0x222   : > { %v2435_v11 = vpop.f32.mrb[4].mxu0  ;;  %v2476_v13 = vpop.f32.mrb[4].mxu1 }
 0x223   : > { %v2436_v12 = vadd.f32 %v2435_v11, %v5874_v54  ;;  %v2437_v14 = vpop.f32.mrb[5].mxu0  ;;  %v2477_v15 = vadd.f32 %v2476_v13, %v5874_v54  ;;  %v2478_v17 = vpop.f32.mrb[5].mxu1 }
 0x224   : > { %v2438_v16 = vadd.f32 %v2437_v14, %v5874_v54  ;;  %v2439_v18 = vpop.f32.mrb[6].mxu0  ;;  %v2479_v20 = vadd.f32 %v2478_v17, %v5874_v54  ;;  %v2480_v21 = vpop.f32.mrb[6].mxu1 }
 0x225   : > { %v2979_v19 = vmax.f32 %v2436_v12, -1.0  ;;  %v2440_v22 = vpop.f32.mrb[7].mxu0  ;;  %v2981_v23 = vmax.f32 %v2477_v15, -1.0  ;;  %v2481_v26 = vpop.f32.mrb[7].mxu1 }
 0x226   : > { %v2980_v25 = vmax.f32 %v2438_v16, -1.0  ;;  %v2982_v27 = vmax.f32 %v2479_v20, -1.0 }
 0x227   : > { %v3011_v31 = vmul.f32 0.5, %v2979_v19  ;;  %v3013_v28 = vmul.f32 0.5, %v2981_v23 }
 0x228   : > { %v3012_v29 = vmul.f32 0.5, %v2980_v25  ;;  %v3014_v30 = vmul.f32 0.5, %v2982_v27 }
 0x229   : > { %3043 = vst [vmem:[%s5882_s12 + $0x20] sm:$0xff] %v3011_v31  ;;  %3045 = vst [vmem:[%s5882_s12 + $0x30] sm:$0xff] %v3013_v28 }
 0x22a   : > { %3044 = vst [vmem:[%s5882_s12 + $0x28] sm:$0xff] %v3012_v29  ;;  %3046 = vst [vmem:[%s5882_s12 + $0x38] sm:$0xff] %v3014_v30 }
 0x23e   : > { %v2517_v24 = vpop.f32.mrb[8].mxu0  ;;  %v2558_v33 = vpop.f32.mrb[8].mxu1 }
 0x23f   : > { %v2518_v32 = vadd.f32 %v2517_v24, %v5874_v54  ;;  %v2519_v34 = vpop.f32.mrb[9].mxu0  ;;  %v2559_v35 = vadd.f32 %v2558_v33, %v5874_v54  ;;  %v2560_v37 = vpop.f32.mrb[9].mxu1 }
 0x240   : > { %v2520_v36 = vadd.f32 %v2519_v34, %v5874_v54  ;;  %v2521_v38 = vpop.f32.mrb[10].mxu0  ;;  %v2561_v40 = vadd.f32 %v2560_v37, %v5874_v54  ;;  %v2562_v41 = vpop.f32.mrb[10].mxu1 }
 0x241   : > { %v2983_v39 = vmax.f32 %v2518_v32, -1.0  ;;  %v2522_v42 = vpop.f32.mrb[11].mxu0  ;;  %v2985_v43 = vmax.f32 %v2559_v35, -1.0  ;;  %v2563_v45 = vpop.f32.mrb[11].mxu1 }
 0x242   : > { %v2984_v44 = vmax.f32 %v2520_v36, -1.0  ;;  %v2986_v47 = vmax.f32 %v2561_v40, -1.0 }
 0x243   : > { %v3015_v46 = vmul.f32 0.5, %v2983_v39  ;;  %v3017_v48 = vmul.f32 0.5, %v2985_v43 }
 0x244   : > { %v3016_v49 = vmul.f32 0.5, %v2984_v44  ;;  %v3018_v50 = vmul.f32 0.5, %v2986_v47 }
 0x245   : > { %3047 = vst [vmem:[%s5882_s12 + $0x40] sm:$0xff] %v3015_v46  ;;  %3049 = vst [vmem:[%s5882_s12 + $0x50] sm:$0xff] %v3017_v48 }
 0x246   : > { %3048 = vst [vmem:[%s5882_s12 + $0x48] sm:$0xff] %v3016_v49  ;;  %3050 = vst [vmem:[%s5882_s12 + $0x58] sm:$0xff] %v3018_v50 }
 0x25a   : > { %v2599_v51 = vpop.f32.mrb[12].mxu0  ;;  %v2640_v53 = vpop.f32.mrb[12].mxu1 }
 0x25b   : > { %v2600_v52 = vadd.f32 %v2599_v51, %v5874_v54  ;;  %v2601_v55 = vpop.f32.mrb[13].mxu0  ;;  %v2641_v56 = vadd.f32 %v2640_v53, %v5874_v54  ;;  %v2642_v58 = vpop.f32.mrb[13].mxu1 }
 0x25c   : > { %v2602_v57 = vadd.f32 %v2601_v55, %v5874_v54  ;;  %v2603_v59 = vpop.f32.mrb[14].mxu0  ;;  %v2643_v61 = vadd.f32 %v2642_v58, %v5874_v54  ;;  %v2644_v62 = vpop.f32.mrb[14].mxu1 }
 0x25d   : > { %v2987_v60 = vmax.f32 %v2600_v52, -1.0  ;;  %v2604_v63 = vpop.f32.mrb[15].mxu0  ;;  %v2989_v0 = vmax.f32 %v2641_v56, -1.0  ;;  %v2645_v2 = vpop.f32.mrb[15].mxu1 }
 0x25e   : > { %v2988_v1 = vmax.f32 %v2602_v57, -1.0  ;;  %v2990_v4 = vmax.f32 %v2643_v61, -1.0 }
 0x25f   : > { %v3019_v3 = vmul.f32 0.5, %v2987_v60  ;;  %v3021_v5 = vmul.f32 0.5, %v2989_v0 }
 0x260   : > { %v3020_v6 = vmul.f32 0.5, %v2988_v1  ;;  %v3022_v7 = vmul.f32 0.5, %v2990_v4 }
 0x261   : > { %3051 = vst [vmem:[%s5882_s12 + $0x60] sm:$0xff] %v3019_v3  ;;  %3053 = vst [vmem:[%s5882_s12 + $0x70] sm:$0xff] %v3021_v5 }
 0x262   : > { %3052 = vst [vmem:[%s5882_s12 + $0x68] sm:$0xff] %v3020_v6  ;;  %3054 = vst [vmem:[%s5882_s12 + $0x78] sm:$0xff] %v3022_v7 }
 0x276   : > { %v2681_v8 = vpop.f32.mrb[16].mxu0  ;;  %v2722_v10 = vpop.f32.mrb[16].mxu1 }
 0x277   : > { %v2682_v9 = vadd.f32 %v2681_v8, %v5874_v54  ;;  %v2683_v11 = vpop.f32.mrb[17].mxu0  ;;  %v2723_v12 = vadd.f32 %v2722_v10, %v5874_v54  ;;  %v2724_v14 = vpop.f32.mrb[17].mxu1 }
 0x278   : > { %v2684_v13 = vadd.f32 %v2683_v11, %v5874_v54  ;;  %v2685_v15 = vpop.f32.mrb[18].mxu0  ;;  %v2725_v17 = vadd.f32 %v2724_v14, %v5874_v54  ;;  %v2726_v18 = vpop.f32.mrb[18].mxu1 }
 0x279   : > { %v2991_v16 = vmax.f32 %v2682_v9, -1.0  ;;  %v2686_v19 = vpop.f32.mrb[19].mxu0  ;;  %v2993_v20 = vmax.f32 %v2723_v12, -1.0  ;;  %v2727_v22 = vpop.f32.mrb[19].mxu1 }
 0x27a   : > { %v2992_v21 = vmax.f32 %v2684_v13, -1.0  ;;  %v2994_v25 = vmax.f32 %v2725_v17, -1.0 }
 0x27b   : > { %v3023_v23 = vmul.f32 0.5, %v2991_v16  ;;  %v3025_v26 = vmul.f32 0.5, %v2993_v20 }
 0x27c   : > { %v3024_v31 = vmul.f32 0.5, %v2992_v21  ;;  %v3026_v27 = vmul.f32 0.5, %v2994_v25 }
 0x27d   : > { %3055 = vst [vmem:[%s5882_s12 + $0x80] sm:$0xff] %v3023_v23  ;;  %3057 = vst [vmem:[%s5882_s12 + $0x90] sm:$0xff] %v3025_v26 }
 0x27e   : > { %3056 = vst [vmem:[%s5882_s12 + $0x88] sm:$0xff] %v3024_v31  ;;  %3058 = vst [vmem:[%s5882_s12 + $0x98] sm:$0xff] %v3026_v27 }
 0x292   : > { %v2763_v28 = vpop.f32.mrb[20].mxu0  ;;  %v2804_v30 = vpop.f32.mrb[20].mxu1 }
 0x293   : > { %v2764_v29 = vadd.f32 %v2763_v28, %v5874_v54  ;;  %v2765_v24 = vpop.f32.mrb[21].mxu0  ;;  %v2805_v32 = vadd.f32 %v2804_v30, %v5874_v54  ;;  %v2806_v34 = vpop.f32.mrb[21].mxu1 }
 0x294   : > { %v2766_v33 = vadd.f32 %v2765_v24, %v5874_v54  ;;  %v2767_v35 = vpop.f32.mrb[22].mxu0  ;;  %v2807_v37 = vadd.f32 %v2806_v34, %v5874_v54  ;;  %v2808_v38 = vpop.f32.mrb[22].mxu1 }
 0x295   : > { %v2995_v36 = vmax.f32 %v2764_v29, -1.0  ;;  %v2768_v39 = vpop.f32.mrb[23].mxu0  ;;  %v2997_v40 = vmax.f32 %v2805_v32, -1.0  ;;  %v2809_v42 = vpop.f32.mrb[23].mxu1 }
 0x296   : > { %v2996_v41 = vmax.f32 %v2766_v33, -1.0  ;;  %v2998_v44 = vmax.f32 %v2807_v37, -1.0 }
 0x297   : > { %v3027_v43 = vmul.f32 0.5, %v2995_v36  ;;  %v3029_v45 = vmul.f32 0.5, %v2997_v40 }
 0x298   : > { %v3028_v46 = vmul.f32 0.5, %v2996_v41  ;;  %v3030_v47 = vmul.f32 0.5, %v2998_v44 }
 0x299   : > { %3059 = vst [vmem:[%s5882_s12 + $0xa0] sm:$0xff] %v3027_v43  ;;  %3061 = vst [vmem:[%s5882_s12 + $0xb0] sm:$0xff] %v3029_v45 }
 0x29a   : > { %3060 = vst [vmem:[%s5882_s12 + $0xa8] sm:$0xff] %v3028_v46  ;;  %3062 = vst [vmem:[%s5882_s12 + $0xb8] sm:$0xff] %v3030_v47 }
 0x2ae   : > { %v2845_v48 = vpop.f32.mrb[24].mxu0  ;;  %v2886_v50 = vpop.f32.mrb[24].mxu1 }
 0x2af   : > { %v2846_v49 = vadd.f32 %v2845_v48, %v5874_v54  ;;  %v2847_v51 = vpop.f32.mrb[25].mxu0  ;;  %v2887_v52 = vadd.f32 %v2886_v50, %v5874_v54  ;;  %v2888_v55 = vpop.f32.mrb[25].mxu1 }
 0x2b0   : > { %v2848_v53 = vadd.f32 %v2847_v51, %v5874_v54  ;;  %v2849_v56 = vpop.f32.mrb[26].mxu0  ;;  %v2889_v58 = vadd.f32 %v2888_v55, %v5874_v54  ;;  %v2890_v59 = vpop.f32.mrb[26].mxu1 }
 0x2b1   : > { %v2999_v57 = vmax.f32 %v2846_v49, -1.0  ;;  %v2850_v60 = vpop.f32.mrb[27].mxu0  ;;  %v3001_v61 = vmax.f32 %v2887_v52, -1.0  ;;  %v2891_v63 = vpop.f32.mrb[27].mxu1 }
 0x2b2   : > { %v3000_v62 = vmax.f32 %v2848_v53, -1.0  ;;  %v3002_v1 = vmax.f32 %v2889_v58, -1.0 }
 0x2b3   : > { %v3031_v0 = vmul.f32 0.5, %v2999_v57  ;;  %v3033_v2 = vmul.f32 0.5, %v3001_v61 }
 0x2b4   : > { %v3032_v3 = vmul.f32 0.5, %v3000_v62  ;;  %v3034_v4 = vmul.f32 0.5, %v3002_v1 }
 0x2b5   : > { %3063 = vst [vmem:[%s5882_s12 + $0xc0] sm:$0xff] %v3031_v0  ;;  %3065 = vst [vmem:[%s5882_s12 + $0xd0] sm:$0xff] %v3033_v2 }
 0x2b6   : > { %3064 = vst [vmem:[%s5882_s12 + $0xc8] sm:$0xff] %v3032_v3  ;;  %3066 = vst [vmem:[%s5882_s12 + $0xd8] sm:$0xff] %v3034_v4 }
 0x2ca   : > { %v2927_v5 = vpop.f32.mrb[28].mxu0  ;;  %v2968_v7 = vpop.f32.mrb[28].mxu1 }
 0x2cb   : > { %v2928_v6 = vadd.f32 %v2927_v5, %v5874_v54  ;;  %v2929_v8 = vpop.f32.mrb[29].mxu0  ;;  %v2969_v9 = vadd.f32 %v2968_v7, %v5874_v54  ;;  %v2970_v11 = vpop.f32.mrb[29].mxu1 }
 0x2cc   : > { %v2930_v10 = vadd.f32 %v2929_v8, %v5874_v54  ;;  %v2931_v12 = vpop.f32.mrb[30].mxu0  ;;  %v2971_v14 = vadd.f32 %v2970_v11, %v5874_v54  ;;  %v2972_v15 = vpop.f32.mrb[30].mxu1  ;;  %3077 = sbr.rel (!%p4759_p6) target bundleno = 888 (0x378), region = 102 }
 0x2cd   : > { %v3003_v13 = vmax.f32 %v2928_v6, -1.0  ;;  %v2932_v16 = vpop.f32.mrb[31].mxu0  ;;  %v3005_v17 = vmax.f32 %v2969_v9, -1.0  ;;  %v2973_v19 = vpop.f32.mrb[31].mxu1 }
 0x2ce   : > { %v3004_v18 = vmax.f32 %v2930_v10, -1.0  ;;  %v3006_v21 = vmax.f32 %v2971_v14, -1.0 }
 0x2cf   : > { %v3035_v20 = vmul.f32 0.5, %v3003_v13  ;;  %v3037_v22 = vmul.f32 0.5, %v3005_v17 }
 0x2d0   : > { %v3036_v23 = vmul.f32 0.5, %v3004_v18  ;;  %v3038_v25 = vmul.f32 0.5, %v3006_v21 }
 0x2d1   : > { %3067 = vst [vmem:[%s5882_s12 + $0xe0] sm:$0xff] %v3035_v20  ;;  %3069 = vst [vmem:[%s5882_s12 + $0xf0] sm:$0xff] %v3037_v22 }
 0x2d2   : > { %3068 = vst [vmem:[%s5882_s12 + $0xe8] sm:$0xff] %v3036_v23  ;;  %3070 = vst [vmem:[%s5882_s12 + $0xf8] sm:$0xff] %v3038_v25 }
 0x2d3   : > { %s6439_s28 = smov (!%p3080_p3, %s3079_s28), 32 }
 0x2d4   : > { %s4016_s24 = sshll.u32 %s6439_s28, 7  ;;  %s5953_s21 = sshll.u32 %s6439_s28, 3 }
 0x2d5   : > { %p4020_p4 = scmp.eq.s32.totalorder %s4016_s24, 0 }
 0x2d6   : > { %p3092_p6 = scmp.lt.u32.totalorder (!%p4020_p4), %s5953_s21, 8 }
 0x2d7   : > { %3091 = sbr.rel (%p4020_p4) target bundleno = 888 (0x378), region = 106 }
 0x2de   : > { %3095 = sbr.rel (%p3092_p6) target bundleno = 879 (0x36f), region = 110  ;;  %s5957_s14 = sand.u32 (!%p3092_p6), 7, %s5953_s21  }
 0x2df   : > { %p3111_p5 = scmp.eq.s32.totalorder (!%p3092_p6), %s5957_s14, 0  ;;  %p4021_p7 = scmp.ne.s32.totalorder (!%p3092_p6), %s5957_s14, 0 }
 0x2e5   : > { %3114 = sbr.rel (%p4021_p7) target bundleno = 808 (0x328), region = 125  ;;  %s3115_s15 = sshrl.u32 (!%p4021_p7), %s5953_s21, 3 }
 0x2e6   : > { %s5964_s23 = sshrl.u32 (!%p4021_p7), %s3115_s15, 6 }
 0x2e7   : > { %p4022_p8 = scmp.le.s32.totalorder (!%p4021_p7), %s5964_s23, 0 }
 0x2ec   : > { %3644 = sbr.rel (%p4022_p8) target bundleno = 788 (0x314), region = 273  ;;  %s6404_s10 = smov (!%p4022_p8), %s5951_s19 }
 0x2ed   : > { %s6405_s11 = smov (!%p4022_p8), %s5882_s12  ;;  %s5973_s22 = smov (!%p4022_p8), 0  }
 0x2ee   : > { %s5975_s6 = smov (!%p4022_p8), 0  }
 0x2f3 LB: >> { %v3128_v54 = vld [vmem:[%s4628_s11] sm:$0xff]  ;;  %v3130_v26 = vld [vmem:[%s4628_s11 + $0x8] sm:$0xff]  ;;  %v3132_v31 = vld [vmem:[%s4628_s11 + $0x10] sm:$0xff]  ;;  %s3256_s25 = sadd.s32 1, %s4632_s22  ;;  %s3122_s6 = sadd.s32 1, %s4636_s6   ;;  %s4636_s6 = sphi %s5975_s6, %s3122_s6   ;;  %s4632_s22 = sphi %s5973_s22, %s6408_s22   ;;  %s4628_s11 = sphi %s6405_s11, %s6407_s11   ;;  %s4624_s10 = sphi %s6404_s10, %s6406_s10  }
 0x2f4   : >> { %3129 = vst [vmem:[%s4624_s10] sm:$0xff] %v3128_v54  ;;  %3131 = vst [vmem:[%s4624_s10 + $0x8] sm:$0xff] %v3130_v26  ;;  %v3134_v27 = vld [vmem:[%s4628_s11 + $0x18] sm:$0xff]  ;;  %v3136_v28 = vld [vmem:[%s4628_s11 + $0x20] sm:$0xff]  ;;  %p3257_p9 = scmp.ge.s32.totalorder %s3256_s25, %s5964_s23  ;;  %p3121_p10 = scmp.ge.s32.totalorder %s3122_s6, %s5964_s23 }
 0x2f5   : >> { %3133 = vst [vmem:[%s4624_s10 + $0x10] sm:$0xff] %v3132_v31  ;;  %v3138_v29 = vld [vmem:[%s4628_s11 + $0x28] sm:$0xff]  ;;  %3135 = vst [vmem:[%s4624_s10 + $0x18] sm:$0xff] %v3134_v27  ;;  %v3140_v30 = vld [vmem:[%s4628_s11 + $0x30] sm:$0xff] }
 0x2f6   : >> { %3137 = vst [vmem:[%s4624_s10 + $0x20] sm:$0xff] %v3136_v28  ;;  %3139 = vst [vmem:[%s4624_s10 + $0x28] sm:$0xff] %v3138_v29  ;;  %v3142_v24 = vld [vmem:[%s4628_s11 + $0x38] sm:$0xff]  ;;  %v3144_v32 = vld [vmem:[%s4628_s11 + $0x40] sm:$0xff]  ;;  %s6441_s25 = smov (%p3257_p9, %s3256_s25), 0 }
 0x2f7   : >> { %3141 = vst [vmem:[%s4624_s10 + $0x30] sm:$0xff] %v3140_v30  ;;  %3143 = vst [vmem:[%s4624_s10 + $0x38] sm:$0xff] %v3142_v24  ;;  %v3146_v33 = vld [vmem:[%s4628_s11 + $0x48] sm:$0xff]  ;;  %v3148_v34 = vld [vmem:[%s4628_s11 + $0x50] sm:$0xff]  ;;  %s4023_s5 = sshll.u32 %s6441_s25, 9  ;;  %s6408_s22 = smov %s6441_s25 }
 0x2f8   : >> { %3145 = vst [vmem:[%s4624_s10 + $0x40] sm:$0xff] %v3144_v32  ;;  %v3150_v35 = vld [vmem:[%s4628_s11 + $0x58] sm:$0xff]  ;;  %3147 = vst [vmem:[%s4624_s10 + $0x48] sm:$0xff] %v3146_v33  ;;  %v3152_v36 = vld [vmem:[%s4628_s11 + $0x60] sm:$0xff]  ;;  %s6031_s30 = scalar_lea.vmem %s5882_s12, %s4023_s5 [#allocation3]   ;;  %s6034_s26 = scalar_lea.vmem %s5951_s19, %s4023_s5  }
 0x2f9   : >> { %3149 = vst [vmem:[%s4624_s10 + $0x50] sm:$0xff] %v3148_v34  ;;  %3151 = vst [vmem:[%s4624_s10 + $0x58] sm:$0xff] %v3150_v35  ;;  %v3154_v37 = vld [vmem:[%s4628_s11 + $0x68] sm:$0xff]  ;;  %v3156_v38 = vld [vmem:[%s4628_s11 + $0x70] sm:$0xff] }
 0x2fa   : >> { %3153 = vst [vmem:[%s4624_s10 + $0x60] sm:$0xff] %v3152_v36  ;;  %3155 = vst [vmem:[%s4624_s10 + $0x68] sm:$0xff] %v3154_v37  ;;  %v3158_v39 = vld [vmem:[%s4628_s11 + $0x78] sm:$0xff]  ;;  %v3160_v40 = vld [vmem:[%s4628_s11 + $0x80] sm:$0xff] }
 0x2fb   : >> { %3157 = vst [vmem:[%s4624_s10 + $0x70] sm:$0xff] %v3156_v38  ;;  %v3162_v41 = vld [vmem:[%s4628_s11 + $0x88] sm:$0xff]  ;;  %3159 = vst [vmem:[%s4624_s10 + $0x78] sm:$0xff] %v3158_v39  ;;  %v3164_v42 = vld [vmem:[%s4628_s11 + $0x90] sm:$0xff] }
 0x2fc   : >> { %3161 = vst [vmem:[%s4624_s10 + $0x80] sm:$0xff] %v3160_v40  ;;  %3163 = vst [vmem:[%s4624_s10 + $0x88] sm:$0xff] %v3162_v41  ;;  %v3166_v43 = vld [vmem:[%s4628_s11 + $0x98] sm:$0xff]  ;;  %v3168_v44 = vld [vmem:[%s4628_s11 + $0xa0] sm:$0xff] }
 0x2fd   : >> { %3165 = vst [vmem:[%s4624_s10 + $0x90] sm:$0xff] %v3164_v42  ;;  %3167 = vst [vmem:[%s4624_s10 + $0x98] sm:$0xff] %v3166_v43  ;;  %v3170_v45 = vld [vmem:[%s4628_s11 + $0xa8] sm:$0xff]  ;;  %v3172_v46 = vld [vmem:[%s4628_s11 + $0xb0] sm:$0xff] }
 0x2fe   : >> { %3169 = vst [vmem:[%s4624_s10 + $0xa0] sm:$0xff] %v3168_v44  ;;  %v3174_v47 = vld [vmem:[%s4628_s11 + $0xb8] sm:$0xff]  ;;  %3171 = vst [vmem:[%s4624_s10 + $0xa8] sm:$0xff] %v3170_v45  ;;  %v3176_v48 = vld [vmem:[%s4628_s11 + $0xc0] sm:$0xff] }
 0x2ff   : >> { %3173 = vst [vmem:[%s4624_s10 + $0xb0] sm:$0xff] %v3172_v46  ;;  %3175 = vst [vmem:[%s4624_s10 + $0xb8] sm:$0xff] %v3174_v47  ;;  %v3178_v49 = vld [vmem:[%s4628_s11 + $0xc8] sm:$0xff]  ;;  %v3180_v50 = vld [vmem:[%s4628_s11 + $0xd0] sm:$0xff] }
 0x300   : >> { %3177 = vst [vmem:[%s4624_s10 + $0xc0] sm:$0xff] %v3176_v48  ;;  %3179 = vst [vmem:[%s4624_s10 + $0xc8] sm:$0xff] %v3178_v49  ;;  %v3182_v51 = vld [vmem:[%s4628_s11 + $0xd8] sm:$0xff]  ;;  %v3184_v52 = vld [vmem:[%s4628_s11 + $0xe0] sm:$0xff] }
 0x301   : >> { %3181 = vst [vmem:[%s4624_s10 + $0xd0] sm:$0xff] %v3180_v50  ;;  %v3186_v53 = vld [vmem:[%s4628_s11 + $0xe8] sm:$0xff]  ;;  %3183 = vst [vmem:[%s4624_s10 + $0xd8] sm:$0xff] %v3182_v51  ;;  %v3188_v55 = vld [vmem:[%s4628_s11 + $0xf0] sm:$0xff] }
 0x302   : >> { %3185 = vst [vmem:[%s4624_s10 + $0xe0] sm:$0xff] %v3184_v52  ;;  %3187 = vst [vmem:[%s4624_s10 + $0xe8] sm:$0xff] %v3186_v53  ;;  %v3190_v56 = vld [vmem:[%s4628_s11 + $0xf8] sm:$0xff]  ;;  %v3192_v57 = vld [vmem:[%s4628_s11 + $0x100] sm:$0xff] }
 0x303   : >> { %3189 = vst [vmem:[%s4624_s10 + $0xf0] sm:$0xff] %v3188_v55  ;;  %3191 = vst [vmem:[%s4624_s10 + $0xf8] sm:$0xff] %v3190_v56  ;;  %v3194_v58 = vld [vmem:[%s4628_s11 + $0x108] sm:$0xff]  ;;  %v3196_v59 = vld [vmem:[%s4628_s11 + $0x110] sm:$0xff] }
 0x304   : >> { %3193 = vst [vmem:[%s4624_s10 + $0x100] sm:$0xff] %v3192_v57  ;;  %v3198_v60 = vld [vmem:[%s4628_s11 + $0x118] sm:$0xff]  ;;  %3195 = vst [vmem:[%s4624_s10 + $0x108] sm:$0xff] %v3194_v58  ;;  %v3200_v61 = vld [vmem:[%s4628_s11 + $0x120] sm:$0xff] }
 0x305   : >> { %3197 = vst [vmem:[%s4624_s10 + $0x110] sm:$0xff] %v3196_v59  ;;  %3199 = vst [vmem:[%s4624_s10 + $0x118] sm:$0xff] %v3198_v60  ;;  %v3202_v62 = vld [vmem:[%s4628_s11 + $0x128] sm:$0xff]  ;;  %v3204_v63 = vld [vmem:[%s4628_s11 + $0x130] sm:$0xff] }
 0x306   : >> { %3201 = vst [vmem:[%s4624_s10 + $0x120] sm:$0xff] %v3200_v61  ;;  %3203 = vst [vmem:[%s4624_s10 + $0x128] sm:$0xff] %v3202_v62  ;;  %v3206_v0 = vld [vmem:[%s4628_s11 + $0x138] sm:$0xff]  ;;  %v3208_v1 = vld [vmem:[%s4628_s11 + $0x140] sm:$0xff] }
 0x307   : >> { %3205 = vst [vmem:[%s4624_s10 + $0x130] sm:$0xff] %v3204_v63  ;;  %v3210_v2 = vld [vmem:[%s4628_s11 + $0x148] sm:$0xff]  ;;  %3207 = vst [vmem:[%s4624_s10 + $0x138] sm:$0xff] %v3206_v0  ;;  %v3212_v3 = vld [vmem:[%s4628_s11 + $0x150] sm:$0xff] }
 0x308   : >> { %3209 = vst [vmem:[%s4624_s10 + $0x140] sm:$0xff] %v3208_v1  ;;  %3211 = vst [vmem:[%s4624_s10 + $0x148] sm:$0xff] %v3210_v2  ;;  %v3214_v4 = vld [vmem:[%s4628_s11 + $0x158] sm:$0xff]  ;;  %v3216_v5 = vld [vmem:[%s4628_s11 + $0x160] sm:$0xff] }
 0x309   : >> { %3213 = vst [vmem:[%s4624_s10 + $0x150] sm:$0xff] %v3212_v3  ;;  %3215 = vst [vmem:[%s4624_s10 + $0x158] sm:$0xff] %v3214_v4  ;;  %v3218_v6 = vld [vmem:[%s4628_s11 + $0x168] sm:$0xff]  ;;  %v3220_v7 = vld [vmem:[%s4628_s11 + $0x170] sm:$0xff] }
 0x30a   : >> { %3217 = vst [vmem:[%s4624_s10 + $0x160] sm:$0xff] %v3216_v5  ;;  %v3222_v8 = vld [vmem:[%s4628_s11 + $0x178] sm:$0xff]  ;;  %3219 = vst [vmem:[%s4624_s10 + $0x168] sm:$0xff] %v3218_v6  ;;  %v3224_v9 = vld [vmem:[%s4628_s11 + $0x180] sm:$0xff] }
 0x30b   : >> { %3221 = vst [vmem:[%s4624_s10 + $0x170] sm:$0xff] %v3220_v7  ;;  %3223 = vst [vmem:[%s4624_s10 + $0x178] sm:$0xff] %v3222_v8  ;;  %v3226_v10 = vld [vmem:[%s4628_s11 + $0x188] sm:$0xff]  ;;  %v3228_v11 = vld [vmem:[%s4628_s11 + $0x190] sm:$0xff] }
 0x30c   : >> { %3225 = vst [vmem:[%s4624_s10 + $0x180] sm:$0xff] %v3224_v9  ;;  %3227 = vst [vmem:[%s4624_s10 + $0x188] sm:$0xff] %v3226_v10  ;;  %v3230_v12 = vld [vmem:[%s4628_s11 + $0x198] sm:$0xff]  ;;  %v3232_v13 = vld [vmem:[%s4628_s11 + $0x1a0] sm:$0xff] }
 0x30d   : >> { %3229 = vst [vmem:[%s4624_s10 + $0x190] sm:$0xff] %v3228_v11  ;;  %v3234_v14 = vld [vmem:[%s4628_s11 + $0x1a8] sm:$0xff]  ;;  %3231 = vst [vmem:[%s4624_s10 + $0x198] sm:$0xff] %v3230_v12  ;;  %v3236_v15 = vld [vmem:[%s4628_s11 + $0x1b0] sm:$0xff]  ;;  %3124 = sbr.rel (!%p3121_p10) target bundleno = 755 (0x2f3), region = 279 }
 0x30e   : >> { %3233 = vst [vmem:[%s4624_s10 + $0x1a0] sm:$0xff] %v3232_v13  ;;  %3235 = vst [vmem:[%s4624_s10 + $0x1a8] sm:$0xff] %v3234_v14  ;;  %v3238_v16 = vld [vmem:[%s4628_s11 + $0x1b8] sm:$0xff]  ;;  %v3240_v17 = vld [vmem:[%s4628_s11 + $0x1c0] sm:$0xff] }
 0x30f   : >> { %3237 = vst [vmem:[%s4624_s10 + $0x1b0] sm:$0xff] %v3236_v15  ;;  %3239 = vst [vmem:[%s4624_s10 + $0x1b8] sm:$0xff] %v3238_v16  ;;  %v3242_v18 = vld [vmem:[%s4628_s11 + $0x1c8] sm:$0xff]  ;;  %v3244_v19 = vld [vmem:[%s4628_s11 + $0x1d0] sm:$0xff] }
 0x310   : >> { %3241 = vst [vmem:[%s4624_s10 + $0x1c0] sm:$0xff] %v3240_v17  ;;  %v3246_v20 = vld [vmem:[%s4628_s11 + $0x1d8] sm:$0xff]  ;;  %3243 = vst [vmem:[%s4624_s10 + $0x1c8] sm:$0xff] %v3242_v18  ;;  %v3248_v21 = vld [vmem:[%s4628_s11 + $0x1e0] sm:$0xff] }
 0x311   : >> { %3245 = vst [vmem:[%s4624_s10 + $0x1d0] sm:$0xff] %v3244_v19  ;;  %3247 = vst [vmem:[%s4624_s10 + $0x1d8] sm:$0xff] %v3246_v20  ;;  %v3250_v22 = vld [vmem:[%s4628_s11 + $0x1e8] sm:$0xff]  ;;  %v3252_v23 = vld [vmem:[%s4628_s11 + $0x1f0] sm:$0xff] }
 0x312   : >> { %3249 = vst [vmem:[%s4624_s10 + $0x1e0] sm:$0xff] %v3248_v21  ;;  %3251 = vst [vmem:[%s4624_s10 + $0x1e8] sm:$0xff] %v3250_v22  ;;  %v3254_v25 = vld [vmem:[%s4628_s11 + $0x1f8] sm:$0xff]  ;;  %s6407_s11 = smov %s6031_s30 }
 0x313   : >> { %3253 = vst [vmem:[%s4624_s10 + $0x1f0] sm:$0xff] %v3252_v23  ;;  %3255 = vst [vmem:[%s4624_s10 + $0x1f8] sm:$0xff] %v3254_v25  ;;  %s6406_s10 = smov %s6034_s26 }
 0x314 PF: > { %s6140_s2 = sand.u32 63, %s3115_s15   ;;  %s4047_s9 = sshll.u32 %s5964_s23, 13 }
 0x315   : > { %s3267_s8 = sshra.s32 %s4047_s9, 4  ;;  %p4028_p11 = scmp.le.s32.totalorder %s6140_s2, 0 }
 0x316   : > { %s3268_s28 = scalar_lea.vmem %s5882_s12, %s3267_s8 [#allocation3]   ;;  %s3271_s20 = scalar_lea.vmem %s5951_s19, %s3267_s8  }
 0x317   : > { %3658 = sbr.rel (%p4028_p11) target bundleno = 808 (0x328), region = 284  ;;  %s4638_s7 = smov (!%p4028_p11), %s3271_s20  }
 0x318   : > { %s4642_s4 = smov (!%p4028_p11), %s3268_s28   ;;  %s4646_s29 = smov (!%p4028_p11), 0  }
 0x319   : > { %s4650_s24 = smov (!%p4028_p11), 0  }
 0x31e LB: >> { %v3283_v54 = vld [vmem:[%s4644_s4] sm:$0xff]  ;;  %s3285_s15 = sadd.s32 1, %s4648_s29  ;;  %s3277_s24 = sadd.s32 1, %s4652_s24   ;;  %s4652_s24 = sphi %s4650_s24, %s3277_s24   ;;  %s4648_s29 = sphi %s4646_s29, %s4647_s29   ;;  %s4644_s4 = sphi %s4642_s4, %s3290_s4   ;;  %s4640_s7 = sphi %s4638_s7, %s3291_s7  }
 0x31f   : >> { %3284 = vst [vmem:[%s4640_s7] sm:$0xff] %v3283_v54  ;;  %p3286_p12 = scmp.ge.s32.totalorder %s3285_s15, %s6140_s2  ;;  %p3276_p13 = scmp.ge.s32.totalorder %s3277_s24, %s6140_s2 }
 0x321   : >> { %s6443_s15 = smov (%p3286_p12, %s3285_s15), 0  ;;  %3279 = sbr.rel (!%p3276_p13) target bundleno = 798 (0x31e), region = 290 }
 0x322   : >> { %s4029_s23 = sshll.u32 %s6443_s15, 3  ;;  %s4647_s29 = smov %s6443_s15  }
 0x323   : >> { %s3290_s4 = scalar_lea.vmem %s3268_s28, %s4029_s23 [#allocation3]   ;;  %s3291_s7 = scalar_lea.vmem %s3271_s20, %s4029_s23  }
 0x328 PF: > { %3294 = sbr.rel (%p3111_p5) target bundleno = 879 (0x36f), region = 143  ;;  %s6152_s10 = ssub.s32 (!%p3111_p5), %s5953_s21, %s5957_s14 }
 0x329   : > { %s3300_s11 = sshrl.u32 (!%p3111_p5), %s5953_s21, 3  ;;  %s3297_s22 = scalar_lea.vmem (!%p3111_p5), %s5882_s12, %s6152_s10 [#allocation3] }
 0x32a   : > { %s3299_s6 = scalar_lea.vmem (!%p3111_p5), %s5951_s19, %s6152_s10  ;;  %s6161_s25 = sshrl.u32 (!%p3111_p5), %s3300_s11, 6 }
 0x32b   : > { %p4031_p0 = scmp.le.s32.totalorder (!%p3111_p5), %s6161_s25, 0 }
 0x32f   : > { %3672 = sbr.rel (%p4031_p0) target bundleno = 855 (0x357), region = 295  ;;  %s6409_s5 = smov (!%p4031_p0), %s5951_s19 }
 0x330   : > { %s6410_s30 = smov (!%p4031_p0), %s5882_s12  ;;  %s6170_s26 = smov (!%p4031_p0), 0  }
 0x331   : > { %s6172_s2 = smov (!%p4031_p0), 0  }
 0x336 LB: >> { %v3313_v26 = vld [vmem:[%s4660_s30] sm:$0xff]  ;;  %v3315_v31 = vld [vmem:[%s4660_s30 + $0x8] sm:$0xff]  ;;  %v3317_v27 = vld [vmem:[%s4660_s30 + $0x10] sm:$0xff]  ;;  %s3441_s9 = sadd.s32 1, %s4664_s26  ;;  %s3307_s2 = sadd.s32 1, %s4668_s2   ;;  %s4668_s2 = sphi %s6172_s2, %s3307_s2   ;;  %s4664_s26 = sphi %s6170_s26, %s6413_s26   ;;  %s4660_s30 = sphi %s6410_s30, %s6412_s30   ;;  %s4656_s5 = sphi %s6409_s5, %s6411_s5  }
 0x337   : >> { %3314 = vst [vmem:[%s4656_s5] sm:$0xff] %v3313_v26  ;;  %3316 = vst [vmem:[%s4656_s5 + $0x8] sm:$0xff] %v3315_v31  ;;  %v3319_v28 = vld [vmem:[%s4660_s30 + $0x18] sm:$0xff]  ;;  %v3321_v29 = vld [vmem:[%s4660_s30 + $0x20] sm:$0xff]  ;;  %p3442_p1 = scmp.ge.s32.totalorder %s3441_s9, %s6161_s25  ;;  %p3306_p2 = scmp.ge.s32.totalorder %s3307_s2, %s6161_s25 }
 0x338   : >> { %3318 = vst [vmem:[%s4656_s5 + $0x10] sm:$0xff] %v3317_v27  ;;  %v3323_v30 = vld [vmem:[%s4660_s30 + $0x28] sm:$0xff]  ;;  %3320 = vst [vmem:[%s4656_s5 + $0x18] sm:$0xff] %v3319_v28  ;;  %v3325_v24 = vld [vmem:[%s4660_s30 + $0x30] sm:$0xff] }
 0x339   : >> { %3322 = vst [vmem:[%s4656_s5 + $0x20] sm:$0xff] %v3321_v29  ;;  %3324 = vst [vmem:[%s4656_s5 + $0x28] sm:$0xff] %v3323_v30  ;;  %v3327_v32 = vld [vmem:[%s4660_s30 + $0x38] sm:$0xff]  ;;  %v3329_v33 = vld [vmem:[%s4660_s30 + $0x40] sm:$0xff]  ;;  %s6445_s9 = smov (%p3442_p1, %s3441_s9), 0 }
 0x33a   : >> { %3326 = vst [vmem:[%s4656_s5 + $0x30] sm:$0xff] %v3325_v24  ;;  %3328 = vst [vmem:[%s4656_s5 + $0x38] sm:$0xff] %v3327_v32  ;;  %v3331_v34 = vld [vmem:[%s4660_s30 + $0x48] sm:$0xff]  ;;  %v3333_v35 = vld [vmem:[%s4660_s30 + $0x50] sm:$0xff]  ;;  %s4032_s8 = sshll.u32 %s6445_s9, 9  ;;  %s6413_s26 = smov %s6445_s9 }
 0x33b   : >> { %3330 = vst [vmem:[%s4656_s5 + $0x40] sm:$0xff] %v3329_v33  ;;  %v3335_v36 = vld [vmem:[%s4660_s30 + $0x58] sm:$0xff]  ;;  %3332 = vst [vmem:[%s4656_s5 + $0x48] sm:$0xff] %v3331_v34  ;;  %v3337_v37 = vld [vmem:[%s4660_s30 + $0x60] sm:$0xff]  ;;  %s6228_s28 = scalar_lea.vmem %s5882_s12, %s4032_s8 [#allocation3]   ;;  %s6231_s20 = scalar_lea.vmem %s5951_s19, %s4032_s8  }
 0x33c   : >> { %3334 = vst [vmem:[%s4656_s5 + $0x50] sm:$0xff] %v3333_v35  ;;  %3336 = vst [vmem:[%s4656_s5 + $0x58] sm:$0xff] %v3335_v36  ;;  %v3339_v38 = vld [vmem:[%s4660_s30 + $0x68] sm:$0xff]  ;;  %v3341_v39 = vld [vmem:[%s4660_s30 + $0x70] sm:$0xff] }
 0x33d   : >> { %3338 = vst [vmem:[%s4656_s5 + $0x60] sm:$0xff] %v3337_v37  ;;  %3340 = vst [vmem:[%s4656_s5 + $0x68] sm:$0xff] %v3339_v38  ;;  %v3343_v40 = vld [vmem:[%s4660_s30 + $0x78] sm:$0xff]  ;;  %v3345_v41 = vld [vmem:[%s4660_s30 + $0x80] sm:$0xff] }
 0x33e   : >> { %3342 = vst [vmem:[%s4656_s5 + $0x70] sm:$0xff] %v3341_v39  ;;  %v3347_v42 = vld [vmem:[%s4660_s30 + $0x88] sm:$0xff]  ;;  %3344 = vst [vmem:[%s4656_s5 + $0x78] sm:$0xff] %v3343_v40  ;;  %v3349_v43 = vld [vmem:[%s4660_s30 + $0x90] sm:$0xff] }
 0x33f   : >> { %3346 = vst [vmem:[%s4656_s5 + $0x80] sm:$0xff] %v3345_v41  ;;  %3348 = vst [vmem:[%s4656_s5 + $0x88] sm:$0xff] %v3347_v42  ;;  %v3351_v44 = vld [vmem:[%s4660_s30 + $0x98] sm:$0xff]  ;;  %v3353_v45 = vld [vmem:[%s4660_s30 + $0xa0] sm:$0xff] }
 0x340   : >> { %3350 = vst [vmem:[%s4656_s5 + $0x90] sm:$0xff] %v3349_v43  ;;  %3352 = vst [vmem:[%s4656_s5 + $0x98] sm:$0xff] %v3351_v44  ;;  %v3355_v46 = vld [vmem:[%s4660_s30 + $0xa8] sm:$0xff]  ;;  %v3357_v47 = vld [vmem:[%s4660_s30 + $0xb0] sm:$0xff] }
 0x341   : >> { %3354 = vst [vmem:[%s4656_s5 + $0xa0] sm:$0xff] %v3353_v45  ;;  %v3359_v48 = vld [vmem:[%s4660_s30 + $0xb8] sm:$0xff]  ;;  %3356 = vst [vmem:[%s4656_s5 + $0xa8] sm:$0xff] %v3355_v46  ;;  %v3361_v49 = vld [vmem:[%s4660_s30 + $0xc0] sm:$0xff] }
 0x342   : >> { %3358 = vst [vmem:[%s4656_s5 + $0xb0] sm:$0xff] %v3357_v47  ;;  %3360 = vst [vmem:[%s4656_s5 + $0xb8] sm:$0xff] %v3359_v48  ;;  %v3363_v50 = vld [vmem:[%s4660_s30 + $0xc8] sm:$0xff]  ;;  %v3365_v51 = vld [vmem:[%s4660_s30 + $0xd0] sm:$0xff] }
 0x343   : >> { %3362 = vst [vmem:[%s4656_s5 + $0xc0] sm:$0xff] %v3361_v49  ;;  %3364 = vst [vmem:[%s4656_s5 + $0xc8] sm:$0xff] %v3363_v50  ;;  %v3367_v52 = vld [vmem:[%s4660_s30 + $0xd8] sm:$0xff]  ;;  %v3369_v53 = vld [vmem:[%s4660_s30 + $0xe0] sm:$0xff] }
 0x344   : >> { %3366 = vst [vmem:[%s4656_s5 + $0xd0] sm:$0xff] %v3365_v51  ;;  %v3371_v55 = vld [vmem:[%s4660_s30 + $0xe8] sm:$0xff]  ;;  %3368 = vst [vmem:[%s4656_s5 + $0xd8] sm:$0xff] %v3367_v52  ;;  %v3373_v56 = vld [vmem:[%s4660_s30 + $0xf0] sm:$0xff] }
 0x345   : >> { %3370 = vst [vmem:[%s4656_s5 + $0xe0] sm:$0xff] %v3369_v53  ;;  %3372 = vst [vmem:[%s4656_s5 + $0xe8] sm:$0xff] %v3371_v55  ;;  %v3375_v57 = vld [vmem:[%s4660_s30 + $0xf8] sm:$0xff]  ;;  %v3377_v58 = vld [vmem:[%s4660_s30 + $0x100] sm:$0xff] }
 0x346   : >> { %3374 = vst [vmem:[%s4656_s5 + $0xf0] sm:$0xff] %v3373_v56  ;;  %3376 = vst [vmem:[%s4656_s5 + $0xf8] sm:$0xff] %v3375_v57  ;;  %v3379_v59 = vld [vmem:[%s4660_s30 + $0x108] sm:$0xff]  ;;  %v3381_v60 = vld [vmem:[%s4660_s30 + $0x110] sm:$0xff] }
 0x347   : >> { %3378 = vst [vmem:[%s4656_s5 + $0x100] sm:$0xff] %v3377_v58  ;;  %v3383_v61 = vld [vmem:[%s4660_s30 + $0x118] sm:$0xff]  ;;  %3380 = vst [vmem:[%s4656_s5 + $0x108] sm:$0xff] %v3379_v59  ;;  %v3385_v62 = vld [vmem:[%s4660_s30 + $0x120] sm:$0xff] }
 0x348   : >> { %3382 = vst [vmem:[%s4656_s5 + $0x110] sm:$0xff] %v3381_v60  ;;  %3384 = vst [vmem:[%s4656_s5 + $0x118] sm:$0xff] %v3383_v61  ;;  %v3387_v63 = vld [vmem:[%s4660_s30 + $0x128] sm:$0xff]  ;;  %v3389_v0 = vld [vmem:[%s4660_s30 + $0x130] sm:$0xff] }
 0x349   : >> { %3386 = vst [vmem:[%s4656_s5 + $0x120] sm:$0xff] %v3385_v62  ;;  %3388 = vst [vmem:[%s4656_s5 + $0x128] sm:$0xff] %v3387_v63  ;;  %v3391_v1 = vld [vmem:[%s4660_s30 + $0x138] sm:$0xff]  ;;  %v3393_v2 = vld [vmem:[%s4660_s30 + $0x140] sm:$0xff] }
 0x34a   : >> { %3390 = vst [vmem:[%s4656_s5 + $0x130] sm:$0xff] %v3389_v0  ;;  %v3395_v3 = vld [vmem:[%s4660_s30 + $0x148] sm:$0xff]  ;;  %3392 = vst [vmem:[%s4656_s5 + $0x138] sm:$0xff] %v3391_v1  ;;  %v3397_v4 = vld [vmem:[%s4660_s30 + $0x150] sm:$0xff] }
 0x34b   : >> { %3394 = vst [vmem:[%s4656_s5 + $0x140] sm:$0xff] %v3393_v2  ;;  %3396 = vst [vmem:[%s4656_s5 + $0x148] sm:$0xff] %v3395_v3  ;;  %v3399_v5 = vld [vmem:[%s4660_s30 + $0x158] sm:$0xff]  ;;  %v3401_v6 = vld [vmem:[%s4660_s30 + $0x160] sm:$0xff] }
 0x34c   : >> { %3398 = vst [vmem:[%s4656_s5 + $0x150] sm:$0xff] %v3397_v4  ;;  %3400 = vst [vmem:[%s4656_s5 + $0x158] sm:$0xff] %v3399_v5  ;;  %v3403_v7 = vld [vmem:[%s4660_s30 + $0x168] sm:$0xff]  ;;  %v3405_v8 = vld [vmem:[%s4660_s30 + $0x170] sm:$0xff] }
 0x34d   : >> { %3402 = vst [vmem:[%s4656_s5 + $0x160] sm:$0xff] %v3401_v6  ;;  %v3407_v9 = vld [vmem:[%s4660_s30 + $0x178] sm:$0xff]  ;;  %3404 = vst [vmem:[%s4656_s5 + $0x168] sm:$0xff] %v3403_v7  ;;  %v3409_v10 = vld [vmem:[%s4660_s30 + $0x180] sm:$0xff] }
 0x34e   : >> { %3406 = vst [vmem:[%s4656_s5 + $0x170] sm:$0xff] %v3405_v8  ;;  %3408 = vst [vmem:[%s4656_s5 + $0x178] sm:$0xff] %v3407_v9  ;;  %v3411_v11 = vld [vmem:[%s4660_s30 + $0x188] sm:$0xff]  ;;  %v3413_v12 = vld [vmem:[%s4660_s30 + $0x190] sm:$0xff] }
 0x34f   : >> { %3410 = vst [vmem:[%s4656_s5 + $0x180] sm:$0xff] %v3409_v10  ;;  %3412 = vst [vmem:[%s4656_s5 + $0x188] sm:$0xff] %v3411_v11  ;;  %v3415_v13 = vld [vmem:[%s4660_s30 + $0x198] sm:$0xff]  ;;  %v3417_v14 = vld [vmem:[%s4660_s30 + $0x1a0] sm:$0xff] }
 0x350   : >> { %3414 = vst [vmem:[%s4656_s5 + $0x190] sm:$0xff] %v3413_v12  ;;  %v3419_v15 = vld [vmem:[%s4660_s30 + $0x1a8] sm:$0xff]  ;;  %3416 = vst [vmem:[%s4656_s5 + $0x198] sm:$0xff] %v3415_v13  ;;  %v3421_v16 = vld [vmem:[%s4660_s30 + $0x1b0] sm:$0xff]  ;;  %3309 = sbr.rel (!%p3306_p2) target bundleno = 822 (0x336), region = 301 }
 0x351   : >> { %3418 = vst [vmem:[%s4656_s5 + $0x1a0] sm:$0xff] %v3417_v14  ;;  %3420 = vst [vmem:[%s4656_s5 + $0x1a8] sm:$0xff] %v3419_v15  ;;  %v3423_v17 = vld [vmem:[%s4660_s30 + $0x1b8] sm:$0xff]  ;;  %v3425_v18 = vld [vmem:[%s4660_s30 + $0x1c0] sm:$0xff] }
 0x352   : >> { %3422 = vst [vmem:[%s4656_s5 + $0x1b0] sm:$0xff] %v3421_v16  ;;  %3424 = vst [vmem:[%s4656_s5 + $0x1b8] sm:$0xff] %v3423_v17  ;;  %v3427_v19 = vld [vmem:[%s4660_s30 + $0x1c8] sm:$0xff]  ;;  %v3429_v20 = vld [vmem:[%s4660_s30 + $0x1d0] sm:$0xff] }
 0x353   : >> { %3426 = vst [vmem:[%s4656_s5 + $0x1c0] sm:$0xff] %v3425_v18  ;;  %v3431_v21 = vld [vmem:[%s4660_s30 + $0x1d8] sm:$0xff]  ;;  %3428 = vst [vmem:[%s4656_s5 + $0x1c8] sm:$0xff] %v3427_v19  ;;  %v3433_v22 = vld [vmem:[%s4660_s30 + $0x1e0] sm:$0xff] }
 0x354   : >> { %3430 = vst [vmem:[%s4656_s5 + $0x1d0] sm:$0xff] %v3429_v20  ;;  %3432 = vst [vmem:[%s4656_s5 + $0x1d8] sm:$0xff] %v3431_v21  ;;  %v3435_v23 = vld [vmem:[%s4660_s30 + $0x1e8] sm:$0xff]  ;;  %v3437_v25 = vld [vmem:[%s4660_s30 + $0x1f0] sm:$0xff] }
 0x355   : >> { %3434 = vst [vmem:[%s4656_s5 + $0x1e0] sm:$0xff] %v3433_v22  ;;  %3436 = vst [vmem:[%s4656_s5 + $0x1e8] sm:$0xff] %v3435_v23  ;;  %v3439_v54 = vld [vmem:[%s4660_s30 + $0x1f8] sm:$0xff]  ;;  %s6412_s30 = smov %s6228_s28 }
 0x356   : >> { %3438 = vst [vmem:[%s4656_s5 + $0x1f0] sm:$0xff] %v3437_v25  ;;  %3440 = vst [vmem:[%s4656_s5 + $0x1f8] sm:$0xff] %v3439_v54  ;;  %s6411_s5 = smov %s6231_s20 }
 0x357 PF: > { %s6337_s7 = sand.u32 63, %s3300_s11   ;;  %s4049_s4 = sshll.u32 %s6161_s25, 13 }
 0x358   : > { %s3452_s29 = sshra.s32 %s4049_s4, 4  ;;  %p4037_p3 = scmp.le.s32.totalorder %s6337_s7, 0 }
 0x359   : > { %s3453_s24 = scalar_lea.vmem %s5882_s12, %s3452_s29 [#allocation3]   ;;  %s3456_s15 = scalar_lea.vmem %s5951_s19, %s3452_s29  }
 0x35a   : > { %3686 = sbr.rel (%p4037_p3) target bundleno = 875 (0x36b), region = 306  ;;  %s4670_s23 = smov (!%p4037_p3), %s3456_s15  }
 0x35b   : > { %s4674_s9 = smov (!%p4037_p3), %s3453_s24   ;;  %s4678_s8 = smov (!%p4037_p3), 0  }
 0x35c   : > { %s4682_s2 = smov (!%p4037_p3), 0  }
 0x361 LB: >> { %v3468_v26 = vld [vmem:[%s4676_s9] sm:$0xff]  ;;  %s3470_s11 = sadd.s32 1, %s4680_s8  ;;  %s3462_s2 = sadd.s32 1, %s4684_s2   ;;  %s4684_s2 = sphi %s4682_s2, %s3462_s2   ;;  %s4680_s8 = sphi %s4678_s8, %s4679_s8   ;;  %s4676_s9 = sphi %s4674_s9, %s3475_s9   ;;  %s4672_s23 = sphi %s4670_s23, %s3476_s23  }
 0x362   : >> { %3469 = vst [vmem:[%s4672_s23] sm:$0xff] %v3468_v26  ;;  %p3471_p4 = scmp.ge.s32.totalorder %s3470_s11, %s6337_s7  ;;  %p3461_p6 = scmp.ge.s32.totalorder %s3462_s2, %s6337_s7 }
 0x364   : >> { %s6447_s11 = smov (%p3471_p4, %s3470_s11), 0  ;;  %3464 = sbr.rel (!%p3461_p6) target bundleno = 865 (0x361), region = 312 }
 0x365   : >> { %s4038_s25 = sshll.u32 %s6447_s11, 3  ;;  %s4679_s8 = smov %s6447_s11  }
 0x366   : >> { %s3475_s9 = scalar_lea.vmem %s3453_s24, %s4038_s25 [#allocation3]   ;;  %s3476_s23 = scalar_lea.vmem %s3456_s15, %s4038_s25  }
 0x36b PF: > { %s4689_s5 = smov 0  }
 0x36c   : > { %s3477_s30 = sshllo.u32 %s4689_s5, %s5957_s14 }
 0x36d   : > { %v3486_v31 = vld [vmem:[%s3297_s22] sm:%s3477_s30] }
 0x36e   : > { %3487 = vst [vmem:[%s3299_s6] sm:%s3477_s30] %v3486_v31 }
 0x36f PF: > { %p4040_p5 = scmp.ge.u32.totalorder %s5953_s21, 8 }
 0x370   : > { %s4690_s26 = smov (!%p4040_p5), 0  }
 0x371   : > { %3098 = sbr.rel (%p4040_p5) target bundleno = 888 (0x378), region = 114  ;;  %s3099_s28 = sshllo.u32 (!%p4040_p5), %s4690_s26, %s5953_s21 }
 0x372   : > { %v3108_v27 = vld [vmem:[%s5882_s12] sm:%s3099_s28] (!%p4040_p5) }
 0x373   : > { %3109 = vst [vmem:[%s5951_s19] sm:%s3099_s28] (!%p4040_p5), %v3108_v27 }
 0x378 PF: > { %s13_s18 = sadd.s32 1, %s4556_s18   ;;  %s6414_s10 = sld [smem:[#allocation4_spill]] }
 0x379   : > { %p10_p7 = scmp.ge.s32.totalorder %s13_s18, 18   ;;  %s6415_s22 = sld [smem:[#allocation5_spill]] }
 0x37a   : > { %s6416_s12 = smov %s4536_s13  ;;  %s6417_s13 = smov %s4767_s27 }
 0x37b   : > { %s6418_s14 = smov %s4548_s16  ;;  %s6419_s15 = smov %s4552_s17 }
 0x37c   :  { %12 = sbr.rel (!%p10_p7) target bundleno = 6 (0x6), region = 323 }
 0x37e   : > { %s6420_s16 = smov %s6414_s10 }
 0x37f   : > { %s6421_s17 = smov %s6415_s22 }

</bundles_post_ra>
